<compile_context>
chip_gen: v7x
topology: tpu7x:2x2x1
jax: 0.10.0
libtpu: 0.0.40
codegen_flags: <defaults>
</compile_context>

<pallas_src>
from functools import partial

import jax
import jax.numpy as jnp
from jax.experimental import pallas as pl
from jax.experimental.pallas import tpu as pltpu


# ----------------------- in-kernel elementwise helpers -----------------------
def _erf(x):
    # Abramowitz & Stegun 7.1.26 (|err| < 1.5e-7): reproduces PyTorch's exact-erf
    # GELU to float32 precision using only Mosaic-supported ops.
    p = 0.3275911
    a1, a2, a3, a4, a5 = 0.254829592, -0.284496736, 1.421413741, -1.453152027, 1.061405429
    s = jnp.where(x < 0.0, -1.0, 1.0)
    ax = jnp.abs(x)
    t = 1.0 / (1.0 + p * ax)
    poly = ((((a5 * t + a4) * t + a3) * t + a2) * t + a1) * t
    return s * (1.0 - poly * jnp.exp(-ax * ax))


def _gelu(x):
    return 0.5 * x * (1.0 + _erf(x * 0.7071067811865476))


def _sigmoid(x):
    return 1.0 / (1.0 + jnp.exp(-x))


def _layernorm(x, gamma, beta, d_true, eps=1e-5):
    """LayerNorm over the last axis, exact under zero lane-padding.

    Padded lanes of x are identically 0 by construction; statistics use the true
    feature dim d_true, and gamma/beta are zero in the padded lanes so padded
    outputs stay 0 (matches torch.nn.LayerNorm on the unpadded tensor exactly).
    """
    inv_d = 1.0 / d_true
    mu = jnp.sum(x, axis=-1, keepdims=True) * inv_d
    diff = x - mu
    if d_true != x.shape[-1]:
        lane = jax.lax.broadcasted_iota(jnp.int32, x.shape, x.ndim - 1)
        diff = jnp.where(lane < d_true, diff, 0.0)
    var = jnp.sum(diff * diff, axis=-1, keepdims=True) * inv_d
    return diff * jax.lax.rsqrt(var + eps) * gamma + beta


# ------------------------------- fused kernel --------------------------------
def gps_fused_kernel(
        x_ref, dist_ref,
        e2w_ref, e2b_ref, ew_ref, eb_ref,
        m1g_ref, m1b_ref, m1w1_ref, m1b1_ref, m1w2_ref, m1b2_ref,
        lng_ref, lnb_ref, wih_ref, whh_ref, lb_ref,
        m2w_ref, m2b_ref,
        hw1_ref, hb1_ref, hw2_ref, hb2_ref,
        out_ref,
        dense_sc,
        *, d_true):
    """Whole GPSModel forward for one graph block.

    Grid = (graph_blocks, num_layers).  x_ref/dist_ref blocks are constant over the
    layer axis (fetched once per graph block); per-layer weights are indexed by the
    layer grid coordinate; dense node features stay resident in dense_sc across the
    layer axis.  The encoder runs at layer==0, the head at layer==L-1.
    """
    layer = pl.program_id(1)
    n_layers = pl.num_programs(1)

    bg, m, f = x_ref.shape            # graphs per block, max nodes, raw feature dim
    d = dense_sc.shape[1]             # padded dim_hidden (multiple of 128)
    hdim = whh_ref.shape[1]           # padded dim_v (4*hdim multiple of 128)
    k_hops = dist_ref.shape[1] // m
    r = bg * m                        # node rows per graph block

    # ---------------- encoder (fused): runs once per graph block ----------------
    # inputs.x = linearEncoder(gelu(linearEncoder2(inputs.x)))
    @pl.when(layer == 0)
    def _encode():
        xf = x_ref[...].reshape(r, f)
        h = jnp.dot(xf, e2w_ref[...], preferred_element_type=jnp.float32) + e2b_ref[...]
        h = _gelu(h)
        h = jnp.dot(h, ew_ref[...], preferred_element_type=jnp.float32) + eb_ref[...]
        dense_sc[...] = h

    # ---------------- LSTMLayer `layer` ----------------
    dense = dense_sc[...]                                   # (R, D) f32, resident
    dense_bf = dense.astype(jnp.bfloat16)                   # bf16 operand for the MXU

    # sumNodeFeatures: per graph, all K hops stacked along rows -> one
    # (K*M, M) @ (M, D) bf16 matmul; results re-assembled hop-major so the LSTM
    # recurrence can slice one (R, 4H) timestep at a time.
    pieces = []
    for b in range(bg):
        a_b = jnp.dot(dist_ref[b], dense_bf[b * m:(b + 1) * m, :],
                      preferred_element_type=jnp.float32)            # (K*M, D) f32
        pieces.append(a_b.reshape(k_hops, m, d))
    agg = pieces[0] if bg == 1 else jnp.concatenate(pieces, axis=1)  # (K, R, D)

    # ---- MLP1 on hop 0 only (only x_skip[0] is consumed downstream) ----
    h0 = agg[0]                                              # (R, D)
    xn = _layernorm(h0, m1g_ref[0], m1b_ref[0], d_true)
    z = _gelu(jnp.dot(xn, m1w1_ref[0], preferred_element_type=jnp.float32) + m1b1_ref[0])
    z = jnp.dot(z, m1w2_ref[0], preferred_element_type=jnp.float32) + m1b2_ref[0]
    x_skip0 = z + h0                                         # (R, D)

    # ---- LSTM: layer_norm + input projection hoisted over all hops & graphs ----
    xn_all = _layernorm(agg.reshape(k_hops * r, d), lng_ref[0], lnb_ref[0], d_true)
    gates_x = (jnp.dot(xn_all, wih_ref[0], preferred_element_type=jnp.float32)
               + lb_ref[0])                                   # (K*R, 4H)

    whh = whh_ref[0]
    h_state = jnp.zeros((r, hdim), jnp.float32)
    c_state = jnp.zeros((r, hdim), jnp.float32)
    for t in range(k_hops):            # static unroll; timestep t sees hop K-1-t
        hop = k_hops - 1 - t           # (transpose(0,1) + flip(dims=[1]))
        g_all = gates_x[hop * r:(hop + 1) * r, :] + jnp.dot(
            h_state, whh, preferred_element_type=jnp.float32)         # (R, 4H)
        if hdim % 128 == 0:
            # vreg-aligned gate slices: activate only what each gate needs (EUP work /2)
            i_g = _sigmoid(g_all[:, 0 * hdim:1 * hdim])
            f_g = _sigmoid(g_all[:, 1 * hdim:2 * hdim])
            g_g = jnp.tanh(g_all[:, 2 * hdim:3 * hdim])
            o_g = _sigmoid(g_all[:, 3 * hdim:4 * hdim])
        else:
            # 4H fits few vregs: one full-width sigmoid + one tanh, then slice
            sg = _sigmoid(g_all)
            tg = jnp.tanh(g_all)
            i_g = sg[:, 0 * hdim:1 * hdim]
            f_g = sg[:, 1 * hdim:2 * hdim]
            g_g = tg[:, 2 * hdim:3 * hdim]
            o_g = sg[:, 3 * hdim:4 * hdim]
        c_state = f_g * c_state + i_g * g_g
        h_state = o_g * jnp.tanh(c_state)

    # ---- MLP2 ('full-glu', two projections fused) + residual x_skip[0] ----
    y = _gelu(h_state)                                        # (R, H)
    ab = jnp.dot(y, m2w_ref[0], preferred_element_type=jnp.float32) + m2b_ref[0]   # (R, 2D)
    glu = ab[:, 0:d] * _sigmoid(ab[:, d:2 * d])
    new_dense = glu + x_skip0                                 # (R, D)
    dense_sc[...] = new_dense                                 # stays resident for layer+1

    # ---------------- head (fused): runs once, after the last layer ----------------
    @pl.when(layer == n_layers - 1)
    def _head():
        s = jnp.sum(new_dense.reshape(bg, m, d), axis=1)      # (Bg, D) sum over nodes
        zh = _gelu(jnp.dot(s, hw1_ref[...], preferred_element_type=jnp.float32) + hb1_ref[...])
        out_ref[0] = jnp.dot(zh, hw2_ref[...], preferred_element_type=jnp.float32) + hb2_ref[...]


# --------------------------------- glue (JAX) ---------------------------------
@partial(jax.jit, static_argnums=(4, 5, 6, 7))
def gps_forward(params, x, dist_mask, graph_labels, num_graphs, max_nodes,
                dim_hidden, block_graphs):
    """GPSModel.forward (dataset='CIFAR10', architecture='LSTM') as one pallas_call.

    graph_labels are assumed sorted with uniform graph sizes (as constructed in
    __main__), so to_dense_batch reduces to a reshape and the valid-node mask is
    all-True.  (graph_labels kept for interface fidelity.)
    """
    del graph_labels
    G, M, Bg = num_graphs, max_nodes, block_graphs
    assert G % Bg == 0, "block_graphs must divide num_graphs"
    n_blocks = G // Bg
    F = x.shape[-1]
    K = dist_mask.shape[1]
    L = params["mlp1_w1"].shape[0]
    Dp = params["enc_w"].shape[0]
    Hp = params["lstm_whh"].shape[1]
    OUT = params["head_w2"].shape[-1]

    # to_dense_batch == reshape for sorted, uniform-size graphs.
    x_dense = x.reshape(G, M, F)
    # distance_masks.float() -> bf16 (exact for the {0,1} mask); hops stacked along
    # rows so sumNodeFeatures is one 2-D MXU matmul per graph inside the kernel.
    dist_f = dist_mask.astype(jnp.bfloat16).reshape(G, K * M, M)

    def w2(name):   # whole-array weight block (encoder / head): same block every step
        s = params[name].shape
        return pl.BlockSpec(s, lambda gb, l: (0, 0))

    def w3(name):   # per-layer stacked weight block: pick layer l
        s = params[name].shape
        return pl.BlockSpec((1,) + s[1:], lambda gb, l: (l, 0, 0))

    in_specs = [
        pl.BlockSpec((Bg, M, F), lambda gb, l: (gb, 0, 0)),       # raw node features
        pl.BlockSpec((Bg, K * M, M), lambda gb, l: (gb, 0, 0)),   # distance masks (bf16)
        w2("enc2_w"), w2("enc2_b"), w2("enc_w"), w2("enc_b"),
        w3("mlp1_ln_g"), w3("mlp1_ln_b"), w3("mlp1_w1"), w3("mlp1_b1"),
        w3("mlp1_w2"), w3("mlp1_b2"),
        w3("ln_g"), w3("ln_b"), w3("lstm_wih"), w3("lstm_whh"), w3("lstm_b"),
        w3("mlp2_w"), w3("mlp2_b"),
        w2("head_w1"), w2("head_b1"), w2("head_w2"), w2("head_b2"),
    ]
    out_specs = pl.BlockSpec((1, Bg, OUT), lambda gb, l: (gb, 0, 0))

    # Explicit VMEM limit (double-buffered input blocks + scratch + margin).
    # Re-derive Bg / this budget for v7x's 64 MiB physical VMEM at large M/K.
    w3_names = ["mlp1_ln_g", "mlp1_ln_b", "mlp1_w1", "mlp1_b1", "mlp1_w2", "mlp1_b2",
                "ln_g", "ln_b", "lstm_wih", "lstm_whh", "lstm_b", "mlp2_w", "mlp2_b"]
    w2_names = ["enc2_w", "enc2_b", "enc_w", "enc_b",
                "head_w1", "head_b1", "head_w2", "head_b2"]
    blk_bytes = (Bg * M * F * 4 + Bg * K * M * M * 2 + Bg * OUT * 4
                 + sum(int(params[n].size // params[n].shape[0]) * 4 for n in w3_names)
                 + sum(int(params[n].size) * 4 for n in w2_names))
    vmem_limit = int(min(100 << 20, max(16 << 20,
                                        2 * blk_bytes + Bg * M * Dp * 4 + (4 << 20))))

    kernel = partial(gps_fused_kernel, d_true=dim_hidden)
    out = pl.pallas_call(
        kernel,
        out_shape=jax.ShapeDtypeStruct((n_blocks, Bg, OUT), jnp.float32),
        grid=(n_blocks, L),
        in_specs=in_specs,
        out_specs=out_specs,
        scratch_shapes=[pltpu.VMEM((Bg * M, Dp), jnp.float32)],   # resident node state
        compiler_params=pltpu.CompilerParams(
            dimension_semantics=("parallel", "arbitrary"),
            vmem_limit_bytes=vmem_limit),
    )(x_dense, dist_f,
      params["enc2_w"], params["enc2_b"], params["enc_w"], params["enc_b"],
      params["mlp1_ln_g"], params["mlp1_ln_b"], params["mlp1_w1"], params["mlp1_b1"],
      params["mlp1_w2"], params["mlp1_b2"],
      params["ln_g"], params["ln_b"],
      params["lstm_wih"], params["lstm_whh"], params["lstm_b"],
      params["mlp2_w"], params["mlp2_b"],
      params["head_w1"], params["head_b1"], params["head_w2"], params["head_b2"])
    return out.reshape(G, OUT)


# ------------------------------ parameter setup ------------------------------
def _round_up(v, mult):
    return ((v + mult - 1) // mult) * mult


def _pad2(a, rows, cols):
    out = jnp.zeros((rows, cols), a.dtype)
    return out.at[:a.shape[0], :a.shape[1]].set(a)


def _pad_gate_cols(w, h_true, h_pad):
    # w: (..., 4*h_true) with PyTorch LSTM gate order [i|f|g|o]; pad each gate block.
    if h_true == h_pad:
        return w
    gates = [w[..., g * h_true:(g + 1) * h_true] for g in range(4)]
    pads = [(0, 0)] * (w.ndim - 1) + [(0, h_pad - h_true)]
    return jnp.concatenate([jnp.pad(g_, pads) for g_ in gates], axis=-1)


def init_params(key, node_feature_dim, dim_hidden, dim_v, dim_out, num_layers):
    # Linear weights stored as [in, out] (PyTorch weight.T); LSTM gate order i,f,g,o;
    # lstm_b is b_ih + b_hh combined.
    def nrm(k, shape, scale=0.1):
        return scale * jax.random.normal(k, shape, jnp.float32)

    keys = iter(jax.random.split(key, 128))
    p = {
        "enc2_w": nrm(next(keys), (node_feature_dim, dim_hidden)),
        "enc2_b": nrm(next(keys), (1, dim_hidden)),
        "enc_w": nrm(next(keys), (dim_hidden, dim_hidden)),
        "enc_b": nrm(next(keys), (1, dim_hidden)),
        "head_w1": nrm(next(keys), (dim_hidden, dim_hidden)),
        "head_b1": nrm(next(keys), (1, dim_hidden)),
        "head_w2": nrm(next(keys), (dim_hidden, dim_out)),
        "head_b2": nrm(next(keys), (1, dim_out)),
        "layers": [],
    }
    for _ in range(num_layers):
        lp = {
            "mlp1": {
                "ln_g": jnp.ones((1, dim_hidden), jnp.float32),
                "ln_b": jnp.zeros((1, dim_hidden), jnp.float32),
                "w1": nrm(next(keys), (dim_hidden, dim_hidden)),
                "b1": nrm(next(keys), (1, dim_hidden)),
                "w2": nrm(next(keys), (dim_hidden, dim_hidden)),
                "b2": nrm(next(keys), (1, dim_hidden)),
            },
            "ln_g": jnp.ones((1, dim_hidden), jnp.float32),
            "ln_b": jnp.zeros((1, dim_hidden), jnp.float32),
            "lstm_wih": nrm(next(keys), (dim_hidden, 4 * dim_v)),
            "lstm_whh": nrm(next(keys), (dim_v, 4 * dim_v)),
            "lstm_b": nrm(next(keys), (1, 4 * dim_v)),
            "mlp2_w1": nrm(next(keys), (dim_v, dim_hidden)),
            "mlp2_b1": nrm(next(keys), (1, dim_hidden)),
            "mlp2_w2": nrm(next(keys), (dim_v, dim_hidden)),
            "mlp2_b2": nrm(next(keys), (1, dim_hidden)),
        }
        p["layers"].append(lp)
    return p


def prepare_params(p, dim_hidden, dim_v, lane=128):
    """One-time kernel-side parameter prep (all done at init, not per forward):
      * zero-pad dim_hidden to a multiple of 128 lanes and dim_v so 4*dim_v is a
        multiple of 128 (zero padding keeps the forward exact: padded activations
        stay 0 through every layer; layer_norm gamma/beta pads are 0),
      * fuse the MLP2 GLU projections into one (H, 2*Dp) weight,
      * stack per-layer weights along a leading (L, ...) axis for the fused kernel.
    """
    D, H = dim_hidden, dim_v
    Dp = _round_up(D, lane)
    Hp = _round_up(H, lane // 4)
    F = p["enc2_w"].shape[0]
    OUT = p["head_w2"].shape[1]

    out = {
        "enc2_w": _pad2(p["enc2_w"], F, Dp),
        "enc2_b": _pad2(p["enc2_b"], 1, Dp),
        "enc_w": _pad2(p["enc_w"], Dp, Dp),
        "enc_b": _pad2(p["enc_b"], 1, Dp),
        "head_w1": _pad2(p["head_w1"], Dp, Dp),
        "head_b1": _pad2(p["head_b1"], 1, Dp),
        "head_w2": _pad2(p["head_w2"], Dp, OUT),
        "head_b2": p["head_b2"],
    }

    def stack(fn):
        return jnp.stack([fn(lp) for lp in p["layers"]], axis=0)

    out["mlp1_ln_g"] = stack(lambda lp: _pad2(lp["mlp1"]["ln_g"], 1, Dp))
    out["mlp1_ln_b"] = stack(lambda lp: _pad2(lp["mlp1"]["ln_b"], 1, Dp))
    out["mlp1_w1"] = stack(lambda lp: _pad2(lp["mlp1"]["w1"], Dp, Dp))
    out["mlp1_b1"] = stack(lambda lp: _pad2(lp["mlp1"]["b1"], 1, Dp))
    out["mlp1_w2"] = stack(lambda lp: _pad2(lp["mlp1"]["w2"], Dp, Dp))
    out["mlp1_b2"] = stack(lambda lp: _pad2(lp["mlp1"]["b2"], 1, Dp))
    out["ln_g"] = stack(lambda lp: _pad2(lp["ln_g"], 1, Dp))
    out["ln_b"] = stack(lambda lp: _pad2(lp["ln_b"], 1, Dp))
    out["lstm_wih"] = stack(lambda lp: _pad2(_pad_gate_cols(lp["lstm_wih"], H, Hp), Dp, 4 * Hp))
    out["lstm_whh"] = stack(lambda lp: _pad2(_pad_gate_cols(lp["lstm_whh"], H, Hp), Hp, 4 * Hp))
    out["lstm_b"] = stack(lambda lp: _pad2(_pad_gate_cols(lp["lstm_b"], H, Hp), 1, 4 * Hp))
    # MLP2 'full-glu': fuse the two projections into one weight / bias (once, here).
    out["mlp2_w"] = stack(lambda lp: jnp.concatenate(
        [_pad2(lp["mlp2_w1"], Hp, Dp), _pad2(lp["mlp2_w2"], Hp, Dp)], axis=1))
    out["mlp2_b"] = stack(lambda lp: jnp.concatenate(
        [_pad2(lp["mlp2_b1"], 1, Dp), _pad2(lp["mlp2_b2"], 1, Dp)], axis=1))
    return out


def pick_block_graphs(num_graphs, max_block=8):
    """Largest graph batch that divides num_graphs while keeping >= 2 steps on the
    parallel grid axis (so v7x's second TensorCore gets work).  Lower max_block if
    the (Bg, K*M, M) dist block would not fit v7x's 64 MiB VMEM."""
    best = 1
    for bg in range(1, min(max_block, num_graphs) + 1):
        if num_graphs % bg != 0:
            continue
        if num_graphs == 1 or num_graphs // bg >= 2:
            best = bg
    return best


# ----------------------------------- main -----------------------------------
if __name__ == "__main__":
    G, M, F = 4, 8, 8          # graphs, max nodes per graph, raw node feature dim
    D, H, OUT = 32, 32, 4      # dim_hidden, dim_v, dim_out (padded to 128 / 32 internally)
    K = 4                      # number of distance hops in dist_mask
    NUM_LAYERS = 2
    N = G * M                  # total nodes

    root = jax.random.PRNGKey(0)
    k_x, k_d, k_p = jax.random.split(root, 3)
    x = jax.random.normal(k_x, (N, F), jnp.float32)                   # inputs.x
    dist_mask = jax.random.bernoulli(k_d, 0.3, (G, K, M, M))          # boolean distance masks
    graph_labels = jnp.repeat(jnp.arange(G, dtype=jnp.int32), M)      # inputs.batch (sorted, uniform)

    raw_params = init_params(k_p, F, D, H, OUT, NUM_LAYERS)
    params = prepare_params(raw_params, D, H)                         # pad + stack + fuse (once)
    BG = pick_block_graphs(G)                                         # -> 2 (grid = (2, L))

    out = gps_forward(params, x, dist_mask, graph_labels, G, M, D, BG)
    out = jax.block_until_ready(out)
    assert out.shape == (G, OUT), out.shape
    assert bool(jnp.all(jnp.isfinite(out)))
    print("KERNEL_OK")
</pallas_src>

<mosaic_0001>
module attributes {stable_mosaic.version = 11 : i64} {
  func.func @gps_fused_kernel(%arg0: i32, %arg1: i32, %arg2: memref<2x8x8xf32, #tpu.memory_space<vmem>>, %arg3: memref<2x32x8xbf16, #tpu.memory_space<vmem>>, %arg4: memref<8x128xf32, #tpu.memory_space<vmem>>, %arg5: memref<1x128xf32, #tpu.memory_space<vmem>>, %arg6: memref<128x128xf32, #tpu.memory_space<vmem>>, %arg7: memref<1x128xf32, #tpu.memory_space<vmem>>, %arg8: memref<1x1x128xf32, #tpu.memory_space<vmem>>, %arg9: memref<1x1x128xf32, #tpu.memory_space<vmem>>, %arg10: memref<1x128x128xf32, #tpu.memory_space<vmem>>, %arg11: memref<1x1x128xf32, #tpu.memory_space<vmem>>, %arg12: memref<1x128x128xf32, #tpu.memory_space<vmem>>, %arg13: memref<1x1x128xf32, #tpu.memory_space<vmem>>, %arg14: memref<1x1x128xf32, #tpu.memory_space<vmem>>, %arg15: memref<1x1x128xf32, #tpu.memory_space<vmem>>, %arg16: memref<1x128x128xf32, #tpu.memory_space<vmem>>, %arg17: memref<1x32x128xf32, #tpu.memory_space<vmem>>, %arg18: memref<1x1x128xf32, #tpu.memory_space<vmem>>, %arg19: memref<1x32x256xf32, #tpu.memory_space<vmem>>, %arg20: memref<1x1x256xf32, #tpu.memory_space<vmem>>, %arg21: memref<128x128xf32, #tpu.memory_space<vmem>>, %arg22: memref<1x128xf32, #tpu.memory_space<vmem>>, %arg23: memref<128x4xf32, #tpu.memory_space<vmem>>, %arg24: memref<1x4xf32, #tpu.memory_space<vmem>>, %arg25: memref<1x2x4xf32, #tpu.memory_space<vmem>>, %arg26: memref<16x128xf32, #tpu.memory_space<vmem>>) attributes {dimension_semantics = [#tpu.dimension_semantics<parallel>, #tpu.dimension_semantics<arbitrary>], iteration_bounds = array<i64: 2, 2>, scalar_prefetch = 0 : i64, scratch_operands = 1 : i64, tpu.core_type = #tpu.core_type<tc>, window_params = [{transform_indices = @transform_0, window_bounds = array<i64: 2, 8, 8>}, {transform_indices = @transform_1, window_bounds = array<i64: 2, 32, 8>}, {pipeline_mode = #tpu.pipeline_mode<synchronous>, transform_indices = @transform_2, window_bounds = array<i64: 8, 128>}, {pipeline_mode = #tpu.pipeline_mode<synchronous>, transform_indices = @transform_3, window_bounds = array<i64: 1, 128>}, {pipeline_mode = #tpu.pipeline_mode<synchronous>, transform_indices = @transform_4, window_bounds = array<i64: 128, 128>}, {pipeline_mode = #tpu.pipeline_mode<synchronous>, transform_indices = @transform_5, window_bounds = array<i64: 1, 128>}, {transform_indices = @transform_6, window_bounds = array<i64: 1, 1, 128>}, {transform_indices = @transform_7, window_bounds = array<i64: 1, 1, 128>}, {transform_indices = @transform_8, window_bounds = array<i64: 1, 128, 128>}, {transform_indices = @transform_9, window_bounds = array<i64: 1, 1, 128>}, {transform_indices = @transform_10, window_bounds = array<i64: 1, 128, 128>}, {transform_indices = @transform_11, window_bounds = array<i64: 1, 1, 128>}, {transform_indices = @transform_12, window_bounds = array<i64: 1, 1, 128>}, {transform_indices = @transform_13, window_bounds = array<i64: 1, 1, 128>}, {transform_indices = @transform_14, window_bounds = array<i64: 1, 128, 128>}, {transform_indices = @transform_15, window_bounds = array<i64: 1, 32, 128>}, {transform_indices = @transform_16, window_bounds = array<i64: 1, 1, 128>}, {transform_indices = @transform_17, window_bounds = array<i64: 1, 32, 256>}, {transform_indices = @transform_18, window_bounds = array<i64: 1, 1, 256>}, {pipeline_mode = #tpu.pipeline_mode<synchronous>, transform_indices = @transform_19, window_bounds = array<i64: 128, 128>}, {pipeline_mode = #tpu.pipeline_mode<synchronous>, transform_indices = @transform_20, window_bounds = array<i64: 1, 128>}, {pipeline_mode = #tpu.pipeline_mode<synchronous>, transform_indices = @transform_21, window_bounds = array<i64: 128, 4>}, {pipeline_mode = #tpu.pipeline_mode<synchronous>, transform_indices = @transform_22, window_bounds = array<i64: 1, 4>}, {transform_indices = @transform_23, window_bounds = array<i64: 1, 2, 4>}]} {
    %c0_i32 = arith.constant 0 : i32
    %0 = arith.cmpi eq, %arg1, %c0_i32 : i32
    %1 = arith.extui %0 : i1 to i32
    %c0_i32_0 = arith.constant 0 : i32
    %2 = arith.cmpi ne, %1, %c0_i32_0 : i32
    scf.if %2 {
      %c0_120 = arith.constant 0 : index
      %c0_121 = arith.constant 0 : index
      %c0_122 = arith.constant 0 : index
      %287 = vector.load %arg2[%c0_120, %c0_121, %c0_122] : memref<2x8x8xf32, #tpu.memory_space<vmem>>, vector<2x8x8xf32>
      %288 = vector.shape_cast %287 : vector<2x8x8xf32> to vector<16x8xf32>
      %c0_123 = arith.constant 0 : index
      %c0_124 = arith.constant 0 : index
      %289 = vector.load %arg4[%c0_123, %c0_124] : memref<8x128xf32, #tpu.memory_space<vmem>>, vector<8x128xf32>
      %cst_125 = arith.constant dense<0.000000e+00> : vector<16x128xf32>
      %290 = tpu.matmul %288, %289, %cst_125 {dimension_numbers = #tpu.dot_dimension_numbers<[1], [0], [0], [1], [0, 0, 1, 1], [], []>} : vector<16x8xf32>, vector<8x128xf32>, vector<16x128xf32> -> vector<16x128xf32>
      %c0_126 = arith.constant 0 : index
      %c0_127 = arith.constant 0 : index
      %291 = vector.load %arg5[%c0_126, %c0_127] : memref<1x128xf32, #tpu.memory_space<vmem>>, vector<1x128xf32>
      %292 = vector.broadcast %291 : vector<1x128xf32> to vector<16x128xf32>
      %293 = arith.addf %290, %292 : vector<16x128xf32>
      %cst_128 = arith.constant 5.000000e-01 : f32
      %294 = vector.broadcast %cst_128 : f32 to vector<16x128xf32>
      %295 = arith.mulf %294, %293 : vector<16x128xf32>
      %cst_129 = arith.constant 0.707106769 : f32
      %296 = vector.broadcast %cst_129 : f32 to vector<16x128xf32>
      %297 = arith.mulf %293, %296 : vector<16x128xf32>
      %cst_130 = arith.constant 0.000000e+00 : f32
      %298 = vector.broadcast %cst_130 : f32 to vector<16x128xf32>
      %299 = arith.cmpf olt, %297, %298 : vector<16x128xf32>
      %cst_131 = arith.constant -1.000000e+00 : f32
      %cst_132 = arith.constant 1.000000e+00 : f32
      %300 = vector.broadcast %cst_131 : f32 to vector<16x128xf32>
      %301 = vector.broadcast %cst_132 : f32 to vector<16x128xf32>
      %302 = arith.select %299, %300, %301 : vector<16x128xi1>, vector<16x128xf32>
      %303 = math.absf %297 : vector<16x128xf32>
      %cst_133 = arith.constant 0.327591091 : f32
      %304 = vector.broadcast %cst_133 : f32 to vector<16x128xf32>
      %305 = arith.mulf %304, %303 : vector<16x128xf32>
      %cst_134 = arith.constant 1.000000e+00 : f32
      %306 = vector.broadcast %cst_134 : f32 to vector<16x128xf32>
      %307 = arith.addf %306, %305 : vector<16x128xf32>
      %cst_135 = arith.constant 1.000000e+00 : f32
      %308 = vector.broadcast %cst_135 : f32 to vector<16x128xf32>
      %309 = arith.divf %308, %307 : vector<16x128xf32>
      %cst_136 = arith.constant 1.06140542 : f32
      %310 = vector.broadcast %cst_136 : f32 to vector<16x128xf32>
      %311 = arith.mulf %310, %309 : vector<16x128xf32>
      %cst_137 = arith.constant -1.45315206 : f32
      %312 = vector.broadcast %cst_137 : f32 to vector<16x128xf32>
      %313 = arith.addf %311, %312 : vector<16x128xf32>
      %314 = arith.mulf %313, %309 : vector<16x128xf32>
      %cst_138 = arith.constant 1.42141378 : f32
      %315 = vector.broadcast %cst_138 : f32 to vector<16x128xf32>
      %316 = arith.addf %314, %315 : vector<16x128xf32>
      %317 = arith.mulf %316, %309 : vector<16x128xf32>
      %cst_139 = arith.constant -0.284496725 : f32
      %318 = vector.broadcast %cst_139 : f32 to vector<16x128xf32>
      %319 = arith.addf %317, %318 : vector<16x128xf32>
      %320 = arith.mulf %319, %309 : vector<16x128xf32>
      %cst_140 = arith.constant 0.254829586 : f32
      %321 = vector.broadcast %cst_140 : f32 to vector<16x128xf32>
      %322 = arith.addf %320, %321 : vector<16x128xf32>
      %323 = arith.mulf %322, %309 : vector<16x128xf32>
      %cst_141 = arith.constant 0.000000e+00 : f32
      %324 = vector.broadcast %cst_141 : f32 to vector<16x128xf32>
      %325 = arith.subf %324, %303 : vector<16x128xf32>
      %326 = arith.mulf %325, %303 : vector<16x128xf32>
      %327 = math.exp %326 : vector<16x128xf32>
      %328 = arith.mulf %323, %327 : vector<16x128xf32>
      %cst_142 = arith.constant 1.000000e+00 : f32
      %329 = vector.broadcast %cst_142 : f32 to vector<16x128xf32>
      %330 = arith.subf %329, %328 : vector<16x128xf32>
      %331 = arith.mulf %302, %330 : vector<16x128xf32>
      %cst_143 = arith.constant 1.000000e+00 : f32
      %332 = vector.broadcast %cst_143 : f32 to vector<16x128xf32>
      %333 = arith.addf %332, %331 : vector<16x128xf32>
      %334 = arith.mulf %295, %333 : vector<16x128xf32>
      %c0_144 = arith.constant 0 : index
      %c0_145 = arith.constant 0 : index
      %335 = vector.load %arg6[%c0_144, %c0_145] : memref<128x128xf32, #tpu.memory_space<vmem>>, vector<128x128xf32>
      %cst_146 = arith.constant dense<0.000000e+00> : vector<16x128xf32>
      %336 = tpu.matmul %334, %335, %cst_146 {dimension_numbers = #tpu.dot_dimension_numbers<[1], [0], [0], [1], [0, 0, 1, 1], [], []>} : vector<16x128xf32>, vector<128x128xf32>, vector<16x128xf32> -> vector<16x128xf32>
      %c0_147 = arith.constant 0 : index
      %c0_148 = arith.constant 0 : index
      %337 = vector.load %arg7[%c0_147, %c0_148] : memref<1x128xf32, #tpu.memory_space<vmem>>, vector<1x128xf32>
      %338 = vector.broadcast %337 : vector<1x128xf32> to vector<16x128xf32>
      %339 = arith.addf %336, %338 : vector<16x128xf32>
      %c0_149 = arith.constant 0 : index
      %c0_150 = arith.constant 0 : index
      %340 = vector.load %arg26[%c0_149, %c0_150] : memref<16x128xf32, #tpu.memory_space<vmem>>, vector<16x128xf32>
      tpu.vector_store %arg26[%c0_149, %c0_150], %339 {strides = array<i32>} : memref<16x128xf32, #tpu.memory_space<vmem>>, vector<16x128xf32>,
    } else {
    }
    %c0 = arith.constant 0 : index
    %c0_1 = arith.constant 0 : index
    %3 = vector.load %arg26[%c0, %c0_1] : memref<16x128xf32, #tpu.memory_space<vmem>>, vector<16x128xf32>
    %4 = arith.truncf %3 : vector<16x128xf32> to vector<16x128xbf16>
    %c0_2 = arith.constant 0 : index
    %c0_3 = arith.constant 0 : index
    %c0_4 = arith.constant 0 : index
    %5 = vector.load %arg3[%c0_2, %c0_3, %c0_4] : memref<2x32x8xbf16, #tpu.memory_space<vmem>>, vector<1x32x8xbf16>
    %6 = vector.shape_cast %5 : vector<1x32x8xbf16> to vector<32x8xbf16>
    %7 = vector.extract_strided_slice %4 {offsets = [0, 0], sizes = [8, 128], strides = [1, 1]} : vector<16x128xbf16> to vector<8x128xbf16>
    %cst = arith.constant dense<0.000000e+00> : vector<32x128xf32>
    %8 = tpu.matmul %6, %7, %cst {dimension_numbers = #tpu.dot_dimension_numbers<[1], [0], [0], [1], [0, 0, 1, 1], [], []>} : vector<32x8xbf16>, vector<8x128xbf16>, vector<32x128xf32> -> vector<32x128xf32>
    %9 = vector.shape_cast %8 : vector<32x128xf32> to vector<4x8x128xf32>
    %c1 = arith.constant 1 : index
    %c0_5 = arith.constant 0 : index
    %c0_6 = arith.constant 0 : index
    %10 = vector.load %arg3[%c1, %c0_5, %c0_6] : memref<2x32x8xbf16, #tpu.memory_space<vmem>>, vector<1x32x8xbf16>
    %11 = vector.shape_cast %10 : vector<1x32x8xbf16> to vector<32x8xbf16>
    %12 = vector.extract_strided_slice %4 {offsets = [8, 0], sizes = [8, 128], strides = [1, 1]} : vector<16x128xbf16> to vector<8x128xbf16>
    %cst_7 = arith.constant dense<0.000000e+00> : vector<32x128xf32>
    %13 = tpu.matmul %11, %12, %cst_7 {dimension_numbers = #tpu.dot_dimension_numbers<[1], [0], [0], [1], [0, 0, 1, 1], [], []>} : vector<32x8xbf16>, vector<8x128xbf16>, vector<32x128xf32> -> vector<32x128xf32>
    %14 = vector.shape_cast %13 : vector<32x128xf32> to vector<4x8x128xf32>
    %15 = tpu.concatenate %9, %14 in 1 : vector<4x8x128xf32>, vector<4x8x128xf32> -> vector<4x16x128xf32>
    %16 = vector.extract_strided_slice %15 {offsets = [0, 0, 0], sizes = [1, 16, 128], strides = [1, 1, 1]} : vector<4x16x128xf32> to vector<1x16x128xf32>
    %17 = vector.shape_cast %16 : vector<1x16x128xf32> to vector<16x128xf32>
    %c0_8 = arith.constant 0 : index
    %c0_9 = arith.constant 0 : index
    %c0_10 = arith.constant 0 : index
    %18 = vector.load %arg8[%c0_8, %c0_9, %c0_10] : memref<1x1x128xf32, #tpu.memory_space<vmem>>, vector<1x1x128xf32>
    %19 = vector.shape_cast %18 : vector<1x1x128xf32> to vector<1x128xf32>
    %c0_11 = arith.constant 0 : index
    %c0_12 = arith.constant 0 : index
    %c0_13 = arith.constant 0 : index
    %20 = vector.load %arg9[%c0_11, %c0_12, %c0_13] : memref<1x1x128xf32, #tpu.memory_space<vmem>>, vector<1x1x128xf32>
    %21 = vector.shape_cast %20 : vector<1x1x128xf32> to vector<1x128xf32>
    %cst_14 = arith.constant dense<0.000000e+00> : vector<16xf32>
    %22 = vector.multi_reduction <add>, %17, %cst_14 [1] : vector<16x128xf32> to vector<16xf32>
    %23 = vector.shape_cast %22 : vector<16xf32> to vector<16x1xf32>
    %cst_15 = arith.constant 3.125000e-02 : f32
    %24 = vector.broadcast %cst_15 : f32 to vector<16x1xf32>
    %25 = arith.mulf %23, %24 : vector<16x1xf32>
    %26 = vector.broadcast %25 : vector<16x1xf32> to vector<16x128xf32>
    %27 = arith.subf %17, %26 : vector<16x128xf32>
    %28 = tpu.iota {dimensions = array<i32: 1>} : vector<16x128xi32>
    %c32_i32 = arith.constant 32 : i32
    %29 = vector.broadcast %c32_i32 : i32 to vector<16x128xi32>
    %30 = arith.cmpi slt, %28, %29 : vector<16x128xi32>
    %cst_16 = arith.constant 0.000000e+00 : f32
    %31 = vector.broadcast %cst_16 : f32 to vector<16x128xf32>
    %32 = arith.select %30, %27, %31 : vector<16x128xi1>, vector<16x128xf32>
    %33 = arith.mulf %32, %32 : vector<16x128xf32>
    %cst_17 = arith.constant dense<0.000000e+00> : vector<16xf32>
    %34 = vector.multi_reduction <add>, %33, %cst_17 [1] : vector<16x128xf32> to vector<16xf32>
    %35 = vector.shape_cast %34 : vector<16xf32> to vector<16x1xf32>
    %cst_18 = arith.constant 3.125000e-02 : f32
    %36 = vector.broadcast %cst_18 : f32 to vector<16x1xf32>
    %37 = arith.mulf %35, %36 : vector<16x1xf32>
    %cst_19 = arith.constant 9.99999974E-6 : f32
    %38 = vector.broadcast %cst_19 : f32 to vector<16x1xf32>
    %39 = arith.addf %37, %38 : vector<16x1xf32>
    %40 = math.rsqrt %39 : vector<16x1xf32>
    %41 = vector.broadcast %40 : vector<16x1xf32> to vector<16x128xf32>
    %42 = arith.mulf %32, %41 : vector<16x128xf32>
    %43 = vector.broadcast %19 : vector<1x128xf32> to vector<16x128xf32>
    %44 = arith.mulf %42, %43 : vector<16x128xf32>
    %45 = vector.broadcast %21 : vector<1x128xf32> to vector<16x128xf32>
    %46 = arith.addf %44, %45 : vector<16x128xf32>
    %c0_20 = arith.constant 0 : index
    %c0_21 = arith.constant 0 : index
    %c0_22 = arith.constant 0 : index
    %47 = vector.load %arg10[%c0_20, %c0_21, %c0_22] : memref<1x128x128xf32, #tpu.memory_space<vmem>>, vector<1x128x128xf32>
    %48 = vector.shape_cast %47 : vector<1x128x128xf32> to vector<128x128xf32>
    %cst_23 = arith.constant dense<0.000000e+00> : vector<16x128xf32>
    %49 = tpu.matmul %46, %48, %cst_23 {dimension_numbers = #tpu.dot_dimension_numbers<[1], [0], [0], [1], [0, 0, 1, 1], [], []>} : vector<16x128xf32>, vector<128x128xf32>, vector<16x128xf32> -> vector<16x128xf32>
    %c0_24 = arith.constant 0 : index
    %c0_25 = arith.constant 0 : index
    %c0_26 = arith.constant 0 : index
    %50 = vector.load %arg11[%c0_24, %c0_25, %c0_26] : memref<1x1x128xf32, #tpu.memory_space<vmem>>, vector<1x1x128xf32>
    %51 = vector.shape_cast %50 : vector<1x1x128xf32> to vector<1x128xf32>
    %52 = vector.broadcast %51 : vector<1x128xf32> to vector<16x128xf32>
    %53 = arith.addf %49, %52 : vector<16x128xf32>
    %cst_27 = arith.constant 5.000000e-01 : f32
    %54 = vector.broadcast %cst_27 : f32 to vector<16x128xf32>
    %55 = arith.mulf %54, %53 : vector<16x128xf32>
    %cst_28 = arith.constant 0.707106769 : f32
    %56 = vector.broadcast %cst_28 : f32 to vector<16x128xf32>
    %57 = arith.mulf %53, %56 : vector<16x128xf32>
    %cst_29 = arith.constant 0.000000e+00 : f32
    %58 = vector.broadcast %cst_29 : f32 to vector<16x128xf32>
    %59 = arith.cmpf olt, %57, %58 : vector<16x128xf32>
    %cst_30 = arith.constant -1.000000e+00 : f32
    %cst_31 = arith.constant 1.000000e+00 : f32
    %60 = vector.broadcast %cst_30 : f32 to vector<16x128xf32>
    %61 = vector.broadcast %cst_31 : f32 to vector<16x128xf32>
    %62 = arith.select %59, %60, %61 : vector<16x128xi1>, vector<16x128xf32>
    %63 = math.absf %57 : vector<16x128xf32>
    %cst_32 = arith.constant 0.327591091 : f32
    %64 = vector.broadcast %cst_32 : f32 to vector<16x128xf32>
    %65 = arith.mulf %64, %63 : vector<16x128xf32>
    %cst_33 = arith.constant 1.000000e+00 : f32
    %66 = vector.broadcast %cst_33 : f32 to vector<16x128xf32>
    %67 = arith.addf %66, %65 : vector<16x128xf32>
    %cst_34 = arith.constant 1.000000e+00 : f32
    %68 = vector.broadcast %cst_34 : f32 to vector<16x128xf32>
    %69 = arith.divf %68, %67 : vector<16x128xf32>
    %cst_35 = arith.constant 1.06140542 : f32
    %70 = vector.broadcast %cst_35 : f32 to vector<16x128xf32>
    %71 = arith.mulf %70, %69 : vector<16x128xf32>
    %cst_36 = arith.constant -1.45315206 : f32
    %72 = vector.broadcast %cst_36 : f32 to vector<16x128xf32>
    %73 = arith.addf %71, %72 : vector<16x128xf32>
    %74 = arith.mulf %73, %69 : vector<16x128xf32>
    %cst_37 = arith.constant 1.42141378 : f32
    %75 = vector.broadcast %cst_37 : f32 to vector<16x128xf32>
    %76 = arith.addf %74, %75 : vector<16x128xf32>
    %77 = arith.mulf %76, %69 : vector<16x128xf32>
    %cst_38 = arith.constant -0.284496725 : f32
    %78 = vector.broadcast %cst_38 : f32 to vector<16x128xf32>
    %79 = arith.addf %77, %78 : vector<16x128xf32>
    %80 = arith.mulf %79, %69 : vector<16x128xf32>
    %cst_39 = arith.constant 0.254829586 : f32
    %81 = vector.broadcast %cst_39 : f32 to vector<16x128xf32>
    %82 = arith.addf %80, %81 : vector<16x128xf32>
    %83 = arith.mulf %82, %69 : vector<16x128xf32>
    %cst_40 = arith.constant 0.000000e+00 : f32
    %84 = vector.broadcast %cst_40 : f32 to vector<16x128xf32>
    %85 = arith.subf %84, %63 : vector<16x128xf32>
    %86 = arith.mulf %85, %63 : vector<16x128xf32>
    %87 = math.exp %86 : vector<16x128xf32>
    %88 = arith.mulf %83, %87 : vector<16x128xf32>
    %cst_41 = arith.constant 1.000000e+00 : f32
    %89 = vector.broadcast %cst_41 : f32 to vector<16x128xf32>
    %90 = arith.subf %89, %88 : vector<16x128xf32>
    %91 = arith.mulf %62, %90 : vector<16x128xf32>
    %cst_42 = arith.constant 1.000000e+00 : f32
    %92 = vector.broadcast %cst_42 : f32 to vector<16x128xf32>
    %93 = arith.addf %92, %91 : vector<16x128xf32>
    %94 = arith.mulf %55, %93 : vector<16x128xf32>
    %c0_43 = arith.constant 0 : index
    %c0_44 = arith.constant 0 : index
    %c0_45 = arith.constant 0 : index
    %95 = vector.load %arg12[%c0_43, %c0_44, %c0_45] : memref<1x128x128xf32, #tpu.memory_space<vmem>>, vector<1x128x128xf32>
    %96 = vector.shape_cast %95 : vector<1x128x128xf32> to vector<128x128xf32>
    %cst_46 = arith.constant dense<0.000000e+00> : vector<16x128xf32>
    %97 = tpu.matmul %94, %96, %cst_46 {dimension_numbers = #tpu.dot_dimension_numbers<[1], [0], [0], [1], [0, 0, 1, 1], [], []>} : vector<16x128xf32>, vector<128x128xf32>, vector<16x128xf32> -> vector<16x128xf32>
    %c0_47 = arith.constant 0 : index
    %c0_48 = arith.constant 0 : index
    %c0_49 = arith.constant 0 : index
    %98 = vector.load %arg13[%c0_47, %c0_48, %c0_49] : memref<1x1x128xf32, #tpu.memory_space<vmem>>, vector<1x1x128xf32>
    %99 = vector.shape_cast %98 : vector<1x1x128xf32> to vector<1x128xf32>
    %100 = vector.broadcast %99 : vector<1x128xf32> to vector<16x128xf32>
    %101 = arith.addf %97, %100 : vector<16x128xf32>
    %102 = arith.addf %101, %17 : vector<16x128xf32>
    %103 = vector.shape_cast %15 : vector<4x16x128xf32> to vector<64x128xf32>
    %c0_50 = arith.constant 0 : index
    %c0_51 = arith.constant 0 : index
    %c0_52 = arith.constant 0 : index
    %104 = vector.load %arg14[%c0_50, %c0_51, %c0_52] : memref<1x1x128xf32, #tpu.memory_space<vmem>>, vector<1x1x128xf32>
    %105 = vector.shape_cast %104 : vector<1x1x128xf32> to vector<1x128xf32>
    %c0_53 = arith.constant 0 : index
    %c0_54 = arith.constant 0 : index
    %c0_55 = arith.constant 0 : index
    %106 = vector.load %arg15[%c0_53, %c0_54, %c0_55] : memref<1x1x128xf32, #tpu.memory_space<vmem>>, vector<1x1x128xf32>
    %107 = vector.shape_cast %106 : vector<1x1x128xf32> to vector<1x128xf32>
    %cst_56 = arith.constant dense<0.000000e+00> : vector<64xf32>
    %108 = vector.multi_reduction <add>, %103, %cst_56 [1] : vector<64x128xf32> to vector<64xf32>
    %109 = vector.shape_cast %108 : vector<64xf32> to vector<64x1xf32>
    %cst_57 = arith.constant 3.125000e-02 : f32
    %110 = vector.broadcast %cst_57 : f32 to vector<64x1xf32>
    %111 = arith.mulf %109, %110 : vector<64x1xf32>
    %112 = vector.broadcast %111 : vector<64x1xf32> to vector<64x128xf32>
    %113 = arith.subf %103, %112 : vector<64x128xf32>
    %114 = tpu.iota {dimensions = array<i32: 1>} : vector<64x128xi32>
    %c32_i32_58 = arith.constant 32 : i32
    %115 = vector.broadcast %c32_i32_58 : i32 to vector<64x128xi32>
    %116 = arith.cmpi slt, %114, %115 : vector<64x128xi32>
    %cst_59 = arith.constant 0.000000e+00 : f32
    %117 = vector.broadcast %cst_59 : f32 to vector<64x128xf32>
    %118 = arith.select %116, %113, %117 : vector<64x128xi1>, vector<64x128xf32>
    %119 = arith.mulf %118, %118 : vector<64x128xf32>
    %cst_60 = arith.constant dense<0.000000e+00> : vector<64xf32>
    %120 = vector.multi_reduction <add>, %119, %cst_60 [1] : vector<64x128xf32> to vector<64xf32>
    %121 = vector.shape_cast %120 : vector<64xf32> to vector<64x1xf32>
    %cst_61 = arith.constant 3.125000e-02 : f32
    %122 = vector.broadcast %cst_61 : f32 to vector<64x1xf32>
    %123 = arith.mulf %121, %122 : vector<64x1xf32>
    %cst_62 = arith.constant 9.99999974E-6 : f32
    %124 = vector.broadcast %cst_62 : f32 to vector<64x1xf32>
    %125 = arith.addf %123, %124 : vector<64x1xf32>
    %126 = math.rsqrt %125 : vector<64x1xf32>
    %127 = vector.broadcast %126 : vector<64x1xf32> to vector<64x128xf32>
    %128 = arith.mulf %118, %127 : vector<64x128xf32>
    %129 = vector.broadcast %105 : vector<1x128xf32> to vector<64x128xf32>
    %130 = arith.mulf %128, %129 : vector<64x128xf32>
    %131 = vector.broadcast %107 : vector<1x128xf32> to vector<64x128xf32>
    %132 = arith.addf %130, %131 : vector<64x128xf32>
    %c0_63 = arith.constant 0 : index
    %c0_64 = arith.constant 0 : index
    %c0_65 = arith.constant 0 : index
    %133 = vector.load %arg16[%c0_63, %c0_64, %c0_65] : memref<1x128x128xf32, #tpu.memory_space<vmem>>, vector<1x128x128xf32>
    %134 = vector.shape_cast %133 : vector<1x128x128xf32> to vector<128x128xf32>
    %cst_66 = arith.constant dense<0.000000e+00> : vector<64x128xf32>
    %135 = tpu.matmul %132, %134, %cst_66 {dimension_numbers = #tpu.dot_dimension_numbers<[1], [0], [0], [1], [0, 0, 1, 1], [], []>} : vector<64x128xf32>, vector<128x128xf32>, vector<64x128xf32> -> vector<64x128xf32>
    %c0_67 = arith.constant 0 : index
    %c0_68 = arith.constant 0 : index
    %c0_69 = arith.constant 0 : index
    %136 = vector.load %arg18[%c0_67, %c0_68, %c0_69] : memref<1x1x128xf32, #tpu.memory_space<vmem>>, vector<1x1x128xf32>
    %137 = vector.shape_cast %136 : vector<1x1x128xf32> to vector<1x128xf32>
    %138 = vector.broadcast %137 : vector<1x128xf32> to vector<64x128xf32>
    %139 = arith.addf %135, %138 : vector<64x128xf32>
    %c0_70 = arith.constant 0 : index
    %c0_71 = arith.constant 0 : index
    %c0_72 = arith.constant 0 : index
    %140 = vector.load %arg17[%c0_70, %c0_71, %c0_72] : memref<1x32x128xf32, #tpu.memory_space<vmem>>, vector<1x32x128xf32>
    %141 = vector.shape_cast %140 : vector<1x32x128xf32> to vector<32x128xf32>
    %cst_73 = arith.constant 0.000000e+00 : f32
    %142 = vector.broadcast %cst_73 : f32 to vector<16x32xf32>
    %cst_74 = arith.constant 0.000000e+00 : f32
    %143 = vector.broadcast %cst_74 : f32 to vector<16x32xf32>
    %144 = vector.extract_strided_slice %139 {offsets = [48, 0], sizes = [16, 128], strides = [1, 1]} : vector<64x128xf32> to vector<16x128xf32>
    %cst_75 = arith.constant dense<0.000000e+00> : vector<16x128xf32>
    %145 = tpu.matmul %142, %141, %cst_75 {dimension_numbers = #tpu.dot_dimension_numbers<[1], [0], [0], [1], [0, 0, 1, 1], [], []>} : vector<16x32xf32>, vector<32x128xf32>, vector<16x128xf32> -> vector<16x128xf32>
    %146 = arith.addf %144, %145 : vector<16x128xf32>
    %cst_76 = arith.constant 0.000000e+00 : f32
    %147 = vector.broadcast %cst_76 : f32 to vector<16x128xf32>
    %148 = arith.subf %147, %146 : vector<16x128xf32>
    %149 = math.exp %148 : vector<16x128xf32>
    %cst_77 = arith.constant 1.000000e+00 : f32
    %150 = vector.broadcast %cst_77 : f32 to vector<16x128xf32>
    %151 = arith.addf %150, %149 : vector<16x128xf32>
    %cst_78 = arith.constant 1.000000e+00 : f32
    %152 = vector.broadcast %cst_78 : f32 to vector<16x128xf32>
    %153 = arith.divf %152, %151 : vector<16x128xf32>
    %154 = math.tanh %146 : vector<16x128xf32>
    %155 = vector.extract_strided_slice %153 {offsets = [0, 0], sizes = [16, 32], strides = [1, 1]} : vector<16x128xf32> to vector<16x32xf32>
    %156 = vector.extract_strided_slice %153 {offsets = [0, 32], sizes = [16, 32], strides = [1, 1]} : vector<16x128xf32> to vector<16x32xf32>
    %157 = vector.extract_strided_slice %154 {offsets = [0, 64], sizes = [16, 32], strides = [1, 1]} : vector<16x128xf32> to vector<16x32xf32>
    %158 = vector.extract_strided_slice %153 {offsets = [0, 96], sizes = [16, 32], strides = [1, 1]} : vector<16x128xf32> to vector<16x32xf32>
    %159 = arith.mulf %156, %143 : vector<16x32xf32>
    %160 = arith.mulf %155, %157 : vector<16x32xf32>
    %161 = arith.addf %159, %160 : vector<16x32xf32>
    %162 = math.tanh %161 : vector<16x32xf32>
    %163 = arith.mulf %158, %162 : vector<16x32xf32>
    %164 = vector.extract_strided_slice %139 {offsets = [32, 0], sizes = [16, 128], strides = [1, 1]} : vector<64x128xf32> to vector<16x128xf32>
    %cst_79 = arith.constant dense<0.000000e+00> : vector<16x128xf32>
    %165 = tpu.matmul %163, %141, %cst_79 {dimension_numbers = #tpu.dot_dimension_numbers<[1], [0], [0], [1], [0, 0, 1, 1], [], []>} : vector<16x32xf32>, vector<32x128xf32>, vector<16x128xf32> -> vector<16x128xf32>
    %166 = arith.addf %164, %165 : vector<16x128xf32>
    %cst_80 = arith.constant 0.000000e+00 : f32
    %167 = vector.broadcast %cst_80 : f32 to vector<16x128xf32>
    %168 = arith.subf %167, %166 : vector<16x128xf32>
    %169 = math.exp %168 : vector<16x128xf32>
    %cst_81 = arith.constant 1.000000e+00 : f32
    %170 = vector.broadcast %cst_81 : f32 to vector<16x128xf32>
    %171 = arith.addf %170, %169 : vector<16x128xf32>
    %cst_82 = arith.constant 1.000000e+00 : f32
    %172 = vector.broadcast %cst_82 : f32 to vector<16x128xf32>
    %173 = arith.divf %172, %171 : vector<16x128xf32>
    %174 = math.tanh %166 : vector<16x128xf32>
    %175 = vector.extract_strided_slice %173 {offsets = [0, 0], sizes = [16, 32], strides = [1, 1]} : vector<16x128xf32> to vector<16x32xf32>
    %176 = vector.extract_strided_slice %173 {offsets = [0, 32], sizes = [16, 32], strides = [1, 1]} : vector<16x128xf32> to vector<16x32xf32>
    %177 = vector.extract_strided_slice %174 {offsets = [0, 64], sizes = [16, 32], strides = [1, 1]} : vector<16x128xf32> to vector<16x32xf32>
    %178 = vector.extract_strided_slice %173 {offsets = [0, 96], sizes = [16, 32], strides = [1, 1]} : vector<16x128xf32> to vector<16x32xf32>
    %179 = arith.mulf %176, %161 : vector<16x32xf32>
    %180 = arith.mulf %175, %177 : vector<16x32xf32>
    %181 = arith.addf %179, %180 : vector<16x32xf32>
    %182 = math.tanh %181 : vector<16x32xf32>
    %183 = arith.mulf %178, %182 : vector<16x32xf32>
    %184 = vector.extract_strided_slice %139 {offsets = [16, 0], sizes = [16, 128], strides = [1, 1]} : vector<64x128xf32> to vector<16x128xf32>
    %cst_83 = arith.constant dense<0.000000e+00> : vector<16x128xf32>
    %185 = tpu.matmul %183, %141, %cst_83 {dimension_numbers = #tpu.dot_dimension_numbers<[1], [0], [0], [1], [0, 0, 1, 1], [], []>} : vector<16x32xf32>, vector<32x128xf32>, vector<16x128xf32> -> vector<16x128xf32>
    %186 = arith.addf %184, %185 : vector<16x128xf32>
    %cst_84 = arith.constant 0.000000e+00 : f32
    %187 = vector.broadcast %cst_84 : f32 to vector<16x128xf32>
    %188 = arith.subf %187, %186 : vector<16x128xf32>
    %189 = math.exp %188 : vector<16x128xf32>
    %cst_85 = arith.constant 1.000000e+00 : f32
    %190 = vector.broadcast %cst_85 : f32 to vector<16x128xf32>
    %191 = arith.addf %190, %189 : vector<16x128xf32>
    %cst_86 = arith.constant 1.000000e+00 : f32
    %192 = vector.broadcast %cst_86 : f32 to vector<16x128xf32>
    %193 = arith.divf %192, %191 : vector<16x128xf32>
    %194 = math.tanh %186 : vector<16x128xf32>
    %195 = vector.extract_strided_slice %193 {offsets = [0, 0], sizes = [16, 32], strides = [1, 1]} : vector<16x128xf32> to vector<16x32xf32>
    %196 = vector.extract_strided_slice %193 {offsets = [0, 32], sizes = [16, 32], strides = [1, 1]} : vector<16x128xf32> to vector<16x32xf32>
    %197 = vector.extract_strided_slice %194 {offsets = [0, 64], sizes = [16, 32], strides = [1, 1]} : vector<16x128xf32> to vector<16x32xf32>
    %198 = vector.extract_strided_slice %193 {offsets = [0, 96], sizes = [16, 32], strides = [1, 1]} : vector<16x128xf32> to vector<16x32xf32>
    %199 = arith.mulf %196, %181 : vector<16x32xf32>
    %200 = arith.mulf %195, %197 : vector<16x32xf32>
    %201 = arith.addf %199, %200 : vector<16x32xf32>
    %202 = math.tanh %201 : vector<16x32xf32>
    %203 = arith.mulf %198, %202 : vector<16x32xf32>
    %204 = vector.extract_strided_slice %139 {offsets = [0, 0], sizes = [16, 128], strides = [1, 1]} : vector<64x128xf32> to vector<16x128xf32>
    %cst_87 = arith.constant dense<0.000000e+00> : vector<16x128xf32>
    %205 = tpu.matmul %203, %141, %cst_87 {dimension_numbers = #tpu.dot_dimension_numbers<[1], [0], [0], [1], [0, 0, 1, 1], [], []>} : vector<16x32xf32>, vector<32x128xf32>, vector<16x128xf32> -> vector<16x128xf32>
    %206 = arith.addf %204, %205 : vector<16x128xf32>
    %cst_88 = arith.constant 0.000000e+00 : f32
    %207 = vector.broadcast %cst_88 : f32 to vector<16x128xf32>
    %208 = arith.subf %207, %206 : vector<16x128xf32>
    %209 = math.exp %208 : vector<16x128xf32>
    %cst_89 = arith.constant 1.000000e+00 : f32
    %210 = vector.broadcast %cst_89 : f32 to vector<16x128xf32>
    %211 = arith.addf %210, %209 : vector<16x128xf32>
    %cst_90 = arith.constant 1.000000e+00 : f32
    %212 = vector.broadcast %cst_90 : f32 to vector<16x128xf32>
    %213 = arith.divf %212, %211 : vector<16x128xf32>
    %214 = math.tanh %206 : vector<16x128xf32>
    %215 = vector.extract_strided_slice %213 {offsets = [0, 0], sizes = [16, 32], strides = [1, 1]} : vector<16x128xf32> to vector<16x32xf32>
    %216 = vector.extract_strided_slice %213 {offsets = [0, 32], sizes = [16, 32], strides = [1, 1]} : vector<16x128xf32> to vector<16x32xf32>
    %217 = vector.extract_strided_slice %214 {offsets = [0, 64], sizes = [16, 32], strides = [1, 1]} : vector<16x128xf32> to vector<16x32xf32>
    %218 = vector.extract_strided_slice %213 {offsets = [0, 96], sizes = [16, 32], strides = [1, 1]} : vector<16x128xf32> to vector<16x32xf32>
    %219 = arith.mulf %216, %201 : vector<16x32xf32>
    %220 = arith.mulf %215, %217 : vector<16x32xf32>
    %221 = arith.addf %219, %220 : vector<16x32xf32>
    %222 = math.tanh %221 : vector<16x32xf32>
    %223 = arith.mulf %218, %222 : vector<16x32xf32>
    %cst_91 = arith.constant 5.000000e-01 : f32
    %224 = vector.broadcast %cst_91 : f32 to vector<16x32xf32>
    %225 = arith.mulf %224, %223 : vector<16x32xf32>
    %cst_92 = arith.constant 0.707106769 : f32
    %226 = vector.broadcast %cst_92 : f32 to vector<16x32xf32>
    %227 = arith.mulf %223, %226 : vector<16x32xf32>
    %cst_93 = arith.constant 0.000000e+00 : f32
    %228 = vector.broadcast %cst_93 : f32 to vector<16x32xf32>
    %229 = arith.cmpf olt, %227, %228 : vector<16x32xf32>
    %cst_94 = arith.constant -1.000000e+00 : f32
    %cst_95 = arith.constant 1.000000e+00 : f32
    %230 = vector.broadcast %cst_94 : f32 to vector<16x32xf32>
    %231 = vector.broadcast %cst_95 : f32 to vector<16x32xf32>
    %232 = arith.select %229, %230, %231 : vector<16x32xi1>, vector<16x32xf32>
    %233 = math.absf %227 : vector<16x32xf32>
    %cst_96 = arith.constant 0.327591091 : f32
    %234 = vector.broadcast %cst_96 : f32 to vector<16x32xf32>
    %235 = arith.mulf %234, %233 : vector<16x32xf32>
    %cst_97 = arith.constant 1.000000e+00 : f32
    %236 = vector.broadcast %cst_97 : f32 to vector<16x32xf32>
    %237 = arith.addf %236, %235 : vector<16x32xf32>
    %cst_98 = arith.constant 1.000000e+00 : f32
    %238 = vector.broadcast %cst_98 : f32 to vector<16x32xf32>
    %239 = arith.divf %238, %237 : vector<16x32xf32>
    %cst_99 = arith.constant 1.06140542 : f32
    %240 = vector.broadcast %cst_99 : f32 to vector<16x32xf32>
    %241 = arith.mulf %240, %239 : vector<16x32xf32>
    %cst_100 = arith.constant -1.45315206 : f32
    %242 = vector.broadcast %cst_100 : f32 to vector<16x32xf32>
    %243 = arith.addf %241, %242 : vector<16x32xf32>
    %244 = arith.mulf %243, %239 : vector<16x32xf32>
    %cst_101 = arith.constant 1.42141378 : f32
    %245 = vector.broadcast %cst_101 : f32 to vector<16x32xf32>
    %246 = arith.addf %244, %245 : vector<16x32xf32>
    %247 = arith.mulf %246, %239 : vector<16x32xf32>
    %cst_102 = arith.constant -0.284496725 : f32
    %248 = vector.broadcast %cst_102 : f32 to vector<16x32xf32>
    %249 = arith.addf %247, %248 : vector<16x32xf32>
    %250 = arith.mulf %249, %239 : vector<16x32xf32>
    %cst_103 = arith.constant 0.254829586 : f32
    %251 = vector.broadcast %cst_103 : f32 to vector<16x32xf32>
    %252 = arith.addf %250, %251 : vector<16x32xf32>
    %253 = arith.mulf %252, %239 : vector<16x32xf32>
    %cst_104 = arith.constant 0.000000e+00 : f32
    %254 = vector.broadcast %cst_104 : f32 to vector<16x32xf32>
    %255 = arith.subf %254, %233 : vector<16x32xf32>
    %256 = arith.mulf %255, %233 : vector<16x32xf32>
    %257 = math.exp %256 : vector<16x32xf32>
    %258 = arith.mulf %253, %257 : vector<16x32xf32>
    %cst_105 = arith.constant 1.000000e+00 : f32
    %259 = vector.broadcast %cst_105 : f32 to vector<16x32xf32>
    %260 = arith.subf %259, %258 : vector<16x32xf32>
    %261 = arith.mulf %232, %260 : vector<16x32xf32>
    %cst_106 = arith.constant 1.000000e+00 : f32
    %262 = vector.broadcast %cst_106 : f32 to vector<16x32xf32>
    %263 = arith.addf %262, %261 : vector<16x32xf32>
    %264 = arith.mulf %225, %263 : vector<16x32xf32>
    %c0_107 = arith.constant 0 : index
    %c0_108 = arith.constant 0 : index
    %c0_109 = arith.constant 0 : index
    %265 = vector.load %arg19[%c0_107, %c0_108, %c0_109] : memref<1x32x256xf32, #tpu.memory_space<vmem>>, vector<1x32x256xf32>
    %266 = vector.shape_cast %265 : vector<1x32x256xf32> to vector<32x256xf32>
    %cst_110 = arith.constant dense<0.000000e+00> : vector<16x256xf32>
    %267 = tpu.matmul %264, %266, %cst_110 {dimension_numbers = #tpu.dot_dimension_numbers<[1], [0], [0], [1], [0, 0, 1, 1], [], []>} : vector<16x32xf32>, vector<32x256xf32>, vector<16x256xf32> -> vector<16x256xf32>
    %c0_111 = arith.constant 0 : index
    %c0_112 = arith.constant 0 : index
    %c0_113 = arith.constant 0 : index
    %268 = vector.load %arg20[%c0_111, %c0_112, %c0_113] : memref<1x1x256xf32, #tpu.memory_space<vmem>>, vector<1x1x256xf32>
    %269 = vector.shape_cast %268 : vector<1x1x256xf32> to vector<1x256xf32>
    %270 = vector.broadcast %269 : vector<1x256xf32> to vector<16x256xf32>
    %271 = arith.addf %267, %270 : vector<16x256xf32>
    %272 = vector.extract_strided_slice %271 {offsets = [0, 0], sizes = [16, 128], strides = [1, 1]} : vector<16x256xf32> to vector<16x128xf32>
    %273 = vector.extract_strided_slice %271 {offsets = [0, 128], sizes = [16, 128], strides = [1, 1]} : vector<16x256xf32> to vector<16x128xf32>
    %cst_114 = arith.constant 0.000000e+00 : f32
    %274 = vector.broadcast %cst_114 : f32 to vector<16x128xf32>
    %275 = arith.subf %274, %273 : vector<16x128xf32>
    %276 = math.exp %275 : vector<16x128xf32>
    %cst_115 = arith.constant 1.000000e+00 : f32
    %277 = vector.broadcast %cst_115 : f32 to vector<16x128xf32>
    %278 = arith.addf %277, %276 : vector<16x128xf32>
    %cst_116 = arith.constant 1.000000e+00 : f32
    %279 = vector.broadcast %cst_116 : f32 to vector<16x128xf32>
    %280 = arith.divf %279, %278 : vector<16x128xf32>
    %281 = arith.mulf %272, %280 : vector<16x128xf32>
    %282 = arith.addf %281, %102 : vector<16x128xf32>
    %c0_117 = arith.constant 0 : index
    %c0_118 = arith.constant 0 : index
    %283 = vector.load %arg26[%c0_117, %c0_118] : memref<16x128xf32, #tpu.memory_space<vmem>>, vector<16x128xf32>
    tpu.vector_store %arg26[%c0_117, %c0_118], %282 {strides = array<i32>} : memref<16x128xf32, #tpu.memory_space<vmem>>, vector<16x128xf32>,
    %c1_i32 = arith.constant 1 : i32
    %284 = arith.cmpi eq, %arg1, %c1_i32 : i32
    %285 = arith.extui %284 : i1 to i32
    %c0_i32_119 = arith.constant 0 : i32
    %286 = arith.cmpi ne, %285, %c0_i32_119 : i32
    scf.if %286 {
      %287 = vector.shape_cast %282 : vector<16x128xf32> to vector<2x8x128xf32>
      %cst_120 = arith.constant dense<0.000000e+00> : vector<2x128xf32>
      %288 = vector.multi_reduction <add>, %287, %cst_120 [1] : vector<2x8x128xf32> to vector<2x128xf32>
      %c0_121 = arith.constant 0 : index
      %c0_122 = arith.constant 0 : index
      %289 = vector.load %arg21[%c0_121, %c0_122] : memref<128x128xf32, #tpu.memory_space<vmem>>, vector<128x128xf32>
      %cst_123 = arith.constant dense<0.000000e+00> : vector<2x128xf32>
      %290 = tpu.matmul %288, %289, %cst_123 {dimension_numbers = #tpu.dot_dimension_numbers<[1], [0], [0], [1], [0, 0, 1, 1], [], []>} : vector<2x128xf32>, vector<128x128xf32>, vector<2x128xf32> -> vector<2x128xf32>
      %c0_124 = arith.constant 0 : index
      %c0_125 = arith.constant 0 : index
      %291 = vector.load %arg22[%c0_124, %c0_125] : memref<1x128xf32, #tpu.memory_space<vmem>>, vector<1x128xf32>
      %292 = vector.broadcast %291 : vector<1x128xf32> to vector<2x128xf32>
      %293 = arith.addf %290, %292 : vector<2x128xf32>
      %cst_126 = arith.constant 5.000000e-01 : f32
      %294 = vector.broadcast %cst_126 : f32 to vector<2x128xf32>
      %295 = arith.mulf %294, %293 : vector<2x128xf32>
      %cst_127 = arith.constant 0.707106769 : f32
      %296 = vector.broadcast %cst_127 : f32 to vector<2x128xf32>
      %297 = arith.mulf %293, %296 : vector<2x128xf32>
      %cst_128 = arith.constant 0.000000e+00 : f32
      %298 = vector.broadcast %cst_128 : f32 to vector<2x128xf32>
      %299 = arith.cmpf olt, %297, %298 : vector<2x128xf32>
      %cst_129 = arith.constant -1.000000e+00 : f32
      %cst_130 = arith.constant 1.000000e+00 : f32
      %300 = vector.broadcast %cst_129 : f32 to vector<2x128xf32>
      %301 = vector.broadcast %cst_130 : f32 to vector<2x128xf32>
      %302 = arith.select %299, %300, %301 : vector<2x128xi1>, vector<2x128xf32>
      %303 = math.absf %297 : vector<2x128xf32>
      %cst_131 = arith.constant 0.327591091 : f32
      %304 = vector.broadcast %cst_131 : f32 to vector<2x128xf32>
      %305 = arith.mulf %304, %303 : vector<2x128xf32>
      %cst_132 = arith.constant 1.000000e+00 : f32
      %306 = vector.broadcast %cst_132 : f32 to vector<2x128xf32>
      %307 = arith.addf %306, %305 : vector<2x128xf32>
      %cst_133 = arith.constant 1.000000e+00 : f32
      %308 = vector.broadcast %cst_133 : f32 to vector<2x128xf32>
      %309 = arith.divf %308, %307 : vector<2x128xf32>
      %cst_134 = arith.constant 1.06140542 : f32
      %310 = vector.broadcast %cst_134 : f32 to vector<2x128xf32>
      %311 = arith.mulf %310, %309 : vector<2x128xf32>
      %cst_135 = arith.constant -1.45315206 : f32
      %312 = vector.broadcast %cst_135 : f32 to vector<2x128xf32>
      %313 = arith.addf %311, %312 : vector<2x128xf32>
      %314 = arith.mulf %313, %309 : vector<2x128xf32>
      %cst_136 = arith.constant 1.42141378 : f32
      %315 = vector.broadcast %cst_136 : f32 to vector<2x128xf32>
      %316 = arith.addf %314, %315 : vector<2x128xf32>
      %317 = arith.mulf %316, %309 : vector<2x128xf32>
      %cst_137 = arith.constant -0.284496725 : f32
      %318 = vector.broadcast %cst_137 : f32 to vector<2x128xf32>
      %319 = arith.addf %317, %318 : vector<2x128xf32>
      %320 = arith.mulf %319, %309 : vector<2x128xf32>
      %cst_138 = arith.constant 0.254829586 : f32
      %321 = vector.broadcast %cst_138 : f32 to vector<2x128xf32>
      %322 = arith.addf %320, %321 : vector<2x128xf32>
      %323 = arith.mulf %322, %309 : vector<2x128xf32>
      %cst_139 = arith.constant 0.000000e+00 : f32
      %324 = vector.broadcast %cst_139 : f32 to vector<2x128xf32>
      %325 = arith.subf %324, %303 : vector<2x128xf32>
      %326 = arith.mulf %325, %303 : vector<2x128xf32>
      %327 = math.exp %326 : vector<2x128xf32>
      %328 = arith.mulf %323, %327 : vector<2x128xf32>
      %cst_140 = arith.constant 1.000000e+00 : f32
      %329 = vector.broadcast %cst_140 : f32 to vector<2x128xf32>
      %330 = arith.subf %329, %328 : vector<2x128xf32>
      %331 = arith.mulf %302, %330 : vector<2x128xf32>
      %cst_141 = arith.constant 1.000000e+00 : f32
      %332 = vector.broadcast %cst_141 : f32 to vector<2x128xf32>
      %333 = arith.addf %332, %331 : vector<2x128xf32>
      %334 = arith.mulf %295, %333 : vector<2x128xf32>
      %c0_142 = arith.constant 0 : index
      %c0_143 = arith.constant 0 : index
      %335 = vector.load %arg23[%c0_142, %c0_143] : memref<128x4xf32, #tpu.memory_space<vmem>>, vector<128x4xf32>
      %cst_144 = arith.constant dense<0.000000e+00> : vector<2x4xf32>
      %336 = tpu.matmul %334, %335, %cst_144 {dimension_numbers = #tpu.dot_dimension_numbers<[1], [0], [0], [1], [0, 0, 1, 1], [], []>} : vector<2x128xf32>, vector<128x4xf32>, vector<2x4xf32> -> vector<2x4xf32>
      %c0_145 = arith.constant 0 : index
      %c0_146 = arith.constant 0 : index
      %337 = vector.load %arg24[%c0_145, %c0_146] : memref<1x4xf32, #tpu.memory_space<vmem>>, vector<1x4xf32>
      %338 = vector.broadcast %337 : vector<1x4xf32> to vector<2x4xf32>
      %339 = arith.addf %336, %338 : vector<2x4xf32>
      %c0_147 = arith.constant 0 : index
      %c0_148 = arith.constant 0 : index
      %c0_149 = arith.constant 0 : index
      %340 = vector.load %arg25[%c0_147, %c0_148, %c0_149] : memref<1x2x4xf32, #tpu.memory_space<vmem>>, vector<1x2x4xf32>
      %341 = vector.shape_cast %340 : vector<1x2x4xf32> to vector<2x4xf32>
      %342 = vector.shape_cast %339 : vector<2x4xf32> to vector<1x2x4xf32>
      tpu.vector_store %arg25[%c0_147, %c0_148, %c0_149], %342 {strides = array<i32>} : memref<1x2x4xf32, #tpu.memory_space<vmem>>, vector<1x2x4xf32>,
    } else {
    }
    return
  }
  func.func @transform_0(%arg0: i32, %arg1: i32) -> (i32, i32, i32) {
    %c0_i32 = arith.constant 0 : i32
    %c0_i32_0 = arith.constant 0 : i32
    %c0_i32_1 = arith.constant 0 : i32
    return %arg0, %c0_i32, %c0_i32_0 : i32, i32, i32
  }
  func.func @transform_1(%arg0: i32, %arg1: i32) -> (i32, i32, i32) {
    %c0_i32 = arith.constant 0 : i32
    %c0_i32_0 = arith.constant 0 : i32
    %c0_i32_1 = arith.constant 0 : i32
    return %arg0, %c0_i32, %c0_i32_0 : i32, i32, i32
  }
  func.func @transform_2(%arg0: i32, %arg1: i32) -> (i32, i32) {
    %c0_i32 = arith.constant 0 : i32
    %c0_i32_0 = arith.constant 0 : i32
    %c0_i32_1 = arith.constant 0 : i32
    return %c0_i32, %c0_i32_0 : i32, i32
  }
  func.func @transform_3(%arg0: i32, %arg1: i32) -> (i32, i32) {
    %c0_i32 = arith.constant 0 : i32
    %c0_i32_0 = arith.constant 0 : i32
    %c0_i32_1 = arith.constant 0 : i32
    return %c0_i32, %c0_i32_0 : i32, i32
  }
  func.func @transform_4(%arg0: i32, %arg1: i32) -> (i32, i32) {
    %c0_i32 = arith.constant 0 : i32
    %c0_i32_0 = arith.constant 0 : i32
    %c0_i32_1 = arith.constant 0 : i32
    return %c0_i32, %c0_i32_0 : i32, i32
  }
  func.func @transform_5(%arg0: i32, %arg1: i32) -> (i32, i32) {
    %c0_i32 = arith.constant 0 : i32
    %c0_i32_0 = arith.constant 0 : i32
    %c0_i32_1 = arith.constant 0 : i32
    return %c0_i32, %c0_i32_0 : i32, i32
  }
  func.func @transform_6(%arg0: i32, %arg1: i32) -> (i32, i32, i32) {
    %c0_i32 = arith.constant 0 : i32
    %c0_i32_0 = arith.constant 0 : i32
    %c0_i32_1 = arith.constant 0 : i32
    return %arg1, %c0_i32, %c0_i32_0 : i32, i32, i32
  }
  func.func @transform_7(%arg0: i32, %arg1: i32) -> (i32, i32, i32) {
    %c0_i32 = arith.constant 0 : i32
    %c0_i32_0 = arith.constant 0 : i32
    %c0_i32_1 = arith.constant 0 : i32
    return %arg1, %c0_i32, %c0_i32_0 : i32, i32, i32
  }
  func.func @transform_8(%arg0: i32, %arg1: i32) -> (i32, i32, i32) {
    %c0_i32 = arith.constant 0 : i32
    %c0_i32_0 = arith.constant 0 : i32
    %c0_i32_1 = arith.constant 0 : i32
    return %arg1, %c0_i32, %c0_i32_0 : i32, i32, i32
  }
  func.func @transform_9(%arg0: i32, %arg1: i32) -> (i32, i32, i32) {
    %c0_i32 = arith.constant 0 : i32
    %c0_i32_0 = arith.constant 0 : i32
    %c0_i32_1 = arith.constant 0 : i32
    return %arg1, %c0_i32, %c0_i32_0 : i32, i32, i32
  }
  func.func @transform_10(%arg0: i32, %arg1: i32) -> (i32, i32, i32) {
    %c0_i32 = arith.constant 0 : i32
    %c0_i32_0 = arith.constant 0 : i32
    %c0_i32_1 = arith.constant 0 : i32
    return %arg1, %c0_i32, %c0_i32_0 : i32, i32, i32
  }
  func.func @transform_11(%arg0: i32, %arg1: i32) -> (i32, i32, i32) {
    %c0_i32 = arith.constant 0 : i32
    %c0_i32_0 = arith.constant 0 : i32
    %c0_i32_1 = arith.constant 0 : i32
    return %arg1, %c0_i32, %c0_i32_0 : i32, i32, i32
  }
  func.func @transform_12(%arg0: i32, %arg1: i32) -> (i32, i32, i32) {
    %c0_i32 = arith.constant 0 : i32
    %c0_i32_0 = arith.constant 0 : i32
    %c0_i32_1 = arith.constant 0 : i32
    return %arg1, %c0_i32, %c0_i32_0 : i32, i32, i32
  }
  func.func @transform_13(%arg0: i32, %arg1: i32) -> (i32, i32, i32) {
    %c0_i32 = arith.constant 0 : i32
    %c0_i32_0 = arith.constant 0 : i32
    %c0_i32_1 = arith.constant 0 : i32
    return %arg1, %c0_i32, %c0_i32_0 : i32, i32, i32
  }
  func.func @transform_14(%arg0: i32, %arg1: i32) -> (i32, i32, i32) {
    %c0_i32 = arith.constant 0 : i32
    %c0_i32_0 = arith.constant 0 : i32
    %c0_i32_1 = arith.constant 0 : i32
    return %arg1, %c0_i32, %c0_i32_0 : i32, i32, i32
  }
  func.func @transform_15(%arg0: i32, %arg1: i32) -> (i32, i32, i32) {
    %c0_i32 = arith.constant 0 : i32
    %c0_i32_0 = arith.constant 0 : i32
    %c0_i32_1 = arith.constant 0 : i32
    return %arg1, %c0_i32, %c0_i32_0 : i32, i32, i32
  }
  func.func @transform_16(%arg0: i32, %arg1: i32) -> (i32, i32, i32) {
    %c0_i32 = arith.constant 0 : i32
    %c0_i32_0 = arith.constant 0 : i32
    %c0_i32_1 = arith.constant 0 : i32
    return %arg1, %c0_i32, %c0_i32_0 : i32, i32, i32
  }
  func.func @transform_17(%arg0: i32, %arg1: i32) -> (i32, i32, i32) {
    %c0_i32 = arith.constant 0 : i32
    %c0_i32_0 = arith.constant 0 : i32
    %c0_i32_1 = arith.constant 0 : i32
    return %arg1, %c0_i32, %c0_i32_0 : i32, i32, i32
  }
  func.func @transform_18(%arg0: i32, %arg1: i32) -> (i32, i32, i32) {
    %c0_i32 = arith.constant 0 : i32
    %c0_i32_0 = arith.constant 0 : i32
    %c0_i32_1 = arith.constant 0 : i32
    return %arg1, %c0_i32, %c0_i32_0 : i32, i32, i32
  }
  func.func @transform_19(%arg0: i32, %arg1: i32) -> (i32, i32) {
    %c0_i32 = arith.constant 0 : i32
    %c0_i32_0 = arith.constant 0 : i32
    %c0_i32_1 = arith.constant 0 : i32
    return %c0_i32, %c0_i32_0 : i32, i32
  }
  func.func @transform_20(%arg0: i32, %arg1: i32) -> (i32, i32) {
    %c0_i32 = arith.constant 0 : i32
    %c0_i32_0 = arith.constant 0 : i32
    %c0_i32_1 = arith.constant 0 : i32
    return %c0_i32, %c0_i32_0 : i32, i32
  }
  func.func @transform_21(%arg0: i32, %arg1: i32) -> (i32, i32) {
    %c0_i32 = arith.constant 0 : i32
    %c0_i32_0 = arith.constant 0 : i32
    %c0_i32_1 = arith.constant 0 : i32
    return %c0_i32, %c0_i32_0 : i32, i32
  }
  func.func @transform_22(%arg0: i32, %arg1: i32) -> (i32, i32) {
    %c0_i32 = arith.constant 0 : i32
    %c0_i32_0 = arith.constant 0 : i32
    %c0_i32_1 = arith.constant 0 : i32
    return %c0_i32, %c0_i32_0 : i32, i32
  }
  func.func @transform_23(%arg0: i32, %arg1: i32) -> (i32, i32, i32) {
    %c0_i32 = arith.constant 0 : i32
    %c0_i32_0 = arith.constant 0 : i32
    %c0_i32_1 = arith.constant 0 : i32
    return %arg0, %c0_i32, %c0_i32_0 : i32, i32, i32
  }
}

</mosaic_0001>

<bundles_post_ra>
// kernel: gps_forward.1
= control target key start
LH: loop header
LB: loop body
LE: loop exit
PB: predicated region body
PF: predicated region fallthrough
CT: control target
= control target key end

     0   :  { %s6426_s0 = inlined_call_operand.vmem [shape: f32[4,8,8], index: 0, kind: input, shape index: {}]   ;;  %s6427_s1 = inlined_call_operand.vmem [shape: bf16[4,32,8], index: 1, kind: input, shape index: {}]   ;;  %s6428_s2 = inlined_call_operand.hbm [shape: f32[8,128], index: 2, kind: input, shape index: {}]   ;;  %s6429_s3 = inlined_call_operand.vmem [shape: f32[1,128], index: 3, kind: input, shape index: {}]   ;;  %s6430_s4 = inlined_call_operand.hbm [shape: f32[128,128], index: 4, kind: input, shape index: {}]   ;;  %s6431_s5 = inlined_call_operand.hbm [shape: f32[1,128], index: 5, kind: input, shape index: {}]   ;;  %s6432_s6 = inlined_call_operand.vmem [shape: f32[2,1,128], index: 6, kind: input, shape index: {}]   ;;  %s6433_s7 = inlined_call_operand.hbm [shape: f32[2,1,128], index: 7, kind: input, shape index: {}]   ;;  %s6434_s8 = inlined_call_operand.vmem [shape: f32[2,128,128], index: 8, kind: input, shape index: {}]   ;;  %s6435_s9 = inlined_call_operand.hbm [shape: f32[2,1,128], index: 9, kind: input, shape index: {}]   ;;  %s6436_s10 = inlined_call_operand.hbm [shape: f32[2,128,128], index: 10, kind: input, shape index: {}]   ;;  %s6437_s11 = inlined_call_operand.hbm [shape: f32[2,1,128], index: 11, kind: input, shape index: {}]   ;;  %s6438_s12 = inlined_call_operand.hbm [shape: f32[2,1,128], index: 12, kind: input, shape index: {}]   ;;  %s6439_s13 = inlined_call_operand.hbm [shape: f32[2,1,128], index: 13, kind: input, shape index: {}]   ;;  %s6440_s14 = inlined_call_operand.hbm [shape: f32[2,128,128], index: 14, kind: input, shape index: {}]   ;;  %s6441_s15 = inlined_call_operand.vmem [shape: f32[2,32,128], index: 15, kind: input, shape index: {}]   ;;  %s6442_s16 = inlined_call_operand.hbm [shape: f32[2,1,128], index: 16, kind: input, shape index: {}]   ;;  %s6443_s17 = inlined_call_operand.hbm [shape: f32[2,32,256], index: 17, kind: input, shape index: {}]   ;;  %s6444_s18 = inlined_call_operand.hbm [shape: f32[2,1,256], index: 18, kind: input, shape index: {}]   ;;  %s6445_s19 = inlined_call_operand.hbm [shape: f32[128,128], index: 19, kind: input, shape index: {}]   ;;  %s6446_s20 = inlined_call_operand.hbm [shape: f32[1,128], index: 20, kind: input, shape index: {}]   ;;  %s6447_s21 = inlined_call_operand.vmem [shape: f32[128,4], index: 21, kind: input, shape index: {}]   ;;  %s6448_s22 = inlined_call_operand.hbm [shape: f32[1,4], index: 22, kind: input, shape index: {}]   ;;  %s6449_s23 = inlined_call_operand.hbm [shape: f32[2,2,4], index: 23, kind: output, shape index: {}]  }
   0x1   :  { %6508 = sst [smem:[#allocation58_spill]] %s6426_s0 }
   0x2   :  { %6509 = sst [smem:[#allocation59_spill]] %s6427_s1 }
   0x3   :  { %6510 = sst [smem:[#allocation60_spill]] %s6428_s2 }
   0x4   :  { %6511 = sst [smem:[#allocation61_spill]] %s6429_s3 }
   0x5   :  { %6512 = sst [smem:[#allocation62_spill]] %s6430_s4 }
   0x6   :  { %6513 = sst [smem:[#allocation63_spill]] %s6431_s5 }
   0x7   :  { %6514 = sst [smem:[#allocation64_spill]] %s6432_s6 }
   0x8   :  { %6515 = sst [smem:[#allocation65_spill]] %s6433_s7 }
   0x9   :  { %6516 = sst [smem:[#allocation66_spill]] %s6434_s8 }
   0xa   :  { %6517 = sst [smem:[#allocation67_spill]] %s6435_s9 }
   0xb   :  { %6518 = sst [smem:[#allocation68_spill]] %s6436_s10 }
   0xc   :  { %6519 = sst [smem:[#allocation69_spill]] %s6437_s11 }
   0xd   :  { %6520 = sst [smem:[#allocation70_spill]] %s6438_s12 }
   0xe   :  { %6521 = sst [smem:[#allocation71_spill]] %s6439_s13 }
   0xf   :  { %6522 = sst [smem:[#allocation72_spill]] %s6440_s14 }
  0x10   :  { %6523 = sst [smem:[#allocation73_spill]] %s6441_s15 }
  0x11   :  { %6524 = sst [smem:[#allocation74_spill]] %s6442_s16 }
  0x12   :  { %6525 = sst [smem:[#allocation75_spill]] %s6443_s17 }
  0x13   :  { %6526 = sst [smem:[#allocation76_spill]] %s6444_s18 }
  0x14   :  { %6527 = sst [smem:[#allocation77_spill]] %s6445_s19 }
  0x15   :  { %6528 = sst [smem:[#allocation78_spill]] %s6446_s20 }
  0x16   :  { %6529 = sst [smem:[#allocation79_spill]] %s6447_s21 }
  0x17   :  { %6530 = sst [smem:[#allocation80_spill]] %s6448_s22 }
  0x18   :  { %6531 = sst [smem:[#allocation81_spill]] %s6449_s23 }
  0x19   :  { %28 = vsyncpa [#allocation4], 0 }
  0x1a   :  { %29 = vsyncpa [#allocation7], 0 }
  0x1b   :  { %30 = vsyncpa [#allocation10], 0 }
  0x1c   :  { %32 = vsyncpa [#allocation10 + $0x1], 0 }
  0x1d   :  { %33 = vsyncpa [#allocation13], 0 }
  0x1e   :  { %35 = vsyncpa [#allocation13 + $0x1], 0 }
  0x1f   :  { %36 = vsyncpa [#allocation16], 0 }
  0x20   :  { %38 = vsyncpa [#allocation16 + $0x1], 0 }
  0x21   :  { %39 = vsyncpa [#allocation19], 0 }
  0x22   :  { %41 = vsyncpa [#allocation19 + $0x1], 0 }
  0x23   :  { %42 = vsyncpa [#allocation22], 0 }
  0x24   :  { %44 = vsyncpa [#allocation22 + $0x1], 0 }
  0x25   :  { %45 = vsyncpa [#allocation25], 0 }
  0x26   :  { %46 = vsyncpa [#allocation28], 0 }
  0x27   :  { %47 = vsyncpa [#allocation5], 0 }
  0x28   :  { %49 = vsyncpa [#allocation5 + $0x1], 0  ;;  %s5367_s4 = smov 0   ;;  %s5369_s30 = smov 0  }
  0x29   :  { %s5371_s24 = smov 0   ;;  %s5373_s25 = smov 0  }
  0x2a   :  { %s5375_s5 = smov 0   ;;  %s5377_s1 = smov 0  }
  0x2b   :  { %s5379_s26 = smov 0   ;;  %s5381_s2 = smov 0  }
  0x2c   :  { %s5383_s6 = smov 0   ;;  %s5385_s27 = smov 0  }
  0x2d   :  { %s5387_s7 = smov 0  }
  0x2e LB: > { %6532 = sst [smem:[#allocation40_spill]] %s5175_s4  ;;  %s5421_s28 = sadd.s32 4294967295, %s5215_s7   ;;  %s5215_s7 = sphi %s5387_s7, %s55_s7   ;;  %s5211_s27 = sphi %s5385_s27, %s6654_s27   ;;  %s5207_s6 = sphi %s5383_s6, %s6650_s6   ;;  %s5203_s2 = sphi %s5381_s2, %s6649_s2   ;;  %s5199_s26 = sphi %s5379_s26, %s6648_s26   ;;  %s5195_s1 = sphi %s5377_s1, %s6647_s1   ;;  %s5191_s5 = sphi %s5375_s5, %s6653_s5   ;;  %s5187_s25 = sphi %s5373_s25, %s6652_s25   ;;  %s5183_s24 = sphi %s5371_s24, %s6645_s24   ;;  %s5179_s30 = sphi %s5369_s30, %s6644_s30   ;;  %s5175_s4 = sphi %s5367_s4, %s6643_s4  }
  0x2f   : > { %6533 = sst [smem:[#allocation41_spill]] %s5179_s30  ;;  %s3499_s29 = sadd.s32 4294967294, %s5215_s7  }
  0x30   : > { %6534 = sst [smem:[#allocation42_spill]] %s5183_s24  ;;  %p249_p0 = scmp.ne.s32.totalorder %s5191_s5, %s5187_s25 }
  0x31   : > { %6535 = sst [smem:[#allocation43_spill]] %s5195_s1  ;;  %p6468_p1 = scmp.eq.s32.totalorder %s5421_s28, 0 }
  0x32   : > { %6536 = sst [smem:[#allocation44_spill]] %s5199_s26  ;;  %p642_p2 = scmp.ne.s32.totalorder %s5183_s24, %s5179_s30 }
  0x33   : > { %6537 = sst [smem:[#allocation45_spill]] %s5203_s2  ;;  %p5431_p3 = por %p6468_p1, %p249_p0 }
  0x34   : > { %6538 = sst [smem:[#allocation46_spill]] %s5207_s6  ;;  %p643_p4 = scmp.eq.s32.totalorder %s5421_s28, 3 }
  0x35   : > { %6539 = sst [smem:[#allocation47_spill]] %s5211_s27  ;;  %p648_p5 = scmp.ne.s32.totalorder %s5179_s30, %s5175_s4 }
  0x36   : > { %6540 = sst [smem:[#allocation48_spill]] %s5215_s7  ;;  %p649_p6 = scmp.eq.s32.totalorder %s3499_s29, 3 }
  0x37   : > { %6541 = sst [smem:[#allocation49_spill]] %s5421_s28  ;;  %p5438_p7 = por %p643_p4, %p642_p2 }
  0x38   : > { %s6542_s0 = scalar_select %p5431_p3, 1, 0 }
  0x39   : > { %s6544_s23 = scalar_select %p5438_p7, 1, 0 }
  0x3a   : > { %6543 = sst [smem:[#allocation50_spill]] %s6542_s0  ;;  %p3500_p8 = scmp.ge.s32.totalorder %s5215_s7, 1 }
  0x3b   : > { %6545 = sst [smem:[#allocation51_spill]] %s6544_s23  ;;  %p5443_p9 = por %p649_p6, %p648_p5 }
  0x3c   : > { %p656_p10 = scmp.lt.s32.totalorder %s5215_s7, 5  ;;  %s5217_s3 = smov [#allocation6]  }
  0x3d   : > { %s6546_s21 = scalar_select %p5443_p9, 1, 0 }
  0x3e   : > { %p5448_p11 = pnand %p3500_p8, %p656_p10  ;;  %s682_s15 = sshll.u32 %s5217_s3, 4  ;;  %s683_s15 = int_to_ptr.vmem [resolvable:$true] %s682_s15 }
  0x3f   : > { %6547 = sst [smem:[#allocation52_spill]] %s6546_s21  ;;  %s5218_s4 = smov [#allocation24]  }
  0x40   : > { %s6548_s25 = scalar_select %p5448_p11, 1, 0 }
  0x41   : > { %p4298_p12 = pneg %p5448_p11  ;;  %s706_s23 = sshll.u32 %s5218_s4, 4  ;;  %s5460_s23 = int_to_ptr.vmem [resolvable:$true] %s706_s23 }
  0x42   : > { %6549 = sst [smem:[#allocation53_spill]] %s6548_s25  ;;  %s6551_s26 = sld [smem:[#allocation62_spill]] }
  0x43   : > { %p5456_p13 = pnand %p4298_p12, %p6468_p1 }
  0x45   : > { %s6550_s29 = scalar_select %p5456_p13, 1, 0 }
  0x46   : > { %p5470_p2 = pneg %p5456_p13 }
  0x48   : > { %s6552_s0 = smov %s6551_s26  ;;  %s4593_s2 = scalar_lea.hbm %s6551_s26, 2048 }
  0x49   : > { %p4594_p0 = scmp.ne.s32.totalorder %s6552_s0, %s4593_s2  ;;  %p4600_p6 = scmp.lt.u32.totalorder %s4593_s2, %s6552_s0 }
  0x4a   : > { %s6553_s3 = scalar_select %p5470_p2, 1, 0 }
  0x4b   : > { %p4596_p4 = pnand %p5470_p2, %p4594_p0 }
  0x4d   : > { %p4597_p5 = pneg %p4596_p4 }
  0x4f   : > { %p4602_p8 = pnand %p4600_p6, %p4597_p5 }
  0x51   : > { %4605 = shalt.err (!%p4602_p8)
}
  0x52   : > { %s4606_s8 = scalar_lea.vmem %s683_s15, 2048  ;;  %p4614_p9 = scmp.lt.s32.totalorder %s683_s15, %s683_s15 }
  0x53   : > { %p4607_p10 = scmp.ne.s32.totalorder %s683_s15, %s4606_s8  ;;  %p4615_p7 = scmp.lt.s32.totalorder %s4606_s8, %s4606_s8 }
  0x55   : > { %p4609_p12 = pnand %p4607_p10, %p5470_p2  ;;  %p4616_p3 = por %p4615_p7, %p4614_p9 }
  0x57   : > { %p4610_p1 = pneg %p4609_p12 }
  0x59   : > { %p4617_p11 = pnand %p4616_p3, %p4610_p1 }
  0x5b   : > { %4620 = shalt.err (!%p4617_p11)
}
  0x5c   : > { %s6475_s18 = smov 128   ;;  %s6477_s21 = smov 8  }
  0x5d   : > { %4304 = dma.hbm_to_vmem [thread:$0]  (!%p5456_p13), %s6552_s0, 2048, %s683_s15, [#allocation7], %s6475_s18, %s6475_s18, %s6477_s21  }
  0x5e   : > { %s6554_s19 = sld [smem:[#allocation77_spill]] }
  0x64   : > { %s4621_s4 = scalar_lea.hbm %s6554_s19, 2048 }
  0x65   : > { %p4622_p1 = scmp.ne.s32.totalorder %s6554_s19, %s4621_s4  ;;  %p4628_p9 = scmp.lt.u32.totalorder %s4621_s4, %s6554_s19 }
  0x67   : > { %p4624_p3 = pnand %p4622_p1, %p5470_p2 }
  0x69   : > { %p4625_p7 = pneg %p4624_p3 }
  0x6b   : > { %p4630_p11 = pnand %p4628_p9, %p4625_p7 }
  0x6d   : > { %4633 = shalt.err (!%p4630_p11)
}
  0x6e   : > { %s4634_s15 = scalar_lea.vmem %s5460_s23, 2048  ;;  %p4642_p6 = scmp.lt.s32.totalorder %s5460_s23, %s5460_s23 }
  0x6f   : > { %p4635_p0 = scmp.ne.s32.totalorder %s5460_s23, %s4634_s15  ;;  %p4643_p8 = scmp.lt.s32.totalorder %s4634_s15, %s4634_s15 }
  0x71   : > { %p4637_p4 = pnand %p4635_p0, %p5470_p2  ;;  %p4644_p10 = por %p4643_p8, %p4642_p6 }
  0x73   : > { %p4638_p5 = pneg %p4637_p4 }
  0x75   : > { %p4645_p12 = pnand %p4644_p10, %p4638_p5 }
  0x77   : > { %4648 = shalt.err (!%p4645_p12)
}
  0x78   : > { %4310 = dma.hbm_to_vmem [thread:$0]  (!%p5456_p13), %s6554_s19, 2048, %s5460_s23, [#allocation25], %s6475_s18, %s6475_s18, %s6477_s21  }
  0x79   : > { %s64_s25 = sadd.s32 1, %s5207_s6  ;;  %s67_s30 = sadd.s32 1, %s5211_s27 }
  0x7a   : > { %p65_p1 = scmp.ge.s32.totalorder %s64_s25, 2  ;;  %s236_s26 = sadd.s32 1, %s5195_s1 }
  0x7b   : > { %p243_p3 = scmp.ne.s32.totalorder %s5195_s1, %s5191_s5  ;;  %p244_p7 = scmp.eq.s32.totalorder %s5215_s7, 0 }
  0x7c   : > { %s6656_s25 = smov (%p65_p1, %s64_s25), 0  ;;  %s6658_s30 = smov (!%p65_p1, %s67_s30), %s5211_s27 }
  0x7d   : > { %6555 = sst [smem:[#allocation54_spill]] %s6656_s25  ;;  %s233_s2 = ssub.s32 %s5207_s6, %s6656_s25 }
  0x7e   : > { %p5526_p9 = por %p244_p7, %p243_p3  ;;  %p69_p11 = scmp.ge.s32.totalorder %s6658_s30, 2 }
  0x7f   : > { %p234_p0 = scmp.eq.s32.totalorder %s233_s2, 0  ;;  %p4358_p4 = scmp.lt.s32.totalorder %s5215_s7, 4 }
  0x80   : > { %s5532_s23 = sand.u32 1, %s5215_s7   ;;  %s6660_s30 = smov (%p69_p11, %s6658_s30), 0 }
  0x81   : > { %6557 = sst [smem:[#allocation55_spill]] %s6660_s30  ;;  %s629_s8 = ssub.s32 %s5211_s27, %s6660_s30 }
  0x82   : > { %s5537_s4 = scalar_select %p234_p0, %s5195_s1, %s236_s26  }
  0x83   : > { %p630_p5 = scmp.eq.s32.totalorder %s629_s8, 0  ;;  %s5542_s15 = sand.u32 1, %s5195_s1  }
  0x84   : > { %6558 = sst [smem:[#allocation56_spill]] %s5537_s4  ;;  %s5545_s13 = sshll.u32 %s5207_s6, 4 }
  0x85   : > { %s6559_s16 = sadd.s32 1, %s5183_s24  ;;  %s6561_s0 = sld [smem:[#allocation65_spill]] }
  0x86   : > { %s5550_s2 = scalar_select %p630_p5, %s5183_s24, %s6559_s16  }
  0x87   : > { %s773_s26 = scalar_lea.vmem [#allocation9], %s5542_s15  ;;  %p5565_p6 = pnand %p4358_p4, %p5526_p9 }
  0x88   : > { %6560 = sst [smem:[#allocation57_spill]] %s5550_s2  ;;  %s780_s8 = sshll.u32 %s773_s26, 4  ;;  %s5559_s8 = int_to_ptr.vmem [resolvable:$true] %s780_s8 }
  0x89   : > { %s6562_s30 = scalar_select %p5565_p6, 1, 0 }
  0x8a   : > { %s6489_s25 = scalar_lea.sflag [#allocation10], %s5532_s23  ;;  %p5575_p10 = pneg %p5565_p6 }
  0x8b   : > { %s5556_s19 = scalar_lea.hbm %s6561_s0, %s5545_s13  ;;  %s4654_s27 = scalar_lea.hbm %s6561_s0, 32 }
  0x8c   : > { %s4649_s18 = scalar_lea.hbm %s5556_s19, 16  ;;  %p4655_p3 = scmp.lt.u32.totalorder %s5556_s19, %s6561_s0 }
  0x8d   : > { %p4650_p8 = scmp.ne.s32.totalorder %s5556_s19, %s4649_s18  ;;  %p4656_p7 = scmp.lt.u32.totalorder %s4654_s27, %s4649_s18 }
  0x8e   : > { %s6563_s21 = scalar_select %p5575_p10, 1, 0 }
  0x8f   : > { %p4652_p12 = pnand %p5575_p10, %p4650_p8  ;;  %p4657_p9 = por %p4656_p7, %p4655_p3 }
  0x90   : > { %p4658_p11 = scmp.lt.u32.totalorder %s4649_s18, %s5556_s19 }
  0x91   : > { %p4653_p1 = pneg %p4652_p12 }
  0x92   : > { %p4659_p0 = por %p4658_p11, %p4657_p9 }
  0x94   : > { %p4660_p4 = pnand %p4659_p0, %p4653_p1 }
  0x96   : > { %4663 = shalt.err (!%p4660_p4)
}
  0x97   : > { %s4664_s16 = scalar_lea.vmem %s5559_s8, 16  ;;  %s5221_s28 = smov [#allocation9]  }
  0x98   : > { %p4665_p5 = scmp.ne.s32.totalorder %s5559_s8, %s4664_s16  ;;  %s4669_s26 = sshll.u32 %s5221_s28, 4  ;;  %s4670_s26 = int_to_ptr.vmem [resolvable:$false] %s4669_s26 }
  0x99   : > { %s4671_s1 = scalar_lea.vmem %s4670_s26, 32  ;;  %p4672_p13 = scmp.lt.s32.totalorder %s5559_s8, %s4670_s26 }
  0x9a   : > { %p4667_p8 = pnand %p4665_p5, %p5575_p10  ;;  %p4673_p2 = scmp.lt.s32.totalorder %s4671_s1, %s4664_s16 }
  0x9c   : > { %p4668_p12 = pneg %p4667_p8  ;;  %p4674_p3 = por %p4673_p2, %p4672_p13 }
  0x9e   : > { %p4675_p7 = pnand %p4674_p3, %p4668_p12 }
  0xa0   : > { %4678 = shalt.err (!%p4675_p7)
}
  0xa1   : > { %4320 = dma.hbm_to_vmem [thread:$0]  (!%p5565_p6), %s5556_s19, 16, %s5559_s8, %s6489_s25  }
  0xa2   : > { %s6490_s27 = sshll.u32 %s5207_s6, 11  ;;  %s6564_s4 = sshll.u32 %s5542_s15, 7 }
  0xa3   : > { %s816_s18 = scalar_lea.vmem [#allocation12], %s6564_s4  ;;  %s6565_s10 = sld [smem:[#allocation68_spill]] }
  0xa4   : > { %s823_s28 = sshll.u32 %s816_s18, 4  ;;  %s6491_s0 = scalar_lea.sflag [#allocation13], %s5532_s23  ;;  %s5610_s28 = int_to_ptr.vmem [resolvable:$true] %s823_s28 }
  0xa9   : > { %s5608_s1 = scalar_lea.hbm %s6565_s10, %s6490_s27  ;;  %s4684_s4 = scalar_lea.hbm %s6565_s10, 4096 }
  0xaa   : > { %s4679_s2 = scalar_lea.hbm %s5608_s1, 2048  ;;  %p4685_p9 = scmp.lt.u32.totalorder %s5608_s1, %s6565_s10 }
  0xab   : > { %p4680_p13 = scmp.ne.s32.totalorder %s5608_s1, %s4679_s2  ;;  %p4686_p11 = scmp.lt.u32.totalorder %s4684_s4, %s4679_s2 }
  0xac   : > { %p4688_p4 = scmp.lt.u32.totalorder %s4679_s2, %s5608_s1 }
  0xad   : > { %p4682_p2 = pnand %p4680_p13, %p5575_p10  ;;  %p4687_p0 = por %p4686_p11, %p4685_p9 }
  0xaf   : > { %p4683_p1 = pneg %p4682_p2  ;;  %p4689_p5 = por %p4688_p4, %p4687_p0 }
  0xb1   : > { %p4690_p8 = pnand %p4689_p5, %p4683_p1 }
  0xb3   : > { %4693 = shalt.err (!%p4690_p8)
}
  0xb4   : > { %s4694_s26 = scalar_lea.vmem %s5610_s28, 2048  ;;  %s5222_s19 = smov [#allocation12]  }
  0xb5   : > { %p4695_p12 = scmp.ne.s32.totalorder %s5610_s28, %s4694_s26  ;;  %s4699_s8 = sshll.u32 %s5222_s19, 4  ;;  %s4700_s8 = int_to_ptr.vmem [resolvable:$false] %s4699_s8 }
  0xb6   : > { %s4701_s18 = scalar_lea.vmem %s4700_s8, 4096  ;;  %p4702_p13 = scmp.lt.s32.totalorder %s5610_s28, %s4700_s8 }
  0xb7   : > { %p4697_p3 = pnand %p4695_p12, %p5575_p10  ;;  %p4703_p2 = scmp.lt.s32.totalorder %s4701_s18, %s4694_s26 }
  0xb9   : > { %p4698_p7 = pneg %p4697_p3  ;;  %p4704_p9 = por %p4703_p2, %p4702_p13 }
  0xbb   : > { %p4705_p11 = pnand %p4704_p9, %p4698_p7 }
  0xbd   : > { %4708 = shalt.err (!%p4705_p11)
}
  0xbe   : > { %s6566_s2 = smov 8   ;;  %s6567_s4 = smov 128  }
  0xbf   : > { %4326 = dma.hbm_to_vmem [thread:$0]  (!%p5565_p6), %s5608_s1, 2048, %s5610_s28, %s6491_s0, %s6567_s4, %s6567_s4, %s6566_s2  }
  0xc0   : > { %s6568_s12 = sld [smem:[#allocation70_spill]]  ;;  %s853_s8 = scalar_lea.vmem [#allocation15], %s5542_s15 }
  0xc1   : > { %s860_s18 = sshll.u32 %s853_s8, 4  ;;  %s861_s18 = int_to_ptr.vmem [resolvable:$true] %s860_s18 }
  0xc6   : > { %s5643_s26 = scalar_lea.hbm %s6568_s12, %s5545_s13  ;;  %s4714_s1 = scalar_lea.hbm %s6568_s12, 32 }
  0xc7   : > { %s4709_s27 = scalar_lea.hbm %s5643_s26, 16  ;;  %p4715_p5 = scmp.lt.u32.totalorder %s5643_s26, %s6568_s12 }
  0xc8   : > { %p4710_p1 = scmp.ne.s32.totalorder %s5643_s26, %s4709_s27  ;;  %p4716_p8 = scmp.lt.u32.totalorder %s4714_s1, %s4709_s27 }
  0xc9   : > { %p4718_p3 = scmp.lt.u32.totalorder %s4709_s27, %s5643_s26 }
  0xca   : > { %p4712_p0 = pnand %p4710_p1, %p5575_p10  ;;  %p4717_p12 = por %p4716_p8, %p4715_p5 }
  0xcc   : > { %p4713_p4 = pneg %p4712_p0  ;;  %p4719_p7 = por %p4718_p3, %p4717_p12 }
  0xce   : > { %p4720_p13 = pnand %p4719_p7, %p4713_p4 }
  0xd0   : > { %4723 = shalt.err (!%p4720_p13)
}
  0xd1   : > { %s4724_s8 = scalar_lea.vmem %s861_s18, 16  ;;  %s5223_s0 = smov [#allocation15]  }
  0xd2   : > { %p4725_p2 = scmp.ne.s32.totalorder %s861_s18, %s4724_s8  ;;  %s4729_s25 = sshll.u32 %s5223_s0, 4  ;;  %s4730_s25 = int_to_ptr.vmem [resolvable:$false] %s4729_s25 }
  0xd3   : > { %s4731_s10 = scalar_lea.vmem %s4730_s25, 32  ;;  %p4732_p1 = scmp.lt.s32.totalorder %s861_s18, %s4730_s25 }
  0xd4   : > { %p4727_p9 = pnand %p4725_p2, %p5575_p10  ;;  %p4733_p0 = scmp.lt.s32.totalorder %s4731_s10, %s4724_s8 }
  0xd6   : > { %p4728_p11 = pneg %p4727_p9  ;;  %p4734_p6 = por %p4733_p0, %p4732_p1 }
  0xd8   : > { %p4735_p5 = pnand %p4734_p6, %p4728_p11 }
  0xda   : > { %4738 = shalt.err (!%p4735_p5)
}
  0xdb   : > { %p6569_p8 = scmp.ne.s32.totalorder %s6562_s30, 0  ;;  %s6570_s27 = scalar_lea.sflag [#allocation16], %s5532_s23 }
  0xdc   : > { %s6571_s28 = sshll.u32 %s5207_s6, 11  ;;  %s6572_s14 = sld [smem:[#allocation72_spill]] }
  0xdd   : > { %4332 = dma.hbm_to_vmem [thread:$0]  (!%p6569_p8), %s5643_s26, 16, %s861_s18, %s6570_s27  }
  0xde   : > { %s6573_s16 = sshll.u32 %s5542_s15, 7  ;;  %s3520_s10 = sshll.u32 %s5542_s15, 6 }
  0xdf   : > { %s888_s19 = scalar_lea.vmem [#allocation18], %s6573_s16  ;;  %s6495_s12 = scalar_lea.sflag [#allocation19], %s5532_s23 }
  0xe0   : > { %s895_s8 = sshll.u32 %s888_s19, 4  ;;  %s5675_s8 = int_to_ptr.vmem [resolvable:$true] %s895_s8 }
  0xe2   : > { %s5671_s25 = scalar_lea.hbm %s6572_s14, %s6571_s28  ;;  %s4744_s27 = scalar_lea.hbm %s6572_s14, 4096 }
  0xe3   : > { %s4739_s24 = scalar_lea.hbm %s5671_s25, 2048  ;;  %p4745_p3 = scmp.lt.u32.totalorder %s5671_s25, %s6572_s14 }
  0xe4   : > { %p4740_p6 = scmp.ne.s32.totalorder %s5671_s25, %s4739_s24  ;;  %p4746_p7 = scmp.lt.u32.totalorder %s4744_s27, %s4739_s24 }
  0xe5   : > { %p4748_p2 = scmp.lt.u32.totalorder %s4739_s24, %s5671_s25 }
  0xe6   : > { %p4742_p4 = pnand %p4740_p6, %p5575_p10  ;;  %p4747_p13 = por %p4746_p7, %p4745_p3 }
  0xe8   : > { %p4743_p12 = pneg %p4742_p4  ;;  %p4749_p9 = por %p4748_p2, %p4747_p13 }
  0xea   : > { %p4750_p11 = pnand %p4749_p9, %p4743_p12 }
  0xec   : > { %4753 = shalt.err (!%p4750_p11)
}
  0xed   : > { %s4754_s1 = scalar_lea.vmem %s5675_s8, 2048  ;;  %s5224_s16 = smov [#allocation18]  }
  0xee   : > { %p4755_p1 = scmp.ne.s32.totalorder %s5675_s8, %s4754_s1  ;;  %s4759_s19 = sshll.u32 %s5224_s16, 4  ;;  %s4760_s19 = int_to_ptr.vmem [resolvable:$false] %s4759_s19 }
  0xef   : > { %s4761_s26 = scalar_lea.vmem %s4760_s19, 4096  ;;  %p4762_p6 = scmp.lt.s32.totalorder %s5675_s8, %s4760_s19 }
  0xf0   : > { %p4757_p0 = pnand %p4755_p1, %p5575_p10  ;;  %p4763_p4 = scmp.lt.s32.totalorder %s4761_s26, %s4754_s1 }
  0xf2   : > { %p4758_p5 = pneg %p4757_p0  ;;  %p4764_p3 = por %p4763_p4, %p4762_p6 }
  0xf4   : > { %p4765_p7 = pnand %p4764_p3, %p4758_p5 }
  0xf6   : > { %4768 = shalt.err (!%p4765_p7)
}
  0xf7   : > { %4338 = dma.hbm_to_vmem [thread:$0]  (!%p6569_p8), %s5671_s25, 2048, %s5675_s8, %s6495_s12, %s6567_s4, %s6567_s4, %s6566_s2  }
  0xf8   : > { %s3588_s24 = sshll.u32 %s5207_s6, 10  ;;  %s6574_s17 = sld [smem:[#allocation75_spill]] }
  0xf9   : > { %s934_s0 = scalar_lea.vmem [#allocation21], %s3520_s10  ;;  %s931_s16 = scalar_lea.sflag [#allocation22], %s5532_s23 }
  0xfa   : > { %s941_s1 = sshll.u32 %s934_s0, 4  ;;  %s5713_s1 = int_to_ptr.vmem [resolvable:$true] %s941_s1 }
  0xfe   : > { %s5709_s28 = scalar_lea.hbm %s6574_s17, %s3588_s24  ;;  %s4774_s25 = scalar_lea.hbm %s6574_s17, 2048 }
  0xff   : > { %s4769_s19 = scalar_lea.hbm %s5709_s28, 1024  ;;  %p4775_p9 = scmp.lt.u32.totalorder %s5709_s28, %s6574_s17 }
 0x100   : > { %p4770_p12 = scmp.ne.s32.totalorder %s5709_s28, %s4769_s19  ;;  %p4776_p11 = scmp.lt.u32.totalorder %s4774_s25, %s4769_s19 }
 0x101   : > { %p4778_p0 = scmp.lt.u32.totalorder %s4769_s19, %s5709_s28 }
 0x102   : > { %p4772_p13 = pnand %p4770_p12, %p5575_p10  ;;  %p4777_p1 = por %p4776_p11, %p4775_p9 }
 0x104   : > { %p4773_p2 = pneg %p4772_p13  ;;  %p4779_p5 = por %p4778_p0, %p4777_p1 }
 0x106   : > { %p4780_p6 = pnand %p4779_p5, %p4773_p2 }
 0x108   : > { %4783 = shalt.err (!%p4780_p6)
}
 0x109   : > { %s4784_s10 = scalar_lea.vmem %s5713_s1, 1024  ;;  %s5225_s24 = smov [#allocation21]  }
 0x10a   : > { %p4785_p4 = scmp.ne.s32.totalorder %s5713_s1, %s4784_s10  ;;  %s4789_s18 = sshll.u32 %s5225_s24, 4  ;;  %s4790_s18 = int_to_ptr.vmem [resolvable:$false] %s4789_s18 }
 0x10b   : > { %s4791_s27 = scalar_lea.vmem %s4790_s18, 2048  ;;  %p4792_p12 = scmp.lt.s32.totalorder %s5713_s1, %s4790_s18 }
 0x10c   : > { %p4787_p3 = pnand %p4785_p4, %p5575_p10  ;;  %p4793_p13 = scmp.lt.s32.totalorder %s4791_s27, %s4784_s10 }
 0x10e   : > { %p4788_p7 = pneg %p4787_p3  ;;  %p4794_p9 = por %p4793_p13, %p4792_p12 }
 0x110   : > { %p4795_p11 = pnand %p4794_p9, %p4788_p7 }
 0x112   : > { %4798 = shalt.err (!%p4795_p11)
}
 0x113   : > { %s5226_s0 = smov 256   ;;  %s5227_s19 = smov 16  }
 0x114   : > { %4344 = dma.hbm_to_vmem [thread:$0]  (!%p6569_p8), %s5709_s28, 1024, %s5713_s1, %s931_s16, %s5226_s0, %s5226_s0, %s5227_s19  }
 0x115   : > { %s5228_s2 = smov [#allocation3]   ;;  %s5229_s25 = smov [#allocation8]  }
 0x116   : > { %s669_s4 = sshll.u32 %s5228_s2, 4  ;;  %s696_s8 = sshll.u32 %s5229_s25, 4  ;;  %s670_s4 = int_to_ptr.vmem [resolvable:$true] %s669_s4  ;;  %s697_s8 = int_to_ptr.vmem [resolvable:$true] %s696_s8 }
 0x117   : > { %s6575_s24 = sld [smem:[#allocation60_spill]]  ;;  %p6577_p1 = scmp.ne.s32.totalorder %s6553_s3, 0 }
 0x11d   : > { %s6576_s18 = smov %s6575_s24  ;;  %s4799_s27 = scalar_lea.hbm %s6575_s24, 128 }
 0x11e   : > { %p4800_p2 = scmp.ne.s32.totalorder %s6576_s18, %s4799_s27  ;;  %p4806_p6 = scmp.lt.u32.totalorder %s4799_s27, %s6576_s18 }
 0x120   : > { %p4802_p0 = pnand %p4800_p2, %p6577_p1 }
 0x122   : > { %p4803_p5 = pneg %p4802_p0 }
 0x124   : > { %p4808_p4 = pnand %p4806_p6, %p4803_p5 }
 0x126   : > { %4811 = shalt.err (!%p4808_p4)
}
 0x127   : > { %s4812_s28 = scalar_lea.vmem %s670_s4, 128  ;;  %p4820_p13 = scmp.lt.s32.totalorder %s670_s4, %s670_s4 }
 0x128   : > { %p4813_p3 = scmp.ne.s32.totalorder %s670_s4, %s4812_s28  ;;  %p4821_p9 = scmp.lt.s32.totalorder %s4812_s28, %s4812_s28 }
 0x12a   : > { %p4815_p7 = pnand %p4813_p3, %p6577_p1  ;;  %p4822_p11 = por %p4821_p9, %p4820_p13 }
 0x12c   : > { %p4816_p12 = pneg %p4815_p7 }
 0x12e   : > { %p4823_p8 = pnand %p4822_p11, %p4816_p12 }
 0x130   : > { %4826 = shalt.err (!%p4823_p8)
}
 0x131   : > { %p6578_p2 = scmp.ne.s32.totalorder %s6550_s29, 0  ;;  %s6579_s1 = sld [smem:[#allocation63_spill]] }
 0x133   : > { %4301 = dma.hbm_to_vmem [thread:$0]  (!%p6578_p2), %s6576_s18, 128, %s670_s4, [#allocation4]  }
 0x137   : > { %s6580_s0 = smov %s6579_s1  ;;  %s4827_s19 = scalar_lea.hbm %s6579_s1, 16 }
 0x138   : > { %p4828_p0 = scmp.ne.s32.totalorder %s6580_s0, %s4827_s19  ;;  %p4834_p8 = scmp.lt.u32.totalorder %s4827_s19, %s6580_s0 }
 0x13a   : > { %p4830_p5 = pnand %p4828_p0, %p6577_p1 }
 0x13c   : > { %p4831_p6 = pneg %p4830_p5 }
 0x13e   : > { %p4836_p4 = pnand %p4834_p8, %p4831_p6 }
 0x140   : > { %4839 = shalt.err (!%p4836_p4)
}
 0x141   : > { %s4840_s24 = scalar_lea.vmem %s697_s8, 16  ;;  %s4847_s4 = scalar_lea.vmem %s697_s8, 32 }
 0x142   : > { %p4841_p3 = scmp.ne.s32.totalorder %s697_s8, %s4840_s24  ;;  %p4848_p13 = scmp.lt.s32.totalorder %s697_s8, %s697_s8 }
 0x143   : > { %p4849_p9 = scmp.lt.s32.totalorder %s4847_s4, %s4840_s24 }
 0x144   : > { %p4843_p7 = pnand %p4841_p3, %p6577_p1 }
 0x145   : > { %p4850_p11 = por %p4849_p9, %p4848_p13 }
 0x146   : > { %p4844_p12 = pneg %p4843_p7 }
 0x148   : > { %p4851_p10 = pnand %p4850_p11, %p4844_p12 }
 0x14a   : > { %4854 = shalt.err (!%p4851_p10)
}
 0x14b   : > { %4307 = dma.hbm_to_vmem [thread:$0]  (!%p6578_p2), %s6580_s0, 16, %s697_s8, [#allocation7]  }
 0x14c   : > { %s5230_s12 = smov [#allocation26]   ;;  %s5231_s17 = smov [#allocation27]  }
 0x14d   : > { %s720_s14 = sshll.u32 %s5230_s12, 4  ;;  %s734_s7 = sshll.u32 %s5231_s17, 4  ;;  %s721_s14 = int_to_ptr.vmem [resolvable:$true] %s720_s14  ;;  %s735_s7 = int_to_ptr.vmem [resolvable:$true] %s734_s7 }
 0x14e   : > { %s6581_s20 = sld [smem:[#allocation78_spill]] }
 0x154   : > { %s4855_s2 = scalar_lea.hbm %s6581_s20, 16 }
 0x155   : > { %p4856_p10 = scmp.ne.s32.totalorder %s6581_s20, %s4855_s2  ;;  %p4862_p6 = scmp.lt.u32.totalorder %s4855_s2, %s6581_s20 }
 0x157   : > { %p4858_p0 = pnand %p4856_p10, %p6577_p1 }
 0x159   : > { %p4859_p5 = pneg %p4858_p0 }
 0x15b   : > { %p4864_p8 = pnand %p4862_p6, %p4859_p5 }
 0x15d   : > { %4867 = shalt.err (!%p4864_p8)
}
 0x15e   : > { %s4868_s8 = scalar_lea.vmem %s721_s14, 16  ;;  %s4875_s4 = scalar_lea.vmem %s721_s14, 32 }
 0x15f   : > { %p4869_p4 = scmp.ne.s32.totalorder %s721_s14, %s4868_s8  ;;  %p4876_p12 = scmp.lt.s32.totalorder %s721_s14, %s721_s14 }
 0x160   : > { %p4877_p13 = scmp.lt.s32.totalorder %s4875_s4, %s4868_s8 }
 0x161   : > { %p4871_p3 = pnand %p4869_p4, %p6577_p1 }
 0x162   : > { %p4878_p9 = por %p4877_p13, %p4876_p12 }
 0x163   : > { %p4872_p7 = pneg %p4871_p3 }
 0x165   : > { %p4879_p11 = pnand %p4878_p9, %p4872_p7 }
 0x167   : > { %4882 = shalt.err (!%p4879_p11)
}
 0x168   : > { %4313 = dma.hbm_to_vmem [thread:$0]  (!%p6578_p2), %s6581_s20, 16, %s721_s14, [#allocation25]  }
 0x169   : > { %s6582_s22 = sld [smem:[#allocation80_spill]] }
 0x16f   : > { %s4883_s1 = scalar_lea.hbm %s6582_s22, 16 }
 0x170   : > { %p4884_p10 = scmp.ne.s32.totalorder %s6582_s22, %s4883_s1  ;;  %p4890_p6 = scmp.lt.u32.totalorder %s4883_s1, %s6582_s22 }
 0x172   : > { %p4886_p0 = pnand %p4884_p10, %p6577_p1 }
 0x174   : > { %p4887_p5 = pneg %p4886_p0 }
 0x176   : > { %p4892_p8 = pnand %p4890_p6, %p4887_p5 }
 0x178   : > { %4895 = shalt.err (!%p4892_p8)
}
 0x179   : > { %s4896_s10 = scalar_lea.vmem %s735_s7, 16  ;;  %s4903_s14 = scalar_lea.vmem %s735_s7, 32 }
 0x17a   : > { %p4897_p4 = scmp.ne.s32.totalorder %s735_s7, %s4896_s10  ;;  %p4904_p12 = scmp.lt.s32.totalorder %s735_s7, %s735_s7 }
 0x17b   : > { %p4905_p13 = scmp.lt.s32.totalorder %s4903_s14, %s4896_s10 }
 0x17c   : > { %p4899_p3 = pnand %p4897_p4, %p6577_p1 }
 0x17d   : > { %p4906_p9 = por %p4905_p13, %p4904_p12 }
 0x17e   : > { %p4900_p7 = pneg %p4899_p3 }
 0x180   : > { %p4907_p11 = pnand %p4906_p9, %p4900_p7 }
 0x182   : > { %4910 = shalt.err (!%p4907_p11)
}
 0x183   : > { %4316 = dma.hbm_to_vmem [thread:$0]  (!%p6578_p2), %s6582_s22, 16, %s735_s7, [#allocation28]  }
 0x184   : > { %s6583_s9 = sld [smem:[#allocation67_spill]]  ;;  %s798_s28 = scalar_lea.vmem [#allocation11], %s5542_s15 }
 0x185   : > { %s805_s12 = sshll.u32 %s798_s28, 4  ;;  %p6584_p10 = scmp.ne.s32.totalorder %s6563_s21, 0  ;;  %s806_s12 = int_to_ptr.vmem [resolvable:$true] %s805_s12 }
 0x18a   : > { %s5815_s3 = scalar_lea.hbm %s6583_s9, %s5545_s13  ;;  %s4916_s7 = scalar_lea.hbm %s6583_s9, 32 }
 0x18b   : > { %s4911_s29 = scalar_lea.hbm %s5815_s3, 16  ;;  %p4917_p2 = scmp.lt.u32.totalorder %s5815_s3, %s6583_s9 }
 0x18c   : > { %p4912_p1 = scmp.ne.s32.totalorder %s5815_s3, %s4911_s29  ;;  %p4918_p6 = scmp.lt.u32.totalorder %s4916_s7, %s4911_s29 }
 0x18d   : > { %p4920_p4 = scmp.lt.u32.totalorder %s4911_s29, %s5815_s3 }
 0x18e   : > { %p4914_p0 = pnand %p4912_p1, %p6584_p10  ;;  %p4919_p8 = por %p4918_p6, %p4917_p2 }
 0x190   : > { %p4915_p5 = pneg %p4914_p0  ;;  %p4921_p3 = por %p4920_p4, %p4919_p8 }
 0x192   : > { %p4922_p7 = pnand %p4921_p3, %p4915_p5 }
 0x194   : > { %4925 = shalt.err (!%p4922_p7)
}
 0x195   : > { %s4926_s25 = scalar_lea.vmem %s806_s12, 16  ;;  %s5232_s26 = smov [#allocation11]  }
 0x196   : > { %p4927_p12 = scmp.ne.s32.totalorder %s806_s12, %s4926_s25  ;;  %s4931_s10 = sshll.u32 %s5232_s26, 4  ;;  %s4932_s10 = int_to_ptr.vmem [resolvable:$false] %s4931_s10 }
 0x197   : > { %s4933_s14 = scalar_lea.vmem %s4932_s10, 32  ;;  %p4934_p11 = scmp.lt.s32.totalorder %s806_s12, %s4932_s10 }
 0x198   : > { %p4929_p13 = pnand %p4927_p12, %p6584_p10  ;;  %p4935_p1 = scmp.lt.s32.totalorder %s4933_s14, %s4926_s25 }
 0x19a   : > { %p4930_p9 = pneg %p4929_p13  ;;  %p4936_p0 = por %p4935_p1, %p4934_p11 }
 0x19c   : > { %p4937_p2 = pnand %p4936_p0, %p4930_p9 }
 0x19e   : > { %4940 = shalt.err (!%p4937_p2)
}
 0x19f   : > { %p6585_p6 = scmp.ne.s32.totalorder %s6562_s30, 0  ;;  %s6586_s24 = scalar_lea.sflag [#allocation10], %s5532_s23 }
 0x1a0   : > { %s6587_s11 = sld [smem:[#allocation69_spill]]  ;;  %s836_s28 = scalar_lea.vmem [#allocation14], %s5542_s15 }
 0x1a1   : > { %4323 = dma.hbm_to_vmem [thread:$0]  (!%p6585_p6), %s5815_s3, 16, %s806_s12, %s6586_s24  }
 0x1a2   : > { %s843_s29 = sshll.u32 %s836_s28, 4  ;;  %s844_s29 = int_to_ptr.vmem [resolvable:$true] %s843_s29 }
 0x1a6   : > { %s5841_s27 = scalar_lea.hbm %s6587_s11, %s5545_s13  ;;  %s4946_s3 = scalar_lea.hbm %s6587_s11, 32 }
 0x1a7   : > { %s4941_s17 = scalar_lea.hbm %s5841_s27, 16  ;;  %p4947_p3 = scmp.lt.u32.totalorder %s5841_s27, %s6587_s11 }
 0x1a8   : > { %p4942_p5 = scmp.ne.s32.totalorder %s5841_s27, %s4941_s17  ;;  %p4948_p7 = scmp.lt.u32.totalorder %s4946_s3, %s4941_s17 }
 0x1a9   : > { %p4950_p13 = scmp.lt.u32.totalorder %s4941_s17, %s5841_s27 }
 0x1aa   : > { %p4944_p8 = pnand %p4942_p5, %p6584_p10  ;;  %p4949_p12 = por %p4948_p7, %p4947_p3 }
 0x1ac   : > { %p4945_p4 = pneg %p4944_p8  ;;  %p4951_p9 = por %p4950_p13, %p4949_p12 }
 0x1ae   : > { %p4952_p11 = pnand %p4951_p9, %p4945_p4 }
 0x1b0   : > { %4955 = shalt.err (!%p4952_p11)
}
 0x1b1   : > { %s4956_s2 = scalar_lea.vmem %s844_s29, 16  ;;  %s5233_s25 = smov [#allocation14]  }
 0x1b2   : > { %p4957_p1 = scmp.ne.s32.totalorder %s844_s29, %s4956_s2  ;;  %s4961_s26 = sshll.u32 %s5233_s25, 4  ;;  %s4962_s26 = int_to_ptr.vmem [resolvable:$false] %s4961_s26 }
 0x1b3   : > { %s4963_s10 = scalar_lea.vmem %s4962_s26, 32  ;;  %p4964_p5 = scmp.lt.s32.totalorder %s844_s29, %s4962_s26 }
 0x1b4   : > { %p4959_p0 = pnand %p4957_p1, %p6584_p10  ;;  %p4965_p8 = scmp.lt.s32.totalorder %s4963_s10, %s4956_s2 }
 0x1b6   : > { %p4960_p2 = pneg %p4959_p0  ;;  %p4966_p6 = por %p4965_p8, %p4964_p5 }
 0x1b8   : > { %p4967_p3 = pnand %p4966_p6, %p4960_p2 }
 0x1ba   : > { %4970 = shalt.err (!%p4967_p3)
}
 0x1bb   : > { %p6588_p7 = scmp.ne.s32.totalorder %s6562_s30, 0  ;;  %s6589_s14 = scalar_lea.sflag [#allocation13], %s5532_s23 }
 0x1bc   : > { %s6590_s4 = sld [smem:[#allocation71_spill]]  ;;  %s870_s1 = scalar_lea.vmem [#allocation17], %s5542_s15 }
 0x1bd   : > { %4329 = dma.hbm_to_vmem [thread:$0]  (!%p6588_p7), %s5841_s27, 16, %s844_s29, %s6589_s14  }
 0x1be   : > { %s877_s7 = sshll.u32 %s870_s1, 4  ;;  %s878_s7 = int_to_ptr.vmem [resolvable:$true] %s877_s7 }
 0x1c2   : > { %s6591_s28 = smov %s6590_s4  ;;  %s5867_s17 = scalar_lea.hbm %s6590_s4, %s5545_s13 }
 0x1c3   : > { %s4971_s3 = scalar_lea.hbm %s5867_s17, 16  ;;  %s4976_s27 = scalar_lea.hbm %s6591_s28, 32 }
 0x1c4   : > { %p4972_p6 = scmp.ne.s32.totalorder %s5867_s17, %s4971_s3  ;;  %p4977_p13 = scmp.lt.u32.totalorder %s5867_s17, %s6591_s28 }
 0x1c5   : > { %p4978_p9 = scmp.lt.u32.totalorder %s4976_s27, %s4971_s3  ;;  %p4980_p1 = scmp.lt.u32.totalorder %s4971_s3, %s5867_s17 }
 0x1c6   : > { %p4974_p4 = pnand %p4972_p6, %p6584_p10 }
 0x1c7   : > { %p4979_p11 = por %p4978_p9, %p4977_p13 }
 0x1c8   : > { %p4975_p12 = pneg %p4974_p4 }
 0x1c9   : > { %p4981_p0 = por %p4980_p1, %p4979_p11 }
 0x1cb   : > { %p4982_p2 = pnand %p4981_p0, %p4975_p12 }
 0x1cd   : > { %4985 = shalt.err (!%p4982_p2)
}
 0x1ce   : > { %s4986_s25 = scalar_lea.vmem %s878_s7, 16  ;;  %s5234_s26 = smov [#allocation17]  }
 0x1cf   : > { %p4987_p5 = scmp.ne.s32.totalorder %s878_s7, %s4986_s25  ;;  %s4991_s10 = sshll.u32 %s5234_s26, 4  ;;  %s4992_s10 = int_to_ptr.vmem [resolvable:$false] %s4991_s10 }
 0x1d0   : > { %s4993_s14 = scalar_lea.vmem %s4992_s10, 32  ;;  %p4994_p6 = scmp.lt.s32.totalorder %s878_s7, %s4992_s10 }
 0x1d1   : > { %p4989_p8 = pnand %p4987_p5, %p6584_p10  ;;  %p4995_p4 = scmp.lt.s32.totalorder %s4993_s14, %s4986_s25 }
 0x1d3   : > { %p4990_p3 = pneg %p4989_p8  ;;  %p4996_p7 = por %p4995_p4, %p4994_p6 }
 0x1d5   : > { %p4997_p9 = pnand %p4996_p7, %p4990_p3 }
 0x1d7   : > { %5000 = shalt.err (!%p4997_p9)
}
 0x1d8   : > { %p6592_p13 = scmp.ne.s32.totalorder %s6562_s30, 0  ;;  %s6593_s24 = scalar_lea.sflag [#allocation16], %s5532_s23 }
 0x1d9   : > { %s6594_s1 = sld [smem:[#allocation74_spill]]  ;;  %s916_s19 = scalar_lea.vmem [#allocation20], %s5542_s15 }
 0x1da   : > { %4335 = dma.hbm_to_vmem [thread:$0]  (!%p6592_p13), %s5867_s17, 16, %s878_s7, %s6593_s24  }
 0x1db   : > { %s923_s27 = sshll.u32 %s916_s19, 4  ;;  %s3523_s29 = sshll.u32 %s5542_s15, 1  ;;  %s924_s27 = int_to_ptr.vmem [resolvable:$true] %s923_s27 }
 0x1df   : > { %s6595_s3 = smov %s6594_s1  ;;  %s5893_s12 = scalar_lea.hbm %s6594_s1, %s5545_s13 }
 0x1e0   : > { %s5001_s2 = scalar_lea.hbm %s5893_s12, 16  ;;  %s5006_s7 = scalar_lea.hbm %s6595_s3, 32 }
 0x1e1   : > { %p5002_p7 = scmp.ne.s32.totalorder %s5893_s12, %s5001_s2  ;;  %p5007_p1 = scmp.lt.u32.totalorder %s5893_s12, %s6595_s3 }
 0x1e2   : > { %p5008_p0 = scmp.lt.u32.totalorder %s5006_s7, %s5001_s2  ;;  %p5010_p5 = scmp.lt.u32.totalorder %s5001_s2, %s5893_s12 }
 0x1e3   : > { %p5004_p12 = pnand %p5002_p7, %p6584_p10 }
 0x1e4   : > { %p5009_p2 = por %p5008_p0, %p5007_p1 }
 0x1e5   : > { %p5005_p11 = pneg %p5004_p12 }
 0x1e6   : > { %p5011_p8 = por %p5010_p5, %p5009_p2 }
 0x1e8   : > { %p5012_p3 = pnand %p5011_p8, %p5005_p11 }
 0x1ea   : > { %5015 = shalt.err (!%p5012_p3)
}
 0x1eb   : > { %s5016_s10 = scalar_lea.vmem %s924_s27, 16  ;;  %s5235_s14 = smov [#allocation20]  }
 0x1ec   : > { %p5017_p6 = scmp.ne.s32.totalorder %s924_s27, %s5016_s10  ;;  %s5021_s24 = sshll.u32 %s5235_s14, 4  ;;  %s5022_s24 = int_to_ptr.vmem [resolvable:$false] %s5021_s24 }
 0x1ed   : > { %s5023_s8 = scalar_lea.vmem %s5022_s24, 32  ;;  %p5024_p7 = scmp.lt.s32.totalorder %s924_s27, %s5022_s24 }
 0x1ee   : > { %p5019_p4 = pnand %p5017_p6, %p6584_p10  ;;  %p5025_p12 = scmp.lt.s32.totalorder %s5023_s8, %s5016_s10 }
 0x1f0   : > { %p5020_p9 = pneg %p5019_p4  ;;  %p5026_p13 = por %p5025_p12, %p5024_p7 }
 0x1f2   : > { %p5027_p0 = pnand %p5026_p13, %p5020_p9 }
 0x1f4   : > { %5030 = shalt.err (!%p5027_p0)
}
 0x1f5   : > { %p6596_p1 = scmp.ne.s32.totalorder %s6562_s30, 0  ;;  %s6597_s4 = scalar_lea.sflag [#allocation19], %s5532_s23 }
 0x1f6   : > { %s3589_s1 = sshll.u32 %s5207_s6, 5  ;;  %s6598_s25 = sld [smem:[#allocation76_spill]] }
 0x1f7   : > { %4341 = dma.hbm_to_vmem [thread:$0]  (!%p6596_p1), %s5893_s12, 16, %s924_s27, %s6597_s4  }
 0x1f8   : > { %s955_s26 = scalar_lea.vmem [#allocation23], %s3523_s29 }
 0x1f9   : > { %s963_s13 = sshll.u32 %s955_s26, 4  ;;  %s964_s13 = int_to_ptr.vmem [resolvable:$true] %s963_s13 }
 0x1fc   : > { %s6599_s17 = smov %s6598_s25  ;;  %s5920_s7 = scalar_lea.hbm %s6598_s25, %s3589_s1 }
 0x1fd   : > { %s5031_s10 = scalar_lea.hbm %s5920_s7, 32  ;;  %s5036_s14 = scalar_lea.hbm %s6599_s17, 64 }
 0x1fe   : > { %p5032_p13 = scmp.ne.s32.totalorder %s5920_s7, %s5031_s10  ;;  %p5037_p5 = scmp.lt.u32.totalorder %s5920_s7, %s6599_s17 }
 0x1ff   : > { %p5038_p8 = scmp.lt.u32.totalorder %s5036_s14, %s5031_s10  ;;  %p5040_p6 = scmp.lt.u32.totalorder %s5031_s10, %s5920_s7 }
 0x200   : > { %p5034_p11 = pnand %p5032_p13, %p6584_p10 }
 0x201   : > { %p5039_p3 = por %p5038_p8, %p5037_p5 }
 0x202   : > { %p5035_p2 = pneg %p5034_p11 }
 0x203   : > { %p5041_p4 = por %p5040_p6, %p5039_p3 }
 0x205   : > { %p5042_p9 = pnand %p5041_p4, %p5035_p2 }
 0x207   : > { %5045 = shalt.err (!%p5042_p9)
}
 0x208   : > { %s5046_s15 = scalar_lea.vmem %s964_s13, 32  ;;  %s5236_s29 = smov [#allocation23]  }
 0x209   : > { %p5047_p7 = scmp.ne.s32.totalorder %s964_s13, %s5046_s15  ;;  %s5051_s4 = sshll.u32 %s5236_s29, 4  ;;  %s5052_s4 = int_to_ptr.vmem [resolvable:$false] %s5051_s4 }
 0x20a   : > { %s5053_s1 = scalar_lea.vmem %s5052_s4, 64  ;;  %p5054_p13 = scmp.lt.s32.totalorder %s964_s13, %s5052_s4 }
 0x20b   : > { %p5049_p12 = pnand %p5047_p7, %p6584_p10  ;;  %p5055_p11 = scmp.lt.s32.totalorder %s5053_s1, %s5046_s15 }
 0x20d   : > { %p5050_p0 = pneg %p5049_p12  ;;  %p5056_p1 = por %p5055_p11, %p5054_p13 }
 0x20f   : > { %p5057_p5 = pnand %p5056_p1, %p5050_p0 }
 0x211   : > { %5060 = shalt.err (!%p5057_p5)
}
 0x212   : > { %p6600_p8 = scmp.ne.s32.totalorder %s6562_s30, 0  ;;  %s6601_s19 = sld [smem:[#allocation53_spill]] }
 0x214   : > { %4347 = dma.hbm_to_vmem [thread:$0]  (!%p6600_p8), %s5920_s7, 32, %s964_s13, %s931_s16  }
 0x218   : > { %p6602_p2 = scmp.ne.s32.totalorder %s6601_s19, 0 }
 0x219   : > { %s6603_s21 = sld [smem:[#allocation49_spill]] (!%p6602_p2) }
 0x21a   : > { %972 = sbr.rel (%p6602_p2) target bundleno = 5283 (0x14a3), region = 112 }
 0x21f   : > { %p6604_p10 = scmp.eq.s32.totalorder (!%p6602_p2), %s6603_s21, 0 }
 0x221   : > { %5134 = dma.done.wait (%p6604_p10), [#allocation4], 128   ;;  %p6605_p3 = pmov %p6604_p10 }
 0x223   : > { %5136 = vsyncadd (%p6605_p3), [#allocation4], 4294967168  ;;  %p6606_p6 = pmov %p6605_p3 }
 0x224   : > { %p6607_p1 = pmov %p6605_p3 }
 0x225   : > { %5138 = dma.done.wait (%p6606_p6), [#allocation7], 2064  }
 0x226   : > { %5140 = vsyncadd (%p6607_p1), [#allocation7], 4294965232  ;;  %s6608_s30 = sld [smem:[#allocation50_spill]]  ;;  %s986_s23 = sand.u32 1, %s6603_s21  }
 0x227   : > { %s5955_s16 = sand.u32 1, %s5191_s5   ;;  %s987_s2 = scalar_lea.sflag [#allocation10], %s986_s23 }
 0x22c   : > { %p6609_p4 = scmp.ne.s32.totalorder %s6608_s30, 0 }
 0x22e   : > { %5142 = dma.done.wait (%p6609_p4), %s987_s2, 32  }
 0x22f   : > { %5144 = vsyncadd (%p6609_p4), %s987_s2, 4294967264  ;;  %s3530_s7 = sshll.u32 %s5955_s16, 7  ;;  %s1003_s13 = scalar_lea.sflag [#allocation13], %s986_s23 }
 0x230   : > { %s5964_s10 = scalar_lea.vmem [#allocation12], %s3530_s7 }
 0x231   : > { %5146 = dma.done.wait (%p6609_p4), %s1003_s13, 2064  }
 0x232   : > { %5148 = vsyncadd (%p6609_p4), %s1003_s13, 4294965232  ;;  %s1020_s27 = scalar_lea.sflag [#allocation16], %s986_s23 }
 0x233   : > { %5150 = dma.done.wait (%p6609_p4), %s1020_s27, 32  }
 0x234   : > { %5152 = vsyncadd (%p6609_p4), %s1020_s27, 4294967264  ;;  %s1036_s8 = scalar_lea.sflag [#allocation19], %s986_s23  ;;  %s5977_s15 = scalar_lea.vmem [#allocation18], %s3530_s7 }
 0x235   : > { %5154 = dma.done.wait (%p6609_p4), %s1036_s8, 2064  }
 0x236   : > { %5156 = vsyncadd (%p6609_p4), %s1036_s8, 4294965232  ;;  %s3532_s29 = sshll.u32 %s5955_s16, 6  ;;  %s1053_s1 = scalar_lea.sflag [#allocation22], %s986_s23 }
 0x237   : > { %s5985_s19 = scalar_lea.vmem [#allocation21], %s3532_s29 }
 0x238   : > { %5158 = dma.done.wait (%p6609_p4), %s1053_s1, 1056  }
 0x239   : > { %5160 = vsyncadd (%p6609_p4), %s1053_s1, 4294966240  ;;  %s3533_s2 = sshll.u32 %s5955_s16, 1  ;;  %p6610_p9 = pmov %p6607_p1 }
 0x23a   : > { %s5992_s7 = scalar_lea.vmem [#allocation23], %s3533_s2 }
 0x23b   : > { %5162 = dma.done.wait (%p6610_p9), [#allocation25], 2064   ;;  %p6611_p7 = pmov %p6607_p1 }
 0x23c   : > { %p6612_p12 = pmov %p6607_p1 }
 0x23d   : > { %5164 = vsyncadd (%p6611_p7), [#allocation25], 4294965232 }
 0x23e   : > { %5166 = dma.done.wait (%p6612_p12), [#allocation28], 16   ;;  %p6613_p0 = pmov %p6607_p1 }
 0x23f   : > { %s6614_s23 = sld [smem:[#allocation41_spill]]  ;;  %s6615_s13 = sld [smem:[#allocation45_spill]] }
 0x240   : > { %5168 = vsyncadd (%p6613_p0), [#allocation28], 4294967280  ;;  %s6616_s30 = sld [smem:[#allocation44_spill]]  ;;  %s6617_s26 = sld [smem:[#allocation58_spill]] }
 0x241   : > { %s6619_s3 = sld [smem:[#allocation64_spill]]  ;;  %s6620_s20 = sld [smem:[#allocation66_spill]] }
 0x242   : > { %s6621_s12 = sld [smem:[#allocation73_spill]] }
 0x245   : > { %s6501_s27 = sand.u32 1, %s6614_s23   ;;  %s3538_s8 = sshll.u32 %s6615_s13, 1 }
 0x246   : > { %s6006_s29 = sshll.u32 %s6501_s27, 1  ;;  %p1204_p13 = scmp.lt.s32.totalorder %s3538_s8, 3 }
 0x247   : > { %p1216_p11 = scmp.lt.s32.totalorder %s6616_s30, 1  ;;  %s6618_s23 = sld [smem:[#allocation59_spill]] }
 0x248   : > { %s6662_s8 = smov (!%p1204_p13, %s3538_s8), 3  ;;  %s1202_s4 = scalar_lea.vmem [#allocation29], %s6006_s29 }
 0x249   : > { %s6010_s1 = scalar_select %p1216_p11, %s6616_s30, 1 }
 0x24a   : > { %s3539_s21 = sshll.u32 %s6662_s8, 3  ;;  %s3590_s2 = sshll.u32 %s6662_s8, 4 }
 0x24b   : > { %s1207_s24 = scalar_lea.vmem %s6617_s26, %s3539_s21  ;;  %s1218_s9 = scalar_lea.vmem %s6619_s3, %s6010_s1 }
 0x24c   : > { %s3591_s11 = sshll.u32 %s6010_s1, 7  ;;  %s3592_s8 = sshll.u32 %s6010_s1, 5 }
 0x24d   : > { %s6018_s27 = scalar_lea.vmem %s6618_s23, %s3590_s2  ;;  %s6028_s22 = scalar_lea.vmem %s6620_s20, %s3591_s11 }
 0x24e   : > { %s6034_s26 = scalar_lea.vmem %s6621_s12, %s3592_s8  ;;  %p3547_p5 = scmp.ne.s32.totalorder %s6616_s30, 0 }
 0x24f   : > { %v1236_v0 = vld [vmem:[#allocation3] sm:$0xff] (!%p3547_p5)  ;;  %v1234_v1 = vld [vmem:[%s1207_s24] sm:$0xff] (!%p3547_p5)  ;;  %vm1244_vm0 = vcmask (!%p3547_p5), 64512   ;;  %v1235_v2 = vld [vmem:[%s1207_s24 + $0x8] sm:$0xff] (!%p3547_p5)  ;;  %s6622_s6 = sld [smem:[#allocation61_spill]] (!%p3547_p5) }
 0x250   : > { %1233 = sbr.rel (%p3547_p5) target bundleno = 1073 (0x431), region = 180  ;;  %3738 = vmatprep.subr.mxu0 (!%p3547_p5), %v1236_v0  ;;  %3740 = vmatprep.mubr.msk.f32.mxu0 (!%p3547_p5), %vm1244_vm0, %v1234_v1  ;;  %v1380_v3 = vld [vmem:[#allocation6] sm:$0xff] (!%p3547_p5)  ;;  %v1381_v4 = vld [vmem:[#allocation6 + $0x8] sm:$0xff] (!%p3547_p5)  ;;  %v1382_v5 = vld [vmem:[#allocation6 + $0x10] sm:$0xff] (!%p3547_p5) }
 0x251   : > { %3739 = vmatpush3.msra.mxu0 (!%p3547_p5), %v1236_v0  ;;  %v4018_v6 = vpack.c.bf16 (!%p3547_p5), %v1381_v4, %v1380_v3  ;;  %v1383_v7 = vld [vmem:[#allocation6 + $0x18] sm:$0xff] (!%p3547_p5)  ;;  %v1384_v9 = vld [vmem:[#allocation6 + $0x20] sm:$0xff] (!%p3547_p5)  ;;  %v1385_v10 = vld [vmem:[#allocation6 + $0x28] sm:$0xff] (!%p3547_p5) }
 0x252   : > { %3741 = vmatmul.mubr.msk.f32.vlgmr.msra.gmra.mrb[0].mxu0 (!%p3547_p5), %vm1244_vm0, %v1235_v2  ;;  %v4022_v8 = vpack.c.bf16 (!%p3547_p5), %v1383_v7, %v1382_v5  ;;  %v4026_v11 = vpack.c.bf16 (!%p3547_p5), %v1385_v10, %v1384_v9  ;;  %v1386_v12 = vld [vmem:[#allocation6 + $0x30] sm:$0xff] (!%p3547_p5)  ;;  %v1387_v13 = vld [vmem:[#allocation6 + $0x38] sm:$0xff] (!%p3547_p5)  ;;  %v1388_v15 = vld [vmem:[#allocation6 + $0x40] sm:$0xff] (!%p3547_p5)  ;;  %v5237_v7 = vmov (!%p3547_p5), 1.0  }
 0x253   : > { %4019 = vmatprep.subr.bf16.mxu1 (!%p3547_p5), %v4018_v6  ;;  %v4030_v14 = vpack.c.bf16 (!%p3547_p5), %v1387_v13, %v1386_v12  ;;  %v1389_v16 = vld [vmem:[#allocation6 + $0x48] sm:$0xff] (!%p3547_p5)  ;;  %v1390_v18 = vld [vmem:[#allocation6 + $0x50] sm:$0xff] (!%p3547_p5)  ;;  %v1391_v19 = vld [vmem:[#allocation6 + $0x58] sm:$0xff] (!%p3547_p5) }
 0x254   : > { %4021 = vmatpush3.bf16.msra.mxu1 (!%p3547_p5), %v4018_v6  ;;  %v4034_v17 = vpack.c.bf16 (!%p3547_p5), %v1389_v16, %v1388_v15  ;;  %v4038_v20 = vpack.c.bf16 (!%p3547_p5), %v1391_v19, %v1390_v18  ;;  %v1392_v21 = vld [vmem:[#allocation6 + $0x60] sm:$0xff] (!%p3547_p5)  ;;  %v1393_v22 = vld [vmem:[#allocation6 + $0x68] sm:$0xff] (!%p3547_p5)  ;;  %v1394_v24 = vld [vmem:[#allocation6 + $0x70] sm:$0xff] (!%p3547_p5) }
 0x255   : > { %4023 = vmatprep.subr.bf16.mxu1 (!%p3547_p5), %v4022_v8  ;;  %v4042_v23 = vpack.c.bf16 (!%p3547_p5), %v1393_v22, %v1392_v21  ;;  %v1395_v25 = vld [vmem:[#allocation6 + $0x78] sm:$0xff] (!%p3547_p5)  ;;  %v3548_v27 = vld [vmem:[%s6622_s6] ss:$0 sm:$0xff] (!%p3547_p5)  ;;  %v3551_v19 = vld [vmem:[#allocation8] ss:$0 sm:$0xff] (!%p3547_p5) }
 0x256   : > { %v4046_v26 = vpack.c.bf16 (!%p3547_p5), %v1395_v25, %v1394_v24 }
 0x258   : > { %4025 = vmatpush3.bf16.msra.mxu1 %v4022_v8 }
 0x259   : > { %4027 = vmatprep.subr.bf16.mxu1 %v4026_v11 }
 0x25c   : > { %4029 = vmatpush3.bf16.msra.mxu1 %v4026_v11 }
 0x25d   : > { %4031 = vmatprep.subr.bf16.mxu1 %v4030_v14 }
 0x260   : > { %4033 = vmatpush3.bf16.msra.mxu1 %v4030_v14 }
 0x261   : > { %4035 = vmatprep.subr.bf16.mxu1 %v4034_v17 }
 0x264   : > { %4037 = vmatpush3.bf16.msra.mxu1 %v4034_v17 }
 0x265   : > { %4039 = vmatprep.subr.bf16.mxu1 %v4038_v20 }
 0x268   : > { %4041 = vmatpush3.bf16.msra.mxu1 %v4038_v20 }
 0x269   : > { %4043 = vmatprep.subr.bf16.mxu1 %v4042_v23 }
 0x26c   : > { %4045 = vmatpush3.bf16.msra.mxu1 %v4042_v23 }
 0x26d   : > { %4047 = vmatprep.subr.bf16.mxu1 %v4046_v26 }
 0x270   : > { %4049 = vmatpush3.bf16.msra.mxu1 %v4046_v26 }
 0x325   : > { %v3742_v28 = vpop.f32.mrb[0].mxu0 }
 0x326   : > { %v1323_v29 = vadd.f32 %v3742_v28, %v3548_v27  ;;  %v1317_v30 = vpop.f32.mrb[1].mxu0 }
 0x327   : > { %v1318_v31 = vadd.f32 %v3548_v27, %v1317_v30 }
 0x328   : > { %v1329_v32 = vmul.f32 0.70710677, %v1323_v29  ;;  %v1327_v16 = vmul.f32 0.5, %v1323_v29 }
 0x329   : > { %v1328_v33 = vmul.f32 0.70710677, %v1318_v31  ;;  %v1326_v14 = vmul.f32 0.5, %v1318_v31 }
 0x32a   : > { %v1335_v34 = vand.u32 2147483647, %v1329_v32  ;;  %vm1331_vm1 = vcmp.lt.f32.partialorder %v1329_v32, 0.0 }
 0x32b   : > { %v1334_v35 = vand.u32 2147483647, %v1328_v33  ;;  %vm1330_vm2 = vcmp.lt.f32.partialorder %v1328_v33, 0.0  ;;  %v1333_v8 = vsel %vm1331_vm1, -1.0, %v5237_v7 }
 0x32c   : > { %v1337_v36 = vmul.f32 0.3275911, %v1335_v34  ;;  %v1363_v40 = vsub.f32 0.0, %v1335_v34  ;;  %v1332_v10 = vsel %vm1330_vm2, -1.0, %v5237_v7 }
 0x32d   : > { %v1336_v37 = vmul.f32 0.3275911, %v1334_v35  ;;  %v1362_v41 = vsub.f32 0.0, %v1334_v35 }
 0x32e   : > { %v1339_v38 = vadd.f32 1.0, %v1337_v36  ;;  %v1365_v43 = vmul.f32 %v1363_v40, %v1335_v34 }
 0x32f   : > { %v1338_v39 = vadd.f32 1.0, %v1336_v37  ;;  %v1364_v45 = vmul.f32 %v1362_v41, %v1334_v35 }
 0x330   : > { %4473 = vrcp.f32 %v1339_v38  ;;  %v1368_v49 = vmul.f32 1.442695, %v1365_v43 }
 0x331   : > { %4475 = vrcp.f32 %v1338_v39  ;;  %v1366_v51 = vmul.f32 1.442695, %v1364_v45 }
 0x332   : > { %4477 = vpow2.f32 %v1368_v49 }
 0x333   : > { %4479 = vpow2.f32 %v1366_v51 }
 0x33a   : > { %v4474_v42 = vpop.eup %4473 }
 0x33b   : > { %v4476_v44 = vpop.eup %4475  ;;  %v1345_v46 = vmul.f32 1.0614054, %v4474_v42 }
 0x33c   : > { %v1344_v47 = vmul.f32 1.0614054, %v4476_v44  ;;  %v4478_v1 = vpop.eup %4477 }
 0x33d   : > { %v1347_v48 = vadd.f32 -1.4531521, %v1345_v46  ;;  %v4480_v3 = vpop.eup %4479 }
 0x33e   : > { %v1346_v50 = vadd.f32 -1.4531521, %v1344_v47 }
 0x33f   : > { %v1349_v52 = vmul.f32 %v4474_v42, %v1347_v48 }
 0x340   : > { %v1348_v53 = vmul.f32 %v4476_v44, %v1346_v50 }
 0x341   : > { %v1351_v54 = vadd.f32 1.4214138, %v1349_v52 }
 0x342   : > { %v1350_v55 = vadd.f32 1.4214138, %v1348_v53 }
 0x343   : > { %v1353_v56 = vmul.f32 %v4474_v42, %v1351_v54 }
 0x344   : > { %v1352_v57 = vmul.f32 %v4476_v44, %v1350_v55 }
 0x345   : > { %v1355_v58 = vadd.f32 -0.28449672, %v1353_v56 }
 0x346   : > { %v1354_v59 = vadd.f32 -0.28449672, %v1352_v57 }
 0x347   : > { %v1357_v60 = vmul.f32 %v4474_v42, %v1355_v58 }
 0x348   : > { %v1356_v61 = vmul.f32 %v4476_v44, %v1354_v59 }
 0x349   : > { %v1359_v62 = vadd.f32 0.2548296, %v1357_v60 }
 0x34a   : > { %v1358_v63 = vadd.f32 0.2548296, %v1356_v61 }
 0x34b   : > { %v1361_v0 = vmul.f32 %v4474_v42, %v1359_v62 }
 0x34c   : > { %v1360_v2 = vmul.f32 %v4476_v44, %v1358_v63 }
 0x34d   : > { %v1371_v4 = vmul.f32 %v4478_v1, %v1361_v0 }
 0x34e   : > { %v1370_v5 = vmul.f32 %v4480_v3, %v1360_v2 }
 0x34f   : > { %v1373_v6 = vsub.f32 1.0, %v1371_v4 }
 0x350   : > { %v1372_v9 = vsub.f32 1.0, %v1370_v5 }
 0x351   : > { %v1375_v11 = vmul.f32 %v1373_v6, %v1333_v8 }
 0x352   : > { %v1374_v12 = vmul.f32 %v1372_v9, %v1332_v10 }
 0x353   : > { %v1377_v13 = vadd.f32 1.0, %v1375_v11 }
 0x354   : > { %v1376_v15 = vadd.f32 1.0, %v1374_v12 }
 0x355   : > { %v1379_v18 = vmul.f32 %v1377_v13, %v1327_v16 }
 0x356   : > { %v1378_v17 = vmul.f32 %v1376_v15, %v1326_v14 }
 0x358   : > { %3775 = vmatprep.mubr.f32.mxu1 %v1378_v17 }
 0x359   : > { %3776 = vmatmul.mubr.f32.vlgmr.msra.gmra.mrb[0].mxu1 %v1379_v18 }
 0x42c   : > { %v3777_v20 = vpop.f32.mrb[0].mxu1 }
 0x42d   : > { %v1475_v21 = vadd.f32 %v3777_v20, %v3551_v19  ;;  %v1469_v22 = vpop.f32.mrb[1].mxu1 }
 0x42e   : > { %v1470_v23 = vadd.f32 %v3551_v19, %v1469_v22 }
 0x42f   : > { %1479 = vst [vmem:[#allocation2 + $0x8] sm:$0xff] %v1475_v21 }
 0x430   : > { %1478 = vst [vmem:[#allocation2] sm:$0xff] %v1470_v23 }
 0x431 PF: > { %vm1504_vm3 = vcmask 1043456   ;;  %vm1497_vm4 = vcmask 64512   ;;  %v4481_v27 = vld [vmem:[%s6018_s27] sm:$0xff]   ;;  %v4482_v30 = vld [vmem:[%s6018_s27 + $0x8] sm:$0xff]   ;;  %v4483_v31 = vld [vmem:[%s6018_s27 + $0x10] sm:$0xff]   ;;  %v1642_v54 = vlaneseq  ;;  %s6624_s28 = scalar_lea.vmem [#allocation15], %s5955_s16 }
 0x432   : > { %3780 = vmatprep.mubr.msk.bf16.mxu0 %vm1497_vm4, %v4481_v27  ;;  %3786 = vmatprep.mubr.msk.bf16.mxu1 %vm1497_vm4, %v4483_v31  ;;  %v4484_v33 = vld [vmem:[%s6018_s27 + $0x18] sm:$0xff]   ;;  %v2031_v42 = vld [vmem:[%s5977_s15] sm:$0xff]  ;;  %v2032_v43 = vld [vmem:[%s5977_s15 + $0x8] sm:$0xff]  ;;  %s6625_s3 = scalar_lea.vmem [#allocation9], %s5955_s16  ;;  %s6626_s17 = scalar_lea.vmem [#allocation17], %s5955_s16  ;;  %vm2163_vm8 = vcmask 261120  }
 0x433   : > { %v1677_v44 = vld [vmem:[%s6028_s22] sm:$0xff]  ;;  %v4114_v45 = vpack.c.bf16 %v2032_v43, %v2031_v42  ;;  %v1678_v46 = vld [vmem:[%s6028_s22 + $0x8] sm:$0xff]  ;;  %v2033_v47 = vld [vmem:[%s5977_s15 + $0x10] sm:$0xff]  ;;  %v1643_v55 = vand.u32 127, %v1642_v54  ;;  %s6628_s25 = scalar_lea.vmem [#allocation20], %s5955_s16  ;;  %s5241_s14 = smov 32  }
 0x434   : > { %v2034_v48 = vld [vmem:[%s5977_s15 + $0x18] sm:$0xff]  ;;  %v4050_v49 = vpack.c.bf16 %v1678_v46, %v1677_v44  ;;  %v1679_v51 = vld [vmem:[%s6028_s22 + $0x10] sm:$0xff]  ;;  %v2035_v31 = vld [vmem:[%s5977_s15 + $0x20] sm:$0xff]  ;;  %s6629_s24 = scalar_lea.vmem [#allocation14], %s5955_s16 }
 0x435   : > { %v4118_v50 = vpack.c.bf16 %v2034_v48, %v2033_v47  ;;  %v1680_v52 = vld [vmem:[%s6028_s22 + $0x18] sm:$0xff]  ;;  %vm1644_vm5 = vcmp.lt.s32.totalorder %v1643_v55, 32  ;;  %v1683_v42 = vld [vmem:[%s6028_s22 + $0x30] sm:$0xff]  ;;  %v2039_v46 = vld [vmem:[%s5977_s15 + $0x40] sm:$0xff] }
 0x436   : > { %v1481_v25 = vld [vmem:[#allocation2 + $0x8] sm:$0xff]  ;;  %v4054_v53 = vpack.c.bf16 %v1680_v52, %v1679_v51  ;;  %v1684_v44 = vld [vmem:[%s6028_s22 + $0x38] sm:$0xff]  ;;  %v1685_v48 = vld [vmem:[%s6028_s22 + $0x40] sm:$0xff] }
 0x437   : > { %v1480_v24 = vld [vmem:[#allocation2] sm:$0xff]  ;;  %v2040_v47 = vld [vmem:[%s5977_s15 + $0x48] sm:$0xff]  ;;  %v2041_v52 = vld [vmem:[%s5977_s15 + $0x50] sm:$0xff] }
 0x438   : > { %v1482_v26 = vpack.c.bf16 %v1481_v25, %v1480_v24  ;;  %v1687_v55 = vld [vmem:[%s6028_s22 + $0x50] sm:$0xff] }
 0x43a   : > { %4250 = vmatprep.subr.msk.bf16.mxu0 %vm1504_vm3, %v1482_v26  ;;  %v1506_v28 = vsel %vm1504_vm3, %v1482_v26, 0  ;;  %v1573_v29 = vrot.slane %v1482_v26, 4 }
 0x43b   : > { %3779 = vmatpush3.bf16.msra.mxu0 %v1506_v28 }
 0x43c   : > { %4251 = vmatprep.subr.msk.bf16.mxu1 %vm1504_vm3, %v1573_v29  ;;  %v1581_v32 = vsel %vm1504_vm3, %v1573_v29, 0  ;;  %4115 = vmatprep.subr.bf16.mxu0 %v4114_v45 }
 0x43d   : > { %3785 = vmatpush3.bf16.msra.mxu1 %v1581_v32  ;;  %v2036_v32 = vld [vmem:[%s5977_s15 + $0x28] sm:$0xff] }
 0x43e   : > { %3781 = vmatmul.mubr.msk.bf16.vlgmr.msra.gmra.mrb[0].mxu0 %vm1497_vm4, %v4482_v30  ;;  %4051 = vmatprep.subr.bf16.mxu1 %v4050_v49 }
 0x43f   : > { %4117 = vmatpush3.bf16.msra.mxu0 %v4114_v45  ;;  %v4062_v45 = vpack.c.bf16 %v1684_v44, %v1683_v42 }
 0x440   : > { %3787 = vmatmul.mubr.msk.bf16.vlgmr.msra.gmra.mrb[0].mxu1 %vm1497_vm4, %v4484_v33  ;;  %4119 = vmatprep.subr.bf16.mxu0 %v4118_v50  ;;  %v1681_v33 = vld [vmem:[%s6028_s22 + $0x20] sm:$0xff] }
 0x441   : > { %4053 = vmatpush3.bf16.msra.mxu1 %v4050_v49  ;;  %v4130_v49 = vpack.c.bf16 %v2040_v47, %v2039_v46  ;;  %v3565_v47 = vld [vmem:[%s6625_s3] ss:$0 sm:$0xff] }
 0x442   : > { %4055 = vmatprep.subr.bf16.mxu1 %v4054_v53 }
 0x443   : > { %4121 = vmatpush3.bf16.msra.mxu0 %v4118_v50  ;;  %v1686_v50 = vld [vmem:[%s6028_s22 + $0x48] sm:$0xff] }
 0x444   : > { %v4066_v51 = vpack.c.bf16 %v1686_v50, %v1685_v48  ;;  %v3569_v48 = vld [vmem:[%s6626_s17] ss:$0 sm:$0xff] }
 0x445   : > { %4057 = vmatpush3.bf16.msra.mxu1 %v4054_v53  ;;  %v2042_v53 = vld [vmem:[%s5977_s15 + $0x58] sm:$0xff] }
 0x511   : > { %v6049_v34 = vpop.f32.mrb[0].mxu0 }
 0x512   : > { %v6051_v35 = vpop.f32.mrb[1].mxu0 }
 0x513   : > { %v6053_v36 = vpop.f32.mrb[0].mxu1  ;;  %1634 = vadd.xlane.f32.xlu0 %v6051_v35  ;;  %v6056_v37 = vpop.f32.mrb[2].mxu0 }
 0x514   : > { %v1545_v38 = vpop.f32.mrb[3].mxu0  ;;  %v6058_v39 = vpop.f32.mrb[1].mxu1 }
 0x515   : > { %v6060_v40 = vpop.f32.mrb[2].mxu1  ;;  %1931 = vadd.xlane.f32.xlu1 %v1545_v38 }
 0x516   : > { %v1620_v41 = vpop.f32.mrb[3].mxu1 }
 0x517   : > { %1636 = vadd.xlane.f32.xlu0 %v6058_v39 }
 0x519   : > { %1933 = vadd.xlane.f32.xlu1 %v1620_v41 }
 0x51b   : > { %1935 = vadd.xlane.f32.xlu0 %v6049_v34 }
 0x51d   : > { %1937 = vadd.xlane.f32.xlu1 %v6053_v36 }
 0x51f   : > { %1939 = vadd.xlane.f32.xlu0 %v6056_v37 }
 0x521   : > { %1941 = vadd.xlane.f32.xlu1 %v6060_v40 }
 0x5a0   : > { %v1635_v56 = vpop.xlane.xlu0 %1634 }
 0x5a1   : > { %v1638_v57 = vmul.f32 0.03125, %v1635_v56  ;;  %v4134_v56 = vpack.c.bf16 %v2042_v53, %v2041_v52 }
 0x5a2   : > { %v1932_v58 = vpop.xlane.xlu1 %1931 }
 0x5a3   : > { %v1640_v59 = vsub.f32 %v6051_v35, %v1638_v57  ;;  %v1943_v60 = vmul.f32 0.03125, %v1932_v58  ;;  %v1688_v57 = vld [vmem:[%s6028_s22 + $0x58] sm:$0xff] }
 0x5a4   : > { %v1637_v61 = vpop.xlane.xlu0 %1636  ;;  %v4070_v58 = vpack.c.bf16 %v1688_v57, %v1687_v55 }
 0x5a5   : > { %v1949_v62 = vsub.f32 %v1545_v38, %v1943_v60  ;;  %v1639_v63 = vmul.f32 0.03125, %v1637_v61  ;;  %v6078_v0 = vsel %vm1644_vm5, %v1640_v59, 0.0  ;;  %v2043_v59 = vld [vmem:[%s5977_s15 + $0x60] sm:$0xff]  ;;  %v2044_v60 = vld [vmem:[%s5977_s15 + $0x68] sm:$0xff] }
 0x5a6   : > { %v1934_v1 = vpop.xlane.xlu1 %1933  ;;  %v1647_v2 = vmul.f32 %v6078_v0, %v6078_v0  ;;  %v1689_v61 = vld [vmem:[%s6028_s22 + $0x60] sm:$0xff] }
 0x5a7   : > { %v1641_v3 = vsub.f32 %v6058_v39, %v1639_v63  ;;  %v1944_v4 = vmul.f32 0.03125, %v1934_v1  ;;  %v6084_v5 = vsel %vm1644_vm5, %v1949_v62, 0.0  ;;  %v4138_v62 = vpack.c.bf16 %v2044_v60, %v2043_v59  ;;  %v1690_v63 = vld [vmem:[%s6028_s22 + $0x68] sm:$0xff]  ;;  %v2161_v59 = vld [vmem:[%s6034_s26 + $0x10] sm:$0xff]  ;;  %v2162_v60 = vld [vmem:[%s6034_s26 + $0x18] sm:$0xff] }
 0x5a8   : > { %v1936_v6 = vpop.xlane.xlu0 %1935  ;;  %1649 = vadd.xlane.f32.xlu0 %v1647_v2  ;;  %v1961_v12 = vmul.f32 %v6084_v5, %v6084_v5  ;;  %v4074_v1 = vpack.c.bf16 %v1690_v63, %v1689_v61  ;;  %v2045_v2 = vld [vmem:[%s5977_s15 + $0x70] sm:$0xff] }
 0x5a9   : > { %v1950_v7 = vsub.f32 %v1620_v41, %v1944_v4  ;;  %v1945_v8 = vmul.f32 0.03125, %v1936_v6  ;;  %v6087_v9 = vsel %vm1644_vm5, %v1641_v3, 0.0  ;;  %v2038_v41 = vld [vmem:[%s5977_s15 + $0x38] sm:$0xff]  ;;  %v1691_v4 = vld [vmem:[%s6028_s22 + $0x70] sm:$0xff] }
 0x5aa   : > { %v1938_v10 = vpop.xlane.xlu1 %1937  ;;  %v1648_v11 = vmul.f32 %v6087_v9, %v6087_v9  ;;  %v2046_v3 = vld [vmem:[%s5977_s15 + $0x78] sm:$0xff] }
 0x5ab   : > { %v1951_v13 = vsub.f32 %v6049_v34, %v1945_v8  ;;  %v1946_v14 = vmul.f32 0.03125, %v1938_v10  ;;  %v6095_v15 = vsel %vm1644_vm5, %v1950_v7, 0.0  ;;  %v4122_v34 = vpack.c.bf16 %v2036_v32, %v2035_v31  ;;  %v1692_v7 = vld [vmem:[%s6028_s22 + $0x78] sm:$0xff]  ;;  %v2159_v10 = vld [vmem:[%s6034_s26] sm:$0xff] }
 0x5ac   : > { %v1940_v16 = vpop.xlane.xlu0 %1939  ;;  %1651 = vadd.xlane.f32.xlu1 %v1648_v11  ;;  %1967 = vadd.xlane.f32.xlu0 %v1961_v12  ;;  %v1962_v22 = vmul.f32 %v6095_v15, %v6095_v15  ;;  %v4142_v6 = vpack.c.bf16 %v2046_v3, %v2045_v2  ;;  %v4078_v8 = vpack.c.bf16 %v1692_v7, %v1691_v4  ;;  %v2160_v11 = vld [vmem:[%s6034_s26 + $0x8] sm:$0xff] }
 0x5ad   : > { %v1952_v17 = vsub.f32 %v6053_v36, %v1946_v14  ;;  %v1947_v18 = vmul.f32 0.03125, %v1940_v16  ;;  %v6099_v19 = vsel %vm1644_vm5, %v1951_v13, 0.0  ;;  %v1682_v36 = vld [vmem:[%s6028_s22 + $0x28] sm:$0xff]  ;;  %4123 = vmatprep.subr.bf16.mxu0 %v4122_v34  ;;  %v6148_v12 = vpack.c.bf16 %v2160_v11, %v2159_v10 }
 0x5ae   : > { %v1942_v20 = vpop.xlane.xlu1 %1941  ;;  %v1963_v21 = vmul.f32 %v6099_v19, %v6099_v19  ;;  %v4058_v38 = vpack.c.bf16 %v1682_v36, %v1681_v33  ;;  %4125 = vmatpush3.bf16.msra.mxu0 %v4122_v34 }
 0x5af   : > { %v1953_v23 = vsub.f32 %v6056_v37, %v1947_v18  ;;  %v1948_v24 = vmul.f32 0.03125, %v1942_v20  ;;  %v6107_v25 = vsel %vm1644_vm5, %v1952_v17, 0.0 }
 0x5b0   : > { %1971 = vadd.xlane.f32.xlu0 %v1963_v21  ;;  %1969 = vadd.xlane.f32.xlu1 %v1962_v22  ;;  %v1964_v29 = vmul.f32 %v6107_v25, %v6107_v25 }
 0x5b1   : > { %v1954_v26 = vsub.f32 %v6060_v40, %v1948_v24  ;;  %v6111_v27 = vsel %vm1644_vm5, %v1953_v23, 0.0  ;;  %4059 = vmatprep.subr.bf16.mxu1 %v4058_v38  ;;  %v2037_v40 = vld [vmem:[%s5977_s15 + $0x30] sm:$0xff] }
 0x5b2   : > { %v1965_v28 = vmul.f32 %v6111_v27, %v6111_v27  ;;  %4061 = vmatpush3.bf16.msra.mxu1 %v4058_v38  ;;  %v4126_v43 = vpack.c.bf16 %v2038_v41, %v2037_v40  ;;  %v3564_v38 = vld [vmem:[%s1218_s9] ss:$0 sm:$0xff]  ;;  %s6627_s9 = scalar_lea.vmem [#allocation11], %s5955_s16  ;;  %s6630_s16 = sld [smem:[#allocation44_spill]] }
 0x5b3   : > { %v6118_v30 = vsel %vm1644_vm5, %v1954_v26, 0.0  ;;  %4063 = vmatprep.subr.bf16.mxu1 %v4062_v45 }
 0x5b4   : > { %1975 = vadd.xlane.f32.xlu0 %v1965_v28  ;;  %1973 = vadd.xlane.f32.xlu1 %v1964_v29  ;;  %v1966_v37 = vmul.f32 %v6118_v30, %v6118_v30 }
 0x5b5   : > { %4127 = vmatprep.subr.bf16.mxu0 %v4126_v43 }
 0x5b6   : > { %4129 = vmatpush3.bf16.msra.mxu0 %v4126_v43  ;;  %4065 = vmatpush3.bf16.msra.mxu1 %v4062_v45  ;;  %v3568_v43 = vld [vmem:[%s6624_s28] ss:$0 sm:$0xff] }
 0x5b7   : > { %4131 = vmatprep.subr.bf16.mxu0 %v4130_v49  ;;  %4067 = vmatprep.subr.bf16.mxu1 %v4066_v51 }
 0x5b8   : > { %1977 = vadd.xlane.f32.xlu1 %v1966_v37  ;;  %p3579_p8 = scmp.ne.s32.totalorder %s6630_s16, 1 }
 0x5b9   : > { %vm5243_vm11 = vmmov (!%p3579_p8), 0   ;;  %vm2917_vm12 = vcmask (!%p3579_p8), 1041409   ;;  %vm3110_vm14 = vcmask (!%p3579_p8), 25600  }
 0x5ba   : > { %4133 = vmatpush3.bf16.msra.mxu0 %v4130_v49  ;;  %4069 = vmatpush3.bf16.msra.mxu1 %v4066_v51 }
 0x5bb   : > { %4135 = vmatprep.subr.bf16.mxu0 %v4134_v56  ;;  %4071 = vmatprep.subr.bf16.mxu1 %v4070_v58 }
 0x5be   : > { %4137 = vmatpush3.bf16.msra.mxu0 %v4134_v56  ;;  %4073 = vmatpush3.bf16.msra.mxu1 %v4070_v58 }
 0x5bf   : > { %4139 = vmatprep.subr.bf16.mxu0 %v4138_v62  ;;  %4075 = vmatprep.subr.bf16.mxu1 %v4074_v1 }
 0x5c2   : > { %4141 = vmatpush3.bf16.msra.mxu0 %v4138_v62  ;;  %4077 = vmatpush3.bf16.msra.mxu1 %v4074_v1 }
 0x5c3   : > { %4143 = vmatprep.subr.bf16.mxu0 %v4142_v6  ;;  %4079 = vmatprep.subr.bf16.mxu1 %v4078_v8 }
 0x5c6   : > { %4145 = vmatpush3.bf16.msra.mxu0 %v4142_v6  ;;  %4081 = vmatpush3.bf16.msra.mxu1 %v4078_v8 }
 0x5c7   : > { %4147 = vmatprep.subr.bf16.mxu0 %v6148_v12 }
 0x635   : > { %v1650_v13 = vpop.xlane.xlu0 %1649 }
 0x636   : > { %v1653_v14 = vmul.f32 0.03125, %v1650_v13 }
 0x638   : > { %v1655_v16 = vadd.f32 1e-05, %v1653_v14 }
 0x639   : > { %v1968_v17 = vpop.xlane.xlu0 %1967  ;;  %v1652_v18 = vpop.xlane.xlu1 %1651 }
 0x63a   : > { %4485 = vrsqrt.f32 %v1655_v16  ;;  %v1979_v20 = vmul.f32 0.03125, %v1968_v17  ;;  %v1654_v21 = vmul.f32 0.03125, %v1652_v18 }
 0x63c   : > { %v1985_v22 = vadd.f32 1e-05, %v1979_v20  ;;  %v1656_v23 = vadd.f32 1e-05, %v1654_v21 }
 0x63d   : > { %v1972_v24 = vpop.xlane.xlu0 %1971  ;;  %v1970_v26 = vpop.xlane.xlu1 %1969 }
 0x63e   : > { %4487 = vrsqrt.f32 %v1985_v22  ;;  %v1981_v28 = vmul.f32 0.03125, %v1972_v24  ;;  %v1980_v29 = vmul.f32 0.03125, %v1970_v26  ;;  %v1830_v24 = vld [vmem:[%s5964_s10 + $0x8] sm:$0xff] }
 0x63f   : > { %4489 = vrsqrt.f32 %v1656_v23  ;;  %v5238_v23 = vmov 0.0  }
 0x640   : > { %v1987_v31 = vadd.f32 1e-05, %v1981_v28  ;;  %v1986_v32 = vadd.f32 1e-05, %v1980_v29  ;;  %v1831_v28 = vld [vmem:[%s5964_s10 + $0x10] sm:$0xff]  ;;  %v1832_v29 = vld [vmem:[%s5964_s10 + $0x18] sm:$0xff] }
 0x641   : > { %v1976_v33 = vpop.xlane.xlu0 %1975  ;;  %v1974_v34 = vpop.xlane.xlu1 %1973 }
 0x642   : > { %4491 = vrsqrt.f32 %v1987_v31  ;;  %v1983_v36 = vmul.f32 0.03125, %v1976_v33  ;;  %v1982_v37 = vmul.f32 0.03125, %v1974_v34  ;;  %v4086_v31 = vpack.c.bf16 %v1832_v29, %v1831_v28  ;;  %v1834_v33 = vld [vmem:[%s5964_s10 + $0x28] sm:$0xff] }
 0x643   : > { %4493 = vrsqrt.f32 %v1986_v32  ;;  %v1833_v32 = vld [vmem:[%s5964_s10 + $0x20] sm:$0xff] }
 0x644   : > { %v4486_v40 = vpop.eup %4485  ;;  %v1989_v41 = vadd.f32 1e-05, %v1983_v36  ;;  %v1988_v42 = vadd.f32 1e-05, %v1982_v37  ;;  %v4090_v34 = vpack.c.bf16 %v1834_v33, %v1833_v32  ;;  %v1835_v36 = vld [vmem:[%s5964_s10 + $0x30] sm:$0xff]  ;;  %v1836_v37 = vld [vmem:[%s5964_s10 + $0x38] sm:$0xff] }
 0x645   : > { %v1978_v44 = vpop.xlane.xlu1 %1977  ;;  %v1659_v45 = vmul.f32 %v4486_v40, %v6078_v0  ;;  %v1837_v40 = vld [vmem:[%s5964_s10 + $0x40] sm:$0xff] }
 0x646   : > { %4495 = vrsqrt.f32 %v1989_v41  ;;  %v1984_v46 = vmul.f32 0.03125, %v1978_v44  ;;  %v1838_v41 = vld [vmem:[%s5964_s10 + $0x48] sm:$0xff]  ;;  %v1840_v44 = vld [vmem:[%s5964_s10 + $0x58] sm:$0xff] }
 0x647   : > { %4497 = vrsqrt.f32 %v1988_v42  ;;  %v1667_v49 = vmul.f32 %v3564_v38, %v1659_v45  ;;  %v2009_v50 = vmul.f32 %v3568_v43, %v1659_v45  ;;  %v4098_v42 = vpack.c.bf16 %v1838_v41, %v1837_v40 }
 0x648   : > { %v4488_v51 = vpop.eup %4487  ;;  %v1990_v52 = vadd.f32 1e-05, %v1984_v46  ;;  %v1841_v46 = vld [vmem:[%s5964_s10 + $0x60] sm:$0xff] }
 0x649   : > { %v4490_v53 = vpop.eup %4489  ;;  %v1675_v55 = vadd.f32 %v3565_v47, %v1667_v49  ;;  %v2023_v56 = vadd.f32 %v3569_v48, %v2009_v50  ;;  %v1997_v57 = vmul.f32 %v4488_v51, %v6084_v5  ;;  %v6169_v5 = vpack.c.bf16 %v2162_v60, %v2161_v59  ;;  %v1843_v49 = vld [vmem:[%s5964_s10 + $0x70] sm:$0xff]  ;;  %v1844_v50 = vld [vmem:[%s5964_s10 + $0x78] sm:$0xff] }
 0x64a   : > { %4499 = vrsqrt.f32 %v1990_v52  ;;  %v1660_v0 = vmul.f32 %v4490_v53, %v6087_v9  ;;  %v4110_v51 = vpack.c.bf16 %v1844_v50, %v1843_v49  ;;  %v3566_v52 = vld [vmem:[%s6627_s9] ss:$0 sm:$0xff] }
 0x64b   : > { %3822 = vmatprep.mubr.f32.mxu1 %v1675_v55  ;;  %3892 = vmatprep.mubr.f32.mxu0 %v2023_v56  ;;  %v2011_v58 = vmul.f32 %v3568_v43, %v1997_v57 }
 0x64c   : > { %v4492_v61 = vpop.eup %4491  ;;  %v1668_v62 = vmul.f32 %v3564_v38, %v1660_v0  ;;  %v2010_v63 = vmul.f32 %v3568_v43, %v1660_v0  ;;  %v4094_v38 = vpack.c.bf16 %v1836_v37, %v1835_v36 }
 0x64d   : > { %v4494_v1 = vpop.eup %4493  ;;  %v2025_v2 = vadd.f32 %v3569_v48, %v2011_v58  ;;  %v1999_v3 = vmul.f32 %v4492_v61, %v6099_v19 }
 0x64e   : > { %v1676_v4 = vadd.f32 %v3565_v47, %v1668_v62  ;;  %v2024_v6 = vadd.f32 %v3569_v48, %v2010_v63  ;;  %v1998_v7 = vmul.f32 %v4494_v1, %v6095_v15  ;;  %v1842_v47 = vld [vmem:[%s5964_s10 + $0x68] sm:$0xff] }
 0x64f   : > { %v2013_v8 = vmul.f32 %v3568_v43, %v1999_v3 }
 0x650   : > { %v4496_v9 = vpop.eup %4495  ;;  %3823 = vmatmul.mubr.f32.vlgmr.msra.gmra.mrb[4].mxu1 %v1676_v4  ;;  %3893 = vmatmul.mubr.f32.vlgmr.msra.gmra.mrb[4].mxu0 %v2024_v6  ;;  %v2012_v10 = vmul.f32 %v3568_v43, %v1998_v7  ;;  %v6210_v4 = vld [vmem:[%s6628_s25] ss:$0 sm:$0xff] }
 0x651   : > { %v4498_v11 = vpop.eup %4497  ;;  %4149 = vmatpush3.bf16.msra.mxu0 %v6148_v12  ;;  %3895 = vmatprep.mubr.f32.mxu0 %v2025_v2  ;;  %v2027_v13 = vadd.f32 %v3569_v48, %v2013_v8  ;;  %v2001_v14 = vmul.f32 %v4496_v9, %v6111_v27 }
 0x652   : > { %v2026_v16 = vadd.f32 %v3569_v48, %v2012_v10  ;;  %v2000_v19 = vmul.f32 %v4498_v11, %v6107_v25  ;;  %4151 = vmatprep.subr.bf16.mxu0 %v6169_v5 }
 0x653   : > { %v2015_v15 = vmul.f32 %v3568_v43, %v2001_v14 }
 0x654   : > { %v4500_v17 = vpop.eup %4499  ;;  %3896 = vmatmul.mubr.f32.gmra.mrb[6].mxu0 %v2026_v16  ;;  %v2014_v18 = vmul.f32 %v3568_v43, %v2000_v19 }
 0x655   : > { %3898 = vmatprep.mubr.f32.mxu0 %v2027_v13  ;;  %v2029_v20 = vadd.f32 %v3569_v48, %v2015_v15  ;;  %4153 = vmatpush3.bf16.msra.mxu0 %v6169_v5  ;;  %v2002_v21 = vmul.f32 %v4500_v17, %v6118_v30  ;;  %v1829_v30 = vld [vmem:[%s5964_s10] sm:$0xff] }
 0x656   : > { %v2028_v22 = vadd.f32 %v3569_v48, %v2014_v18  ;;  %4155 = vmatprep.subr.bf16.mxu0 %v6148_v12  ;;  %v4082_v26 = vpack.c.bf16 %v1830_v24, %v1829_v30 }
 0x657   : > { %v2016_v27 = vmul.f32 %v3568_v43, %v2002_v21  ;;  %v1839_v43 = vld [vmem:[%s5964_s10 + $0x50] sm:$0xff]  ;;  %s5239_s10 = smov 64  }
 0x658   : > { %3899 = vmatmul.mubr.f32.gmra.mrb[8].mxu0 %v2028_v22  ;;  %4083 = vmatprep.subr.bf16.mxu1 %v4082_v26  ;;  %v4102_v45 = vpack.c.bf16 %v1840_v44, %v1839_v43 }
 0x659   : > { %3901 = vmatprep.mubr.f32.mxu0 %v2029_v20  ;;  %v2030_v25 = vadd.f32 %v3569_v48, %v2016_v27  ;;  %4085 = vmatpush3.bf16.msra.mxu1 %v4082_v26  ;;  %v4106_v48 = vpack.c.bf16 %v1842_v47, %v1841_v46 }
 0x65a   : > { %4087 = vmatprep.subr.bf16.mxu1 %v4086_v31 }
 0x65c   : > { %3902 = vmatmul.mubr.f32.gmra.mrb[10].mxu0 %v2030_v25 }
 0x65d   : > { %3912 = vmatprep.mubr.f32.mxu0 %v5238_v23  ;;  %4089 = vmatpush3.bf16.msra.mxu1 %v4086_v31 }
 0x65e   : > { %4091 = vmatprep.subr.bf16.mxu1 %v4090_v34 }
 0x661   : > { %4093 = vmatpush3.bf16.msra.mxu1 %v4090_v34 }
 0x662   : > { %4095 = vmatprep.subr.bf16.mxu1 %v4094_v38 }
 0x664   : > { %3913 = vmatmul.mubr.f32.vlgmr.msra.gmra.mrb[10].mxu0 %v5238_v23 }
 0x665   : > { %4157 = vmatpush3.bf16.msra.mxu0 %v6148_v12  ;;  %4097 = vmatpush3.bf16.msra.mxu1 %v4094_v38 }
 0x666   : > { %4159 = vmatprep.subr.bf16.mxu0 %v6169_v5  ;;  %4099 = vmatprep.subr.bf16.mxu1 %v4098_v42 }
 0x669   : > { %4161 = vmatpush3.bf16.msra.mxu0 %v6169_v5  ;;  %4101 = vmatpush3.bf16.msra.mxu1 %v4098_v42 }
 0x66a   : > { %4163 = vmatprep.subr.bf16.mxu0 %v6148_v12  ;;  %4103 = vmatprep.subr.bf16.mxu1 %v4102_v45 }
 0x66d   : > { %4105 = vmatpush3.bf16.msra.mxu1 %v4102_v45  ;;  %v5240_v45 = vmov 1.0  }
 0x66e   : > { %4107 = vmatprep.subr.bf16.mxu1 %v4106_v48 }
 0x671   : > { %4109 = vmatpush3.bf16.msra.mxu1 %v4106_v48 }
 0x672   : > { %4111 = vmatprep.subr.bf16.mxu1 %v4110_v51 }
 0x675   : > { %4113 = vmatpush3.bf16.msra.mxu1 %v4110_v51 }
 0x723   : > { %v3824_v53 = vpop.f32.mrb[4].mxu1 }
 0x724   : > { %v6202_v55 = vadd.f32 %v3824_v53, %v3566_v52  ;;  %v1766_v56 = vpop.f32.mrb[5].mxu1 }
 0x725   : > { %v6204_v57 = vadd.f32 %v3566_v52, %v1766_v56 }
 0x726   : > { %v1778_v0 = vmul.f32 0.70710677, %v6202_v55  ;;  %v1776_v56 = vmul.f32 0.5, %v6202_v55 }
 0x727   : > { %v1777_v58 = vmul.f32 0.70710677, %v6204_v57  ;;  %v1775_v52 = vmul.f32 0.5, %v6204_v57 }
 0x728   : > { %v1784_v59 = vand.u32 2147483647, %v1778_v0  ;;  %vm1780_vm6 = vcmp.lt.f32.partialorder %v1778_v0, 0.0 }
 0x729   : > { %v1783_v60 = vand.u32 2147483647, %v1777_v58  ;;  %vm1779_vm7 = vcmp.lt.f32.partialorder %v1777_v58, 0.0  ;;  %v1782_v46 = vsel %vm1780_vm6, -1.0, %v5240_v45 }
 0x72a   : > { %v1786_v61 = vmul.f32 0.3275911, %v1784_v59  ;;  %v1812_v2 = vsub.f32 0.0, %v1784_v59  ;;  %v1781_v49 = vsel %vm1779_vm7, -1.0, %v5240_v45 }
 0x72b   : > { %v1785_v62 = vmul.f32 0.3275911, %v1783_v60  ;;  %v1811_v3 = vsub.f32 0.0, %v1783_v60 }
 0x72c   : > { %v1788_v63 = vadd.f32 1.0, %v1786_v61  ;;  %v1814_v8 = vmul.f32 %v1812_v2, %v1784_v59 }
 0x72d   : > { %v1787_v1 = vadd.f32 1.0, %v1785_v62  ;;  %v1813_v14 = vmul.f32 %v1811_v3, %v1783_v60 }
 0x72e   : > { %4501 = vrcp.f32 %v1788_v63  ;;  %v1817_v17 = vmul.f32 1.442695, %v1814_v8 }
 0x72f   : > { %4503 = vrcp.f32 %v1787_v1  ;;  %v1815_v21 = vmul.f32 1.442695, %v1813_v14 }
 0x737   : > { %v3914_v6 = vpop.f32.mrb[10].mxu0 }
 0x738   : > { %v4502_v7 = vpop.eup %4501  ;;  %v4240_v9 = vadd.f32 %v3914_v6, %v6210_v4  ;;  %v2233_v10 = vpop.f32.mrb[11].mxu0 }
 0x739   : > { %v4504_v11 = vpop.eup %4503  ;;  %v1794_v13 = vmul.f32 1.0614054, %v4502_v7  ;;  %v4241_v16 = vadd.f32 %v6210_v4, %v2233_v10  ;;  %v3567_v10 = vld [vmem:[%s6629_s24] ss:$0 sm:$0xff] }
 0x73a   : > { %4505 = vtanh.f32 %v4240_v9  ;;  %v1793_v19 = vmul.f32 1.0614054, %v4504_v11  ;;  %v2245_v60 = vsub.f32 0.0, %v4240_v9 }
 0x73b   : > { %v1796_v15 = vadd.f32 -1.4531521, %v1794_v13  ;;  %4507 = vtanh.f32 %v4241_v16  ;;  %v2244_v58 = vsub.f32 0.0, %v4241_v16 }
 0x73c   : > { %v1795_v18 = vadd.f32 -1.4531521, %v1793_v19  ;;  %4509 = vpow2.f32 %v1817_v17  ;;  %v2248_v62 = vmul.f32 1.442695, %v2245_v60 }
 0x73d   : > { %v1798_v20 = vmul.f32 %v4502_v7, %v1796_v15  ;;  %4511 = vpow2.f32 %v1815_v21  ;;  %v2246_v61 = vmul.f32 1.442695, %v2244_v58 }
 0x73e   : > { %v1797_v22 = vmul.f32 %v4504_v11, %v1795_v18 }
 0x73f   : > { %v1800_v27 = vadd.f32 1.4214138, %v1798_v20  ;;  %4513 = vpow2.f32 %v2246_v61 }
 0x740   : > { %v1799_v25 = vadd.f32 1.4214138, %v1797_v22  ;;  %4515 = vpow2.f32 %v2248_v62 }
 0x741   : > { %v1802_v30 = vmul.f32 %v4502_v7, %v1800_v27 }
 0x742   : > { %v1801_v24 = vmul.f32 %v4504_v11, %v1799_v25 }
 0x743   : > { %v1804_v26 = vadd.f32 -0.28449672, %v1802_v30 }
 0x744   : > { %v4506_v28 = vpop.eup %4505  ;;  %v1803_v29 = vadd.f32 -0.28449672, %v1801_v24 }
 0x745   : > { %v4508_v31 = vpop.eup %4507  ;;  %v1806_v32 = vmul.f32 %v4502_v7, %v1804_v26  ;;  %2264 = vrot.lane.b32.xlu1 %v4506_v28, %s5239_s10 }
 0x746   : > { %2262 = vrot.lane.b32.xlu0 %v4508_v31, %s5239_s10  ;;  %v1805_v33 = vmul.f32 %v4504_v11, %v1803_v29  ;;  %v4510_v38 = vpop.eup %4509 }
 0x747   : > { %v1808_v34 = vadd.f32 0.2548296, %v1806_v32  ;;  %v4512_v41 = vpop.eup %4511 }
 0x748   : > { %v1807_v36 = vadd.f32 0.2548296, %v1805_v33 }
 0x749   : > { %v1810_v37 = vmul.f32 %v4502_v7, %v1808_v34  ;;  %v4514_v63 = vpop.eup %4513 }
 0x74a   : > { %v1809_v40 = vmul.f32 %v4504_v11, %v1807_v36  ;;  %v2250_v1 = vadd.f32 1.0, %v4514_v63  ;;  %v4516_v2 = vpop.eup %4515 }
 0x74b   : > { %v1820_v42 = vmul.f32 %v4510_v38, %v1810_v37  ;;  %v2251_v57 = vadd.f32 1.0, %v4516_v2 }
 0x74c   : > { %v1819_v43 = vmul.f32 %v4512_v41, %v1809_v40  ;;  %4517 = vrcp.f32 %v2250_v1 }
 0x74d   : > { %v1822_v44 = vsub.f32 1.0, %v1820_v42  ;;  %4519 = vrcp.f32 %v2251_v57 }
 0x74e   : > { %v1821_v47 = vsub.f32 1.0, %v1819_v43 }
 0x74f   : > { %v1824_v48 = vmul.f32 %v1822_v44, %v1782_v46 }
 0x750   : > { %v1823_v50 = vmul.f32 %v1821_v47, %v1781_v49 }
 0x751   : > { %v1826_v51 = vadd.f32 1.0, %v1824_v48 }
 0x752   : > { %v1825_v53 = vadd.f32 1.0, %v1823_v50 }
 0x753   : > { %v1828_v0 = vmul.f32 %v1826_v51, %v1776_v56 }
 0x754   : > { %v1827_v59 = vmul.f32 %v1825_v53, %v1775_v52 }
 0x756   : > { %3857 = vmatprep.mubr.f32.mxu1 %v1827_v59  ;;  %v4518_v55 = vpop.eup %4517 }
 0x757   : > { %3858 = vmatmul.mubr.f32.vlgmr.msra.gmra.mrb[6].mxu1 %v1828_v0  ;;  %v4520_v8 = vpop.eup %4519  ;;  %v2258_v19 = vmul.f32 0.0, %v4518_v55 }
 0x758   : > { %2845 = vmatprep.mubr.f32.mxu1 %v5238_v23  ;;  %v2259_v21 = vmul.f32 0.0, %v4520_v8 }
 0x7b7   : > { %v2265_v7 = vpop.permute.xlu1 %2264 }
 0x7b8   : > { %v2263_v3 = vpop.permute.xlu0 %2262  ;;  %v2269_v9 = vmul.f32 %v4520_v8, %v2265_v7 }
 0x7b9   : > { %v2268_v6 = vmul.f32 %v4518_v55, %v2263_v3 }
 0x7bb   : > { %2272 = vrot.lane.b32.xlu1 %v2268_v6, %s5241_s14 }
 0x7bf   : > { %2274 = vrot.lane.b32.xlu1 %v2269_v9, %s5241_s14 }
 0x82a   : > { %v3859_v11 = vpop.f32.mrb[6].mxu1 }
 0x82b   : > { %v1924_v13 = vadd.f32 %v3859_v11, %v3567_v10  ;;  %v1918_v14 = vpop.f32.mrb[7].mxu1 }
 0x82c   : > { %v1919_v16 = vadd.f32 %v3567_v10, %v1918_v14 }
 0x82d   : > { %v6226_v15 = vadd.f32 %v1924_v13, %v6058_v39  ;;  %v2273_v17 = vpop.permute.xlu1 %2272 }
 0x82e   : > { %v6229_v18 = vadd.f32 %v1919_v16, %v6051_v35  ;;  %v2278_v20 = vadd.f32 %v2273_v17, %v2258_v19 }
 0x830   : > { %4521 = vtanh.f32 %v2278_v20 }
 0x831   : > { %v2275_v22 = vpop.permute.xlu1 %2274 }
 0x832   : > { %v2279_v27 = vadd.f32 %v2275_v22, %v2259_v21 }
 0x834   : > { %4523 = vtanh.f32 %v2279_v27 }
 0x83a   : > { %v4522_v25 = vpop.eup %4521 }
 0x83b   : > { %2284 = vrot.lane.b32.xlu0 %v4522_v25, %s5239_s10 }
 0x83e   : > { %v4524_v30 = vpop.eup %4523 }
 0x83f   : > { %2286 = vrot.lane.b32.xlu1 %v4524_v30, %s5239_s10 }
 0x8ad   : > { %v2285_v24 = vpop.permute.xlu0 %2284 }
 0x8ae   : > { %v2290_v26 = vmul.f32 %v4518_v55, %v2285_v24 }
 0x8b0   : > { %2294 = vrot.lane.b32.xlu0 %v2290_v26, %s5241_s14 }
 0x8b1   : > { %v2287_v39 = vpop.permute.xlu1 %2286 }
 0x8b2   : > { %v2291_v28 = vmul.f32 %v4520_v8, %v2287_v39 }
 0x8b4   : > { %2296 = vrot.lane.b32.xlu1 %v2291_v28, %s5241_s14 }
 0x922   : > { %v2295_v35 = vpop.permute.xlu0 %2294 }
 0x923   : > { %3923 = vmatprep.mubr.msk.f32.mxu0 %vm2163_vm8, %v2295_v35 }
 0x926   : > { %v2297_v29 = vpop.permute.xlu1 %2296 }
 0x927   : > { %3924 = vmatmul.mubr.msk.f32.vlgmr.msra.gmra.mrb[8].mxu0 %vm2163_vm8, %v2297_v29 }
 0x928   : > { %4165 = vmatpush3.bf16.msra.mxu0 %v6148_v12 }
 0x929   : > { %4167 = vmatprep.subr.bf16.mxu0 %v6169_v5 }
 0x92c   : > { %4169 = vmatpush3.bf16.msra.mxu0 %v6169_v5 }
 0x92d   : > { %4171 = vmatprep.subr.bf16.mxu0 %v6148_v12 }
 0x9fa   : > { %v3925_v31 = vpop.f32.mrb[8].mxu0 }
 0x9fb   : > { %v4238_v32 = vadd.f32 %v3925_v31, %v6210_v4  ;;  %v2368_v33 = vpop.f32.mrb[9].mxu0 }
 0x9fc   : > { %v4239_v34 = vadd.f32 %v6210_v4, %v2368_v33 }
 0x9fd   : > { %4525 = vtanh.f32 %v4238_v32  ;;  %v2380_v38 = vsub.f32 0.0, %v4238_v32 }
 0x9fe   : > { %4527 = vtanh.f32 %v4239_v34  ;;  %v2379_v40 = vsub.f32 0.0, %v4239_v34 }
 0x9ff   : > { %v2383_v41 = vmul.f32 1.442695, %v2380_v38 }
 0xa00   : > { %v2381_v42 = vmul.f32 1.442695, %v2379_v40 }
 0xa01   : > { %4529 = vpow2.f32 %v2383_v41 }
 0xa02   : > { %4531 = vpow2.f32 %v2381_v42 }
 0xa07   : > { %v4526_v36 = vpop.eup %4525 }
 0xa08   : > { %v4528_v37 = vpop.eup %4527  ;;  %2399 = vrot.lane.b32.xlu1 %v4526_v36, %s5239_s10 }
 0xa09   : > { %2397 = vrot.lane.b32.xlu0 %v4528_v37, %s5239_s10 }
 0xa0b   : > { %v4530_v43 = vpop.eup %4529 }
 0xa0c   : > { %v4532_v44 = vpop.eup %4531  ;;  %v2386_v46 = vadd.f32 1.0, %v4530_v43 }
 0xa0d   : > { %v2385_v47 = vadd.f32 1.0, %v4532_v44 }
 0xa0e   : > { %4533 = vrcp.f32 %v2386_v46 }
 0xa0f   : > { %4535 = vrcp.f32 %v2385_v47 }
 0xa18   : > { %v4534_v48 = vpop.eup %4533 }
 0xa19   : > { %v4536_v50 = vpop.eup %4535  ;;  %v2394_v56 = vmul.f32 %v4534_v48, %v2279_v27 }
 0xa1a   : > { %v2393_v0 = vmul.f32 %v4536_v50, %v2278_v20 }
 0xa7a   : > { %v2400_v49 = vpop.permute.xlu1 %2399 }
 0xa7b   : > { %v2404_v51 = vmul.f32 %v4534_v48, %v2400_v49  ;;  %v2398_v52 = vpop.permute.xlu0 %2397 }
 0xa7c   : > { %v2403_v53 = vmul.f32 %v4536_v50, %v2398_v52 }
 0xa7d   : > { %2409 = vrot.lane.b32.xlu1 %v2404_v51, %s5241_s14 }
 0xa7e   : > { %2407 = vrot.lane.b32.xlu0 %v2403_v53, %s5241_s14 }
 0xaef   : > { %v2410_v59 = vpop.permute.xlu1 %2409 }
 0xaf0   : > { %v2414_v58 = vadd.f32 %v2410_v59, %v2394_v56  ;;  %v2408_v60 = vpop.permute.xlu0 %2407 }
 0xaf1   : > { %v2413_v61 = vadd.f32 %v2408_v60, %v2393_v0 }
 0xaf2   : > { %4537 = vtanh.f32 %v2414_v58 }
 0xaf3   : > { %4539 = vtanh.f32 %v2413_v61 }
 0xafc   : > { %v4538_v62 = vpop.eup %4537 }
 0xafd   : > { %v4540_v63 = vpop.eup %4539  ;;  %2421 = vrot.lane.b32.xlu1 %v4538_v62, %s5239_s10 }
 0xafe   : > { %2419 = vrot.lane.b32.xlu0 %v4540_v63, %s5239_s10 }
 0xb6f   : > { %v2422_v1 = vpop.permute.xlu1 %2421 }
 0xb70   : > { %v2426_v2 = vmul.f32 %v4534_v48, %v2422_v1  ;;  %v2420_v57 = vpop.permute.xlu0 %2419 }
 0xb71   : > { %v2425_v55 = vmul.f32 %v4536_v50, %v2420_v57 }
 0xb72   : > { %2431 = vrot.lane.b32.xlu1 %v2426_v2, %s5241_s14 }
 0xb73   : > { %2429 = vrot.lane.b32.xlu0 %v2425_v55, %s5241_s14 }
 0xbe4   : > { %v2432_v6 = vpop.permute.xlu1 %2431 }
 0xbe5   : > { %v2430_v3 = vpop.permute.xlu0 %2429 }
 0xbe6   : > { %3934 = vmatprep.mubr.msk.f32.mxu0 %vm2163_vm8, %v2430_v3 }
 0xbe7   : > { %3935 = vmatmul.mubr.msk.f32.vlgmr.msra.gmra.mrb[6].mxu0 %vm2163_vm8, %v2432_v6 }
 0xbe8   : > { %4173 = vmatpush3.bf16.msra.mxu0 %v6148_v12 }
 0xbe9   : > { %4175 = vmatprep.subr.bf16.mxu0 %v6169_v5 }
 0xbec   : > { %4177 = vmatpush3.bf16.msra.mxu0 %v6169_v5 }
 0xcba   : > { %v3936_v7 = vpop.f32.mrb[6].mxu0 }
 0xcbb   : > { %v4236_v8 = vadd.f32 %v3936_v7, %v6210_v4  ;;  %v2503_v9 = vpop.f32.mrb[7].mxu0 }
 0xcbc   : > { %v4237_v10 = vadd.f32 %v6210_v4, %v2503_v9 }
 0xcbd   : > { %4541 = vtanh.f32 %v4236_v8  ;;  %v2515_v14 = vsub.f32 0.0, %v4236_v8 }
 0xcbe   : > { %4543 = vtanh.f32 %v4237_v10  ;;  %v2514_v12 = vsub.f32 0.0, %v4237_v10  ;;  %v2752_v10 = vld [vmem:[%s5985_s19 + $0x8] sm:$0xff] }
 0xcbf   : > { %v2518_v16 = vmul.f32 1.442695, %v2515_v14 }
 0xcc0   : > { %v2516_v19 = vmul.f32 1.442695, %v2514_v12  ;;  %v2753_v12 = vld [vmem:[%s5985_s19 + $0x10] sm:$0xff] }
 0xcc1   : > { %4545 = vpow2.f32 %v2518_v16  ;;  %v2756_v16 = vld [vmem:[%s5985_s19 + $0x28] sm:$0xff] }
 0xcc2   : > { %4547 = vpow2.f32 %v2516_v19  ;;  %v2758_v19 = vld [vmem:[%s5985_s19 + $0x38] sm:$0xff] }
 0xcc7   : > { %v4542_v11 = vpop.eup %4541 }
 0xcc8   : > { %v4544_v13 = vpop.eup %4543  ;;  %2534 = vrot.lane.b32.xlu1 %v4542_v11, %s5239_s10  ;;  %v2754_v11 = vld [vmem:[%s5985_s19 + $0x18] sm:$0xff] }
 0xcc9   : > { %2532 = vrot.lane.b32.xlu0 %v4544_v13, %s5239_s10  ;;  %v2751_v13 = vld [vmem:[%s5985_s19] sm:$0xff]  ;;  %v4178_v14 = vpack.c.bf16 %v2754_v11, %v2752_v10 }
 0xccb   : > { %v4546_v5 = vpop.eup %4545  ;;  %4179 = vmatprep.subr.bf16.mxu1 %v4178_v14 }
 0xccc   : > { %v4548_v17 = vpop.eup %4547  ;;  %v2521_v20 = vadd.f32 1.0, %v4546_v5  ;;  %v4180_v5 = vpack.c.bf16 %v2753_v12, %v2751_v13 }
 0xccd   : > { %v2520_v21 = vadd.f32 1.0, %v4548_v17  ;;  %v4182_v17 = vpack.c.bf16 %v2758_v19, %v2756_v16 }
 0xcce   : > { %4549 = vrcp.f32 %v2521_v20  ;;  %v2755_v20 = vld [vmem:[%s5985_s19 + $0x20] sm:$0xff]  ;;  %4181 = vmatpush1.bf16.msra.mxu1 %v4180_v5 }
 0xccf   : > { %4551 = vrcp.f32 %v2520_v21  ;;  %v2757_v21 = vld [vmem:[%s5985_s19 + $0x30] sm:$0xff]  ;;  %4183 = vmatprep.subr.bf16.mxu1 %v4182_v17 }
 0xcd8   : > { %v4550_v22 = vpop.eup %4549 }
 0xcd9   : > { %v4552_v25 = vpop.eup %4551  ;;  %v2529_v39 = vmul.f32 %v4550_v22, %v2414_v58 }
 0xcda   : > { %v2528_v35 = vmul.f32 %v4552_v25, %v2413_v61 }
 0xd3a   : > { %v2535_v27 = vpop.permute.xlu1 %2534 }
 0xd3b   : > { %v2539_v30 = vmul.f32 %v4550_v22, %v2535_v27  ;;  %v2533_v24 = vpop.permute.xlu0 %2532 }
 0xd3c   : > { %v2538_v26 = vmul.f32 %v4552_v25, %v2533_v24 }
 0xd3d   : > { %2544 = vrot.lane.b32.xlu1 %v2539_v30, %s5241_s14 }
 0xd3e   : > { %2542 = vrot.lane.b32.xlu0 %v2538_v26, %s5241_s14 }
 0xdaf   : > { %v2545_v28 = vpop.permute.xlu1 %2544 }
 0xdb0   : > { %v2549_v29 = vadd.f32 %v2545_v28, %v2529_v39  ;;  %v2543_v31 = vpop.permute.xlu0 %2542 }
 0xdb1   : > { %v2548_v32 = vadd.f32 %v2543_v31, %v2528_v35 }
 0xdb2   : > { %4553 = vtanh.f32 %v2549_v29 }
 0xdb3   : > { %4555 = vtanh.f32 %v2548_v32 }
 0xdbc   : > { %v4554_v33 = vpop.eup %4553 }
 0xdbd   : > { %v4556_v34 = vpop.eup %4555  ;;  %2556 = vrot.lane.b32.xlu1 %v4554_v33, %s5239_s10 }
 0xdbe   : > { %2554 = vrot.lane.b32.xlu0 %v4556_v34, %s5239_s10 }
 0xe2f   : > { %v2557_v36 = vpop.permute.xlu1 %2556 }
 0xe30   : > { %v2561_v37 = vmul.f32 %v4550_v22, %v2557_v36  ;;  %v2555_v38 = vpop.permute.xlu0 %2554  ;;  %v4184_v22 = vpack.c.bf16 %v2757_v21, %v2755_v20  ;;  %v2759_v21 = vld [vmem:[%s5992_s7] sm:$0x3]  ;;  %s6631_s7 = sld [smem:[#allocation79_spill]] (!%p3579_p8) }
 0xe31   : > { %v2560_v40 = vmul.f32 %v4552_v25, %v2555_v38 }
 0xe32   : > { %2566 = vrot.lane.b32.xlu1 %v2561_v37, %s5241_s14  ;;  %4185 = vmatpush1.bf16.msra.mxu1 %v4184_v22 }
 0xe33   : > { %2564 = vrot.lane.b32.xlu0 %v2560_v40, %s5241_s14 }
 0xe36   : > { %s6632_s21 = smov (!%p3579_p8), %s6631_s7 }
 0xea4   : > { %v2567_v42 = vpop.permute.xlu1 %2566 }
 0xea5   : > { %v2565_v41 = vpop.permute.xlu0 %2564 }
 0xea6   : > { %3945 = vmatprep.mubr.msk.f32.mxu0 %vm2163_vm8, %v2565_v41 }
 0xea7   : > { %3946 = vmatmul.mubr.msk.f32.vlgmr.msra.gmra.mrb[4].mxu0 %vm2163_vm8, %v2567_v42 }
 0xf7a   : > { %v3947_v43 = vpop.f32.mrb[4].mxu0 }
 0xf7b   : > { %v4234_v44 = vadd.f32 %v3947_v43, %v6210_v4  ;;  %v2638_v46 = vpop.f32.mrb[5].mxu0 }
 0xf7c   : > { %v4235_v47 = vadd.f32 %v6210_v4, %v2638_v46 }
 0xf7d   : > { %4557 = vtanh.f32 %v4234_v44  ;;  %v2650_v50 = vsub.f32 0.0, %v4234_v44 }
 0xf7e   : > { %4559 = vtanh.f32 %v4235_v47  ;;  %v2649_v51 = vsub.f32 0.0, %v4235_v47 }
 0xf7f   : > { %v2653_v52 = vmul.f32 1.442695, %v2650_v50 }
 0xf80   : > { %v2651_v53 = vmul.f32 1.442695, %v2649_v51 }
 0xf81   : > { %4561 = vpow2.f32 %v2653_v52 }
 0xf82   : > { %4563 = vpow2.f32 %v2651_v53 }
 0xf87   : > { %v4558_v48 = vpop.eup %4557 }
 0xf88   : > { %v4560_v49 = vpop.eup %4559  ;;  %2669 = vrot.lane.b32.xlu1 %v4558_v48, %s5239_s10 }
 0xf89   : > { %2667 = vrot.lane.b32.xlu0 %v4560_v49, %s5239_s10 }
 0xf8b   : > { %v4562_v56 = vpop.eup %4561 }
 0xf8c   : > { %v4564_v59 = vpop.eup %4563  ;;  %v2656_v0 = vadd.f32 1.0, %v4562_v56 }
 0xf8d   : > { %v2655_v58 = vadd.f32 1.0, %v4564_v59 }
 0xf8e   : > { %4565 = vrcp.f32 %v2656_v0 }
 0xf8f   : > { %4567 = vrcp.f32 %v2655_v58 }
 0xf98   : > { %v4566_v4 = vpop.eup %4565 }
 0xf99   : > { %v4568_v61 = vpop.eup %4567  ;;  %v2664_v2 = vmul.f32 %v4566_v4, %v2549_v29 }
 0xf9a   : > { %v2663_v55 = vmul.f32 %v4568_v61, %v2548_v32 }
 0xffa   : > { %v2670_v60 = vpop.permute.xlu1 %2669 }
 0xffb   : > { %v2674_v62 = vmul.f32 %v4566_v4, %v2670_v60  ;;  %v2668_v63 = vpop.permute.xlu0 %2667 }
 0xffc   : > { %v2673_v1 = vmul.f32 %v4568_v61, %v2668_v63 }
 0xffd   : > { %2679 = vrot.lane.b32.xlu1 %v2674_v62, %s5241_s14 }
 0xffe   : > { %2677 = vrot.lane.b32.xlu0 %v2673_v1, %s5241_s14 }
0x106f   : > { %v2680_v57 = vpop.permute.xlu1 %2679 }
0x1070   : > { %v2684_v3 = vadd.f32 %v2680_v57, %v2664_v2  ;;  %v2678_v6 = vpop.permute.xlu0 %2677 }
0x1071   : > { %v2683_v7 = vadd.f32 %v2678_v6, %v2663_v55 }
0x1072   : > { %4569 = vtanh.f32 %v2684_v3 }
0x1073   : > { %4571 = vtanh.f32 %v2683_v7 }
0x107c   : > { %v4570_v8 = vpop.eup %4569 }
0x107d   : > { %v4572_v9 = vpop.eup %4571  ;;  %2691 = vrot.lane.b32.xlu1 %v4570_v8, %s5239_s10 }
0x107e   : > { %2689 = vrot.lane.b32.xlu0 %v4572_v9, %s5239_s10 }
0x10ef   : > { %v2692_v27 = vpop.permute.xlu1 %2691 }
0x10f0   : > { %v2696_v25 = vmul.f32 %v4566_v4, %v2692_v27  ;;  %v2690_v30 = vpop.permute.xlu0 %2689 }
0x10f1   : > { %v2695_v24 = vmul.f32 %v4568_v61, %v2690_v30 }
0x10f2   : > { %v2700_v26 = vmul.f32 0.70710677, %v2696_v25  ;;  %v2698_v11 = vmul.f32 0.5, %v2696_v25 }
0x10f3   : > { %v2699_v39 = vmul.f32 0.70710677, %v2695_v24  ;;  %v2697_v14 = vmul.f32 0.5, %v2695_v24 }
0x10f4   : > { %v2706_v28 = vand.u32 2147483647, %v2700_v26  ;;  %vm2702_vm9 = vcmp.lt.f32.partialorder %v2700_v26, 0.0 }
0x10f5   : > { %v2705_v35 = vand.u32 2147483647, %v2699_v39  ;;  %vm2701_vm10 = vcmp.lt.f32.partialorder %v2699_v39, 0.0  ;;  %v2704_v6 = vsel %vm2702_vm9, -1.0, %v5240_v45 }
0x10f6   : > { %v2708_v29 = vmul.f32 0.3275911, %v2706_v28  ;;  %v2734_v34 = vsub.f32 0.0, %v2706_v28  ;;  %v2703_v8 = vsel %vm2701_vm10, -1.0, %v5240_v45  ;;  %v2762_v45 = vshrl.u32 %v1642_v54, 7 }
0x10f7   : > { %v2707_v31 = vmul.f32 0.3275911, %v2705_v35  ;;  %v2733_v36 = vsub.f32 0.0, %v2705_v35 }
0x10f8   : > { %v2710_v32 = vadd.f32 1.0, %v2708_v29  ;;  %v2736_v38 = vmul.f32 %v2734_v34, %v2706_v28  ;;  %v2767_v20 = vsub.s32 1, %v2762_v45  ;;  %v2763_v54 = vsub.s32 0, %v2762_v45 }
0x10f9   : > { %v2709_v33 = vadd.f32 1.0, %v2707_v31  ;;  %v2735_v41 = vmul.f32 %v2733_v36, %v2705_v35 }
0x10fa   : > { %4573 = vrcp.f32 %v2710_v32  ;;  %v2739_v46 = vmul.f32 1.442695, %v2736_v38  ;;  %v2768_v22 = vrot.slane %v2759_v21, %v2767_v20  ;;  %v2764_v36 = vrot.slane %v2759_v21, %v2763_v54 }
0x10fb   : > { %4575 = vrcp.f32 %v2709_v33  ;;  %v2737_v48 = vmul.f32 1.442695, %v2735_v41 }
0x10fc   : > { %4577 = vpow2.f32 %v2739_v46 }
0x10fd   : > { %4579 = vpow2.f32 %v2737_v48  ;;  %v2893_v48 = vld [vmem:[#allocation24 + $0x8] sm:$0xff] (!%p3579_p8) }
0x1104   : > { %v4574_v37 = vpop.eup %4573 }
0x1105   : > { %v4576_v40 = vpop.eup %4575  ;;  %v2716_v42 = vmul.f32 1.0614054, %v4574_v37 }
0x1106   : > { %v2715_v43 = vmul.f32 1.0614054, %v4576_v40  ;;  %v4578_v63 = vpop.eup %4577 }
0x1107   : > { %v2718_v44 = vadd.f32 -1.4531521, %v2716_v42  ;;  %v4580_v2 = vpop.eup %4579 }
0x1108   : > { %v2717_v47 = vadd.f32 -1.4531521, %v2715_v43 }
0x1109   : > { %v2720_v49 = vmul.f32 %v4574_v37, %v2718_v44 }
0x110a   : > { %v2719_v50 = vmul.f32 %v4576_v40, %v2717_v47  ;;  %v2892_v47 = vld [vmem:[#allocation24] sm:$0xff] (!%p3579_p8) }
0x110b   : > { %v2722_v51 = vadd.f32 1.4214138, %v2720_v49  ;;  %v2894_v49 = vld [vmem:[#allocation24 + $0x10] sm:$0xff] (!%p3579_p8) }
0x110c   : > { %v2721_v52 = vadd.f32 1.4214138, %v2719_v50  ;;  %v5242_v50 = vmov (!%p3579_p8), 0.0|0.0  }
0x110d   : > { %v2724_v53 = vmul.f32 %v4574_v37, %v2722_v51  ;;  %4186 = vmatprep.subr.bf16.mxu0 (!%p3579_p8), %v5242_v50  ;;  %v4187_v51 = vpack.c.bf16 (!%p3579_p8), %v2893_v48, %v2892_v47  ;;  %4210 = vmatprep.subr.bf16.mxu1 (!%p3579_p8), %v5242_v50 }
0x110e   : > { %v2723_v56 = vmul.f32 %v4576_v40, %v2721_v52  ;;  %v2895_v52 = vld [vmem:[#allocation24 + $0x18] sm:$0xff] (!%p3579_p8) }
0x110f   : > { %v2726_v59 = vadd.f32 -0.28449672, %v2724_v53  ;;  %4188 = vmatpush3.bf16.msra.mxu0 (!%p3579_p8), %v4187_v51  ;;  %v2896_v53 = vld [vmem:[#allocation24 + $0x20] sm:$0xff] (!%p3579_p8) }
0x1110   : > { %v2725_v0 = vadd.f32 -0.28449672, %v2723_v56  ;;  %4189 = vmatprep.subr.bf16.mxu0 (!%p3579_p8), %v5242_v50  ;;  %v2897_v56 = vld [vmem:[#allocation24 + $0x28] sm:$0xff] (!%p3579_p8) }
0x1111   : > { %v2728_v58 = vmul.f32 %v4574_v37, %v2726_v59  ;;  %v4193_v59 = vpack.c.bf16 (!%p3579_p8), %v2897_v56, %v2896_v53 }
0x1112   : > { %v2727_v4 = vmul.f32 %v4576_v40, %v2725_v0 }
0x1113   : > { %v2730_v60 = vadd.f32 0.2548296, %v2728_v58 }
0x1114   : > { %v2729_v61 = vadd.f32 0.2548296, %v2727_v4  ;;  %v2898_v4 = vld [vmem:[#allocation24 + $0x30] sm:$0xff] (!%p3579_p8) }
0x1115   : > { %v2732_v62 = vmul.f32 %v4574_v37, %v2730_v60  ;;  %v2899_v60 = vld [vmem:[#allocation24 + $0x38] sm:$0xff] (!%p3579_p8) }
0x1116   : > { %v2731_v1 = vmul.f32 %v4576_v40, %v2729_v61  ;;  %v4196_v61 = vpack.c.bf16 (!%p3579_p8), %v2899_v60, %v2898_v4 }
0x1117   : > { %v2742_v57 = vmul.f32 %v4578_v63, %v2732_v62 }
0x1118   : > { %v2741_v55 = vmul.f32 %v4580_v2, %v2731_v1  ;;  %v2900_v1 = vld [vmem:[#allocation24 + $0x40] sm:$0xff] (!%p3579_p8)  ;;  %v2901_v2 = vld [vmem:[#allocation24 + $0x48] sm:$0xff] (!%p3579_p8) }
0x1119   : > { %v2744_v3 = vsub.f32 1.0, %v2742_v57  ;;  %v4199_v57 = vpack.c.bf16 (!%p3579_p8), %v2901_v2, %v2900_v1 }
0x111a   : > { %v2743_v7 = vsub.f32 1.0, %v2741_v55 }
0x111b   : > { %v2746_v9 = vmul.f32 %v2744_v3, %v2704_v6  ;;  %v2902_v6 = vld [vmem:[#allocation24 + $0x50] sm:$0xff] (!%p3579_p8) }
0x111c   : > { %v2745_v10 = vmul.f32 %v2743_v7, %v2703_v8  ;;  %v2903_v7 = vld [vmem:[#allocation24 + $0x58] sm:$0xff] (!%p3579_p8) }
0x111d   : > { %v2748_v13 = vadd.f32 1.0, %v2746_v9  ;;  %v4202_v8 = vpack.c.bf16 (!%p3579_p8), %v2903_v7, %v2902_v6  ;;  %v5245_v6 = vmov (!%p3579_p8), 1.0  }
0x111e   : > { %v2747_v12 = vadd.f32 1.0, %v2745_v10 }
0x111f   : > { %v2750_v16 = vmul.f32 %v2748_v13, %v2698_v11  ;;  %v2904_v11 = vld [vmem:[#allocation24 + $0x60] sm:$0xff] (!%p3579_p8)  ;;  %v2905_v13 = vld [vmem:[#allocation24 + $0x68] sm:$0xff] (!%p3579_p8) }
0x1120   : > { %v2749_v19 = vmul.f32 %v2747_v12, %v2697_v14  ;;  %v4205_v14 = vpack.c.bf16 (!%p3579_p8), %v2905_v13, %v2904_v11  ;;  %v3581_v13 = vld [vmem:[#allocation27] ss:$0 sm:$0xff] (!%p3579_p8) }
0x1121   : > { %2775 = vrot.lane.b32.xlu1 %v2750_v16, %s5241_s14 }
0x1122   : > { %2773 = vrot.lane.b32.xlu0 %v2749_v19, %s5241_s14  ;;  %v2906_v19 = vld [vmem:[#allocation24 + $0x70] sm:$0xff] (!%p3579_p8) }
0x1193   : > { %v2776_v17 = vpop.permute.xlu1 %2775 }
0x1194   : > { %v2774_v5 = vpop.permute.xlu0 %2773 }
0x1195   : > { %3577 = vmatmul.mubr.msk.f32.vlgmr.msra.gmra.mrb[8].mxu1 %vm2163_vm8, %v2774_v5  ;;  %v2907_v5 = vld [vmem:[#allocation24 + $0x78] sm:$0xff] (!%p3579_p8) }
0x1196   : > { %2851 = vmatprep.mubr.f32.mxu1 %v5238_v23 }
0x1199   : > { %3578 = vmatmul.mubr.msk.f32.gmra.mrb[10].mxu1 %vm2163_vm8, %v2776_v17  ;;  %v4208_v17 = vpack.c.bf16 (!%p3579_p8), %v2907_v5, %v2906_v19 }
0x1268   : > { %v2847_v27 = vpop.f32.mrb[8].mxu1 }
0x1269   : > { %v2849_v25 = vpop.f32.mrb[9].mxu1  ;;  %v2848_v37 = vadd.f32 %v2847_v27, %v2764_v36  ;;  %v3018_v27 = vld [vmem:[%s6632_s21 + $0x8] sm:$0xff] (!%p3579_p8) }
0x126a   : > { %v2850_v30 = vadd.f32 %v2849_v25, %v2768_v22  ;;  %v3019_v25 = vld [vmem:[%s6632_s21 + $0x10] sm:$0xff] (!%p3579_p8) }
0x126c   : > { %v2858_v24 = vsub.f32 0.0, %v2850_v30  ;;  %v2853_v26 = vpop.f32.mrb[10].mxu1 }
0x126d   : > { %v2855_v39 = vpop.f32.mrb[11].mxu1  ;;  %v2854_v42 = vadd.f32 %v2853_v26, %v2764_v36  ;;  %v3028_v36 = vld [vmem:[%s6632_s21 + $0x58] sm:$0xff] (!%p3579_p8) }
0x126e   : > { %v2860_v28 = vmul.f32 1.442695, %v2858_v24  ;;  %v2856_v35 = vadd.f32 %v2855_v39, %v2768_v22  ;;  %v3017_v22 = vld [vmem:[%s6631_s7] sm:$0xff] (!%p3579_p8)  ;;  %v3020_v24 = vld [vmem:[%s6632_s21 + $0x18] sm:$0xff] (!%p3579_p8) }
0x126f   : > { %v4211_v30 = vpack.c.bf16 (!%p3579_p8), %v3018_v27, %v3017_v22  ;;  %v4214_v26 = vpack.c.bf16 (!%p3579_p8), %v3020_v24, %v3019_v25  ;;  %v3021_v39 = vld [vmem:[%s6632_s21 + $0x20] sm:$0xff] (!%p3579_p8) }
0x1270   : > { %4581 = vpow2.f32 %v2860_v28  ;;  %v2859_v29 = vsub.f32 0.0, %v2856_v35  ;;  %v3022_v28 = vld [vmem:[%s6632_s21 + $0x28] sm:$0xff] (!%p3579_p8) }
0x1271   : > { %4212 = vmatpush3.bf16.msra.mxu1 (!%p3579_p8), %v4211_v30  ;;  %v4217_v35 = vpack.c.bf16 (!%p3579_p8), %v3022_v28, %v3021_v39 }
0x1272   : > { %v2862_v31 = vmul.f32 1.442695, %v2859_v29  ;;  %4213 = vmatprep.subr.bf16.mxu1 (!%p3579_p8), %v5242_v50  ;;  %v3023_v29 = vld [vmem:[%s6632_s21 + $0x30] sm:$0xff] (!%p3579_p8) }
0x1274   : > { %4583 = vpow2.f32 %v2862_v31  ;;  %v3024_v31 = vld [vmem:[%s6632_s21 + $0x38] sm:$0xff] (!%p3579_p8) }
0x1275   : > { %4215 = vmatpush3.bf16.msra.mxu1 (!%p3579_p8), %v4214_v26 }
0x1276   : > { %4216 = vmatprep.subr.bf16.mxu1 (!%p3579_p8), %v5242_v50 }
0x1279   : > { %4218 = vmatpush3.bf16.msra.mxu1 (!%p3579_p8), %v4217_v35 }
0x127a   : > { %v4582_v23 = vpop.eup %4581  ;;  %4219 = vmatprep.subr.bf16.mxu1 (!%p3579_p8), %v5242_v50 }
0x127b   : > { %v2864_v32 = vadd.f32 1.0, %v4582_v23  ;;  %v4220_v23 = vpack.c.bf16 (!%p3579_p8), %v3024_v31, %v3023_v29 }
0x127d   : > { %4585 = vrcp.f32 %v2864_v32  ;;  %v3025_v32 = vld [vmem:[%s6632_s21 + $0x40] sm:$0xff] (!%p3579_p8)  ;;  %4221 = vmatpush3.bf16.msra.mxu1 (!%p3579_p8), %v4220_v23 }
0x127e   : > { %v4584_v33 = vpop.eup %4583  ;;  %4222 = vmatprep.subr.bf16.mxu1 (!%p3579_p8), %v5242_v50 }
0x127f   : > { %v2865_v34 = vadd.f32 1.0, %v4584_v33  ;;  %v3026_v33 = vld [vmem:[%s6632_s21 + $0x48] sm:$0xff] (!%p3579_p8) }
0x1280   : > { %v4223_v54 = vpack.c.bf16 (!%p3579_p8), %v3026_v33, %v3025_v32 }
0x1281   : > { %4587 = vrcp.f32 %v2865_v34  ;;  %v3027_v34 = vld [vmem:[%s6632_s21 + $0x50] sm:$0xff] (!%p3579_p8) }
0x1282   : > { %4224 = vmatpush3.bf16.msra.mxu1 (!%p3579_p8), %v4223_v54 }
0x1283   : > { %4225 = vmatprep.subr.bf16.mxu1 (!%p3579_p8), %v5242_v50 }
0x1287   : > { %v4586_v38 = vpop.eup %4585 }
0x1288   : > { %v2870_v40 = vmul.f32 %v4586_v38, %v2848_v37  ;;  %v4226_v37 = vpack.c.bf16 (!%p3579_p8), %v3028_v36, %v3027_v34  ;;  %v3029_v38 = vld [vmem:[%s6632_s21 + $0x60] sm:$0xff] (!%p3579_p8) }
0x128a   : > { %v2872_v41 = vadd.f32 %v2870_v40, %v6229_v18  ;;  %2879 = sbr.rel (%p3579_p8) target bundleno = 5255 (0x1487), region = 184  ;;  %v5244_v18 = vmov (!%p3579_p8), 0.0   ;;  %v3030_v40 = vld [vmem:[%s6632_s21 + $0x68] sm:$0xff] (!%p3579_p8)  ;;  %4227 = vmatpush3.bf16.msra.mxu1 (!%p3579_p8), %v4226_v37 }
0x128b   : > { %v4588_v43 = vpop.eup %4587  ;;  %3980 = vmatprep.mubr.msk.f32.mxu0 (!%p3579_p8), %vm5243_vm11, %v5244_v18  ;;  %4015 = vmatprep.mubr.msk.f32.mxu1 (!%p3579_p8), %vm5243_vm11, %v5244_v18 }
0x128c   : > { %2874 = vst [vmem:[#allocation2] sm:$0xff] %v2872_v41  ;;  %v2871_v44 = vmul.f32 %v4588_v43, %v2854_v42  ;;  %v2880_v0 = vrot.slane (!%p3579_p8), %v2872_v41, 4  ;;  %4228 = vmatprep.subr.bf16.mxu1 (!%p3579_p8), %v5242_v50  ;;  %v3031_v42 = vld [vmem:[%s6632_s21 + $0x70] sm:$0xff] (!%p3579_p8)  ;;  %v3032_v43 = vld [vmem:[%s6632_s21 + $0x78] sm:$0xff] (!%p3579_p8) }
0x128e   : > { %v2873_v46 = vadd.f32 %v2871_v44, %v6226_v15  ;;  %v4190_v15 = vpack.c.bf16 (!%p3579_p8), %v2895_v52, %v2894_v49  ;;  %v2881_v62 = vadd.f32 (!%p3579_p8), %v2880_v0, %v2872_v41  ;;  %v4229_v41 = vpack.c.bf16 (!%p3579_p8), %v3030_v40, %v3029_v38 }
0x128f   : > { %v4232_v44 = vpack.c.bf16 (!%p3579_p8), %v3032_v43, %v3031_v42 }
0x1290   : > { %2875 = vst [vmem:[#allocation2 + $0x8] sm:$0xff] %v2873_v46  ;;  %4191 = vmatpush3.bf16.msra.mxu0 (!%p3579_p8), %v4190_v15  ;;  %v2886_v58 = vrot.slane (!%p3579_p8), %v2873_v46, 4  ;;  %v2882_v55 = vrot.slane (!%p3579_p8), %v2881_v62, 2  ;;  %4230 = vmatpush3.bf16.msra.mxu1 (!%p3579_p8), %v4229_v41 }
0x1291   : > { %4192 = vmatprep.subr.bf16.mxu0 %v5242_v50  ;;  %4231 = vmatprep.subr.bf16.mxu1 %v5242_v50 }
0x1292   : > { %v2887_v63 = vadd.f32 %v2886_v58, %v2873_v46  ;;  %v2883_v9 = vadd.f32 %v2882_v55, %v2881_v62  ;;  %v3580_v46 = vld [vmem:[#allocation26] ss:$0 sm:$0xff] }
0x1294   : > { %4194 = vmatpush3.bf16.msra.mxu0 %v4193_v59  ;;  %v2888_v3 = vrot.slane %v2887_v63, 2  ;;  %v2884_v12 = vrot.slane %v2883_v9, 1  ;;  %4233 = vmatpush3.bf16.msra.mxu1 %v4232_v44 }
0x1295   : > { %4195 = vmatprep.subr.bf16.mxu0 %v5242_v50 }
0x1296   : > { %v2889_v10 = vadd.f32 %v2888_v3, %v2887_v63  ;;  %v2885_v45 = vadd.f32 %v2884_v12, %v2883_v9 }
0x1298   : > { %4197 = vmatpush3.bf16.msra.mxu0 %v4196_v61  ;;  %v2890_v16 = vrot.slane %v2889_v10, 1 }
0x1299   : > { %4198 = vmatprep.subr.bf16.mxu0 %v5242_v50 }
0x129a   : > { %v2891_v20 = vadd.f32 %v2890_v16, %v2889_v10 }
0x129c   : > { %4200 = vmatpush3.bf16.msra.mxu0 %v4199_v57  ;;  %v2918_v21 = vsel %vm2917_vm12, %v2891_v20, %v2885_v45 }
0x129d   : > { %4201 = vmatprep.subr.bf16.mxu0 %v5242_v50 }
0x12a0   : > { %4203 = vmatpush3.bf16.msra.mxu0 %v4202_v8 }
0x12a1   : > { %4204 = vmatprep.subr.bf16.mxu0 %v5242_v50 }
0x12a4   : > { %4206 = vmatpush3.bf16.msra.mxu0 %v4205_v14 }
0x12a5   : > { %4207 = vmatprep.subr.bf16.mxu0 %v5242_v50 }
0x12a8   : > { %4209 = vmatpush3.bf16.msra.mxu0 %v4208_v17 }
0x12ab   : > { %3981 = vmatmul.mubr.f32.vlgmr.msra.gmra.mrb[0].mxu0 %v2918_v21 }
0x137e   : > { %v2986_v47 = vpop.f32.mrb[0].mxu0 }
0x137f   : > { %v2987_v48 = vadd.f32 %v3580_v46, %v2986_v47  ;;  %v3982_v49 = vpop.f32.mrb[1].mxu0 }
0x1381   : > { %v2991_v51 = vmul.f32 0.70710677, %v2987_v48  ;;  %v2990_v9 = vmul.f32 0.5, %v2987_v48 }
0x1383   : > { %v2994_v52 = vand.u32 2147483647, %v2991_v51  ;;  %vm2992_vm13 = vcmp.lt.f32.partialorder %v2991_v51, 0.0 }
0x1384   : > { %v2993_v7 = vsel %vm2992_vm13, -1.0, %v5245_v6 }
0x1385   : > { %v2995_v18 = vmul.f32 0.3275911, %v2994_v52  ;;  %v3008_v53 = vsub.f32 0.0, %v2994_v52 }
0x1387   : > { %v2996_v15 = vadd.f32 1.0, %v2995_v18  ;;  %v3009_v59 = vmul.f32 %v3008_v53, %v2994_v52 }
0x1389   : > { %4589 = vrcp.f32 %v2996_v15  ;;  %v3010_v4 = vmul.f32 1.442695, %v3009_v59 }
0x138b   : > { %4591 = vpow2.f32 %v3010_v4 }
0x1393   : > { %v4590_v56 = vpop.eup %4589 }
0x1394   : > { %v2999_v0 = vmul.f32 1.0614054, %v4590_v56 }
0x1395   : > { %v4592_v57 = vpop.eup %4591 }
0x1396   : > { %v3000_v58 = vadd.f32 -1.4531521, %v2999_v0 }
0x1398   : > { %v3001_v60 = vmul.f32 %v4590_v56, %v3000_v58 }
0x139a   : > { %v3002_v61 = vadd.f32 1.4214138, %v3001_v60 }
0x139c   : > { %v3003_v50 = vmul.f32 %v4590_v56, %v3002_v61 }
0x139e   : > { %v3004_v62 = vadd.f32 -0.28449672, %v3003_v50 }
0x13a0   : > { %v3005_v63 = vmul.f32 %v4590_v56, %v3004_v62 }
0x13a2   : > { %v3006_v1 = vadd.f32 0.2548296, %v3005_v63 }
0x13a4   : > { %v3007_v2 = vmul.f32 %v4590_v56, %v3006_v1 }
0x13a6   : > { %v3012_v55 = vmul.f32 %v4592_v57, %v3007_v2 }
0x13a8   : > { %v3013_v3 = vsub.f32 1.0, %v3012_v55 }
0x13aa   : > { %v3014_v8 = vmul.f32 %v3013_v3, %v2993_v7 }
0x13ac   : > { %v3015_v10 = vadd.f32 1.0, %v3014_v8 }
0x13ae   : > { %v3016_v11 = vmul.f32 %v3015_v10, %v2990_v9 }
0x13b0   : > { %4016 = vmatmul.mubr.f32.vlgmr.msra.gmra.mrb[0].mxu1 %v3016_v11 }
0x1483   : > { %v3106_v14 = vpop.f32.mrb[0].mxu1 }
0x1484   : > { %v3107_v12 = vadd.f32 %v3581_v13, %v3106_v14  ;;  %v4017_v16 = vpop.f32.mrb[1].mxu1 }
0x1486   : > { %3111 = vst.msk [vmem:[%s1202_s4] sm:$0x3] %vm3110_vm14, %v3107_v12 }
0x1487 PF: > { %s6633_s2 = sld [smem:[#allocation45_spill]]  ;;  %s6634_s13 = sld [smem:[#allocation41_spill]] }
0x1488   : > { %s6635_s23 = sld [smem:[#allocation51_spill]]  ;;  %s3126_s6 = sshll.u32 %s1202_s4, 4  ;;  %s3127_s6 = int_to_ptr.vmem [resolvable:$true] %s3126_s6 }
0x1489   : > { %s6636_s11 = sld [smem:[#allocation81_spill]]  ;;  %s5061_s0 = scalar_lea.vmem %s3127_s6, 32 }
0x148a   : > { %p5062_p2 = scmp.ne.s32.totalorder %s3127_s6, %s5061_s0  ;;  %s5246_s28 = smov [#allocation29]  }
0x148b   : > { %s5065_s3 = sshll.u32 %s5246_s28, 4  ;;  %s5066_s3 = int_to_ptr.vmem [resolvable:$false] %s5065_s3 }
0x148c   : > { %s5067_s17 = scalar_lea.vmem %s5066_s3, 64  ;;  %p5068_p1 = scmp.lt.s32.totalorder %s3127_s6, %s5066_s3 }
0x148d   : > { %s3583_s8 = sshll.u32 %s6633_s2, 5  ;;  %s6637_s22 = sand.u32 1, %s6634_s13  }
0x148e   : > { %s3113_s18 = scalar_lea.sflag [#allocation5], %s6637_s22  ;;  %p6638_p10 = scmp.ne.s32.totalorder %s6635_s23, 0 }
0x148f   : > { %s6366_s20 = scalar_lea.hbm %s6636_s11, %s3583_s8  ;;  %p5069_p4 = scmp.lt.s32.totalorder %s5067_s17, %s5061_s0 }
0x1490   : > { %p5063_p3 = pnand %p5062_p2, %p6638_p10 }
0x1491   : > { %p5070_p9 = por %p5069_p4, %p5068_p1 }
0x1492   : > { %p5064_p6 = pneg %p5063_p3 }
0x1494   : > { %p5071_p7 = pnand %p5070_p9, %p5064_p6 }
0x1496   : > { %5074 = shalt.err (!%p5071_p7)
}
0x1497   : > { %s5075_s29 = scalar_lea.hbm %s6366_s20, 32  ;;  %s5079_s25 = scalar_lea.hbm %s6636_s11, 64 }
0x1498   : > { %p5076_p12 = scmp.ne.s32.totalorder %s6366_s20, %s5075_s29  ;;  %p5080_p11 = scmp.lt.u32.totalorder %s6366_s20, %s6636_s11 }
0x1499   : > { %p5081_p5 = scmp.lt.u32.totalorder %s5079_s25, %s5075_s29  ;;  %p5083_p2 = scmp.lt.u32.totalorder %s5075_s29, %s6366_s20 }
0x149a   : > { %p5077_p0 = pnand %p5076_p12, %p6638_p10 }
0x149b   : > { %p5082_p8 = por %p5081_p5, %p5080_p11 }
0x149c   : > { %p5078_p13 = pneg %p5077_p0 }
0x149d   : > { %p5084_p3 = por %p5083_p2, %p5082_p8 }
0x149f   : > { %p5085_p6 = pnand %p5084_p3, %p5078_p13 }
0x14a1   : > { %5088 = shalt.err (!%p5085_p6)
}
0x14a2   : > { %4296 = dma.vmem_to_hbm [thread:$0]  (%p6638_p10), %s3127_s6, 32, %s6366_s20, %s3113_s18  }
0x14a3 PF: > { %s6639_s24 = sld [smem:[#allocation48_spill]]  ;;  %s6640_s16 = sld [smem:[#allocation40_spill]] }
0x14a4   : > { %s6641_s15 = sld [smem:[#allocation52_spill]] }
0x14a9   : > { %p4365_p1 = scmp.ge.s32.totalorder %s6639_s24, 2  ;;  %s3138_s19 = sand.u32 1, %s6640_s16  }
0x14aa   : > { %p6642_p4 = scmp.ne.s32.totalorder %s6641_s15, 0  ;;  %s3139_s7 = scalar_lea.sflag [#allocation5], %s3138_s19 }
0x14ac   : > { %p4349_p9 = pnand %p4365_p1, %p6642_p4 }
0x14ae   : > { %5170 = dma.done.wait (!%p4349_p9), %s3139_s7, 32  }
0x14af   : > { %5172 = vsyncadd (!%p4349_p9), %s3139_s7, 4294967264  ;;  %s55_s7 = sadd.s32 1, %s6639_s24   ;;  %s6643_s4 = sld [smem:[#allocation41_spill]] }
0x14b0   : > { %p52_p7 = scmp.ge.s32.totalorder %s55_s7, 6   ;;  %s6644_s30 = sld [smem:[#allocation42_spill]] }
0x14b1   : > { %s6645_s24 = sld [smem:[#allocation57_spill]]  ;;  %s6646_s27 = sld [smem:[#allocation43_spill]] }
0x14b2   : > { %s6647_s1 = sld [smem:[#allocation56_spill]]  ;;  %s6648_s26 = sld [smem:[#allocation46_spill]] }
0x14b3   : > { %s6649_s2 = sld [smem:[#allocation47_spill]]  ;;  %s6650_s6 = sld [smem:[#allocation54_spill]] }
0x14b4   : > { %s6651_s13 = sld [smem:[#allocation55_spill]]  ;;  %s6652_s25 = smov %s5191_s5 }
0x14b5   :  { %54 = sbr.rel (!%p52_p7) target bundleno = 46 (0x2e), region = 313 }
0x14b7   : > { %s6653_s5 = smov %s6646_s27 }
0x14ba   : > { %s6654_s27 = smov %s6651_s13 }
0x14bc   :  { %3144 = vsyncpa [#allocation4], 1 }
0x14bd   :  { %3146 = vsyncpa [#allocation4 + $0x1], 1 }
0x14be   :  { %3147 = vsyncpa [#allocation7], 1 }
0x14bf   :  { %3148 = vsyncpa [#allocation10], 1 }
0x14c0   :  { %3150 = vsyncpa [#allocation10 + $0x1], 1 }
0x14c1   :  { %3151 = vsyncpa [#allocation13], 1 }
0x14c2   :  { %3153 = vsyncpa [#allocation13 + $0x1], 1 }
0x14c3   :  { %3154 = vsyncpa [#allocation16], 1 }
0x14c4   :  { %3156 = vsyncpa [#allocation16 + $0x1], 1 }
0x14c5   :  { %3157 = vsyncpa [#allocation19], 1 }
0x14c6   :  { %3159 = vsyncpa [#allocation19 + $0x1], 1 }
0x14c7   :  { %3160 = vsyncpa [#allocation22], 1 }
0x14c8   :  { %3162 = vsyncpa [#allocation22 + $0x1], 1 }
0x14c9   :  { %3163 = vsyncpa [#allocation25], 1 }
0x14ca   :  { %3164 = vsyncpa [#allocation28], 1 }
0x14cb   :  { %3165 = vsyncpa [#allocation5], 1 }
0x14cc   :  { %3167 = vsyncpa [#allocation5 + $0x1], 1 }

</bundles_post_ra>
